<compile_context>
chip_gen: v7x
topology: tpu7x:2x2x1
jax: 0.10.0
libtpu: 0.0.40
codegen_flags: <defaults>
</compile_context>

<pallas_src>
import jax
import jax.numpy as jnp
from jax import lax
from jax.experimental import pallas as pl
from jax.experimental.pallas import tpu as pltpu

IGNORE_INDEX = 255
NEG_FILL = -1e9          # logit fill for padded channels: exp() underflows to 0
_CH_GROUP = 4            # channels per grouped-logsumexp step


def bilinear_matrix(out_size: int, in_size: int) -> jnp.ndarray:
    """Interpolation matrix M (out, in) s.t. y = M @ x matches
    F.upsample(mode='bilinear', align_corners=True) along one axis."""
    if out_size == 1:
        src = jnp.zeros((1,), jnp.float32)
    else:
        src = jnp.arange(out_size, dtype=jnp.float32) * (in_size - 1) / (out_size - 1)
    lo = jnp.clip(jnp.floor(src).astype(jnp.int32), 0, in_size - 1)
    hi = jnp.clip(lo + 1, 0, in_size - 1)
    frac = src - lo.astype(jnp.float32)
    rows = jnp.arange(out_size)
    m = jnp.zeros((out_size, in_size), jnp.float32)
    m = m.at[rows, lo].add(1.0 - frac)
    m = m.at[rows, hi].add(frac)
    return m


def _round_up(x: int, m: int) -> int:
    return (x + m - 1) // m * m


def _choose_tiles(H: int, max_tile: int = 128):
    """Return (tile_h, H_pad).

    If H <= max_tile the whole (padded) height is one block (block == full
    array dims, so no divisibility constraint).  Otherwise pick a tile that is
    a multiple of 32 (so f32/bf16/uint8 sublane tilings all divide it),
    minimizing the padded height, preferring larger tiles on ties."""
    if H <= max_tile:
        t = _round_up(H, 8)
        return t, t
    best = None
    for t in range(32, max_tile + 1, 32):
        hp = _round_up(H, t)
        if best is None or hp < best[1] or (hp == best[1] and t > best[0]):
            best = (t, hp)
    return best


def _criterion_kernel(p1_ref, p2_ref, tgt_ref,
                      mh1_ref, mw1t_ref, mh2_ref, mw2t_ref,
                      loss_ref, u1c_ref, u2c_ref):
    h1p = mh1_ref.shape[1]
    h2p = mh2_ref.shape[1]
    c_pad = u1c_ref.shape[0] // h1p
    n_ch_groups = c_pad // _CH_GROUP

    t_id = pl.program_id(2)

    # First H-tile of this (batch, h_group): zero the partial-loss block and
    # refresh the h_tile-invariant width-upsample cache (one lane-dense matmul
    # per head with all channels folded into the sublane axis).
    @pl.when(t_id == 0)
    def _():
        loss_ref[...] = jnp.zeros_like(loss_ref)
        u1c_ref[...] = jnp.dot(p1_ref[0], mw1t_ref[...],
                               preferred_element_type=jnp.float32
                               ).astype(u1c_ref.dtype)
        u2c_ref[...] = jnp.dot(p2_ref[0], mw2t_ref[...],
                               preferred_element_type=jnp.float32
                               ).astype(u2c_ref.dtype)

    # Target tile + masks, shared between both heads.
    tgt = tgt_ref[0].astype(jnp.int32)                  # (TILE_H, W)
    valid = tgt != IGNORE_INDEX

    mh1 = mh1_ref[...]                                  # (TILE_H, h1p)
    mh2 = mh2_ref[...]                                  # (TILE_H, h2p)

    tile = tgt.shape
    init = (jnp.full(tile, -jnp.inf, jnp.float32),      # m1 (running max)
            jnp.zeros(tile, jnp.float32),               # l1 (running sumexp)
            jnp.zeros(tile, jnp.float32),               # s1 (selected logit)
            jnp.full(tile, -jnp.inf, jnp.float32),      # m2
            jnp.zeros(tile, jnp.float32),               # l2
            jnp.zeros(tile, jnp.float32))               # s2

    def group_body(grp, carry):
        m1, l1, s1, m2, l2, s2 = carry
        # Height upsample for _CH_GROUP channels from the cached width-upsample.
        u1s, u2s = [], []
        for j in range(_CH_GROUP):
            off1 = pl.multiple_of(grp * (_CH_GROUP * h1p) + j * h1p, 16)
            off2 = pl.multiple_of(grp * (_CH_GROUP * h2p) + j * h2p, 16)
            u1s.append(jnp.dot(mh1, u1c_ref[pl.ds(off1, h1p), :],
                               preferred_element_type=jnp.float32))
            u2s.append(jnp.dot(mh2, u2c_ref[pl.ds(off2, h2p), :],
                               preferred_element_type=jnp.float32))
        # Grouped online logsumexp: one rescale exp per group of channels.
        g1, g2 = u1s[0], u2s[0]
        for j in range(1, _CH_GROUP):
            g1 = jnp.maximum(g1, u1s[j])
            g2 = jnp.maximum(g2, u2s[j])
        m1n = jnp.maximum(m1, g1)
        m2n = jnp.maximum(m2, g2)
        l1n = l1 * jnp.exp(m1 - m1n)
        l2n = l2 * jnp.exp(m2 - m2n)
        for j in range(_CH_GROUP):
            l1n = l1n + jnp.exp(u1s[j] - m1n)
            l2n = l2n + jnp.exp(u2s[j] - m2n)
            ch = grp * _CH_GROUP + j
            is_c = tgt == ch                            # shared by both heads
            s1 = jnp.where(is_c, u1s[j], s1)
            s2 = jnp.where(is_c, u2s[j], s2)
        return m1n, l1n, s1, m2n, l2n, s2

    m1, l1, s1, m2, l2, s2 = lax.fori_loop(
        0, n_ch_groups, group_body, init, unroll=2)

    lse1 = m1 + jnp.log(l1)
    lse2 = m2 + jnp.log(l2)
    loss_px = jnp.where(valid, (lse1 - s1) + (lse2 - s2), 0.0)

    # Lane-parallel partial reduce: sum over sublanes only; lanes (W) stay
    # parallel and the final cross-lane sum happens in the wrapper.
    loss_ref[...] += jnp.sum(loss_px, axis=0, keepdims=True)[None]


def criterion_all2(preds, target, *, matmul_dtype=jnp.bfloat16,
                   max_tile_h=128, h_groups=None,
                   vmem_limit_bytes=48 * 1024 * 1024):
    """preds: [(N,C,h1,w1), (N,C,h2,w2)] logits (NCHW); target: (N,H,W) int."""
    p1, p2 = preds
    n, c, h1, w1 = p1.shape
    n2, c2, h2, w2 = p2.shape
    assert n == n2 and c == c2, "both heads must share batch and class dims"
    H, W = target.shape[1], target.shape[2]

    tile_h, H_pad = _choose_tiles(H, max_tile_h)
    num_tiles = H_pad // tile_h

    # Second "parallel" axis over H-tile groups so v7x's second TensorCore
    # gets work when batch == 1 (no-op on v5e/v6e).
    if h_groups is None:
        h_groups = 2 if (n == 1 and num_tiles >= 2 and num_tiles % 2 == 0) else 1
    assert num_tiles % h_groups == 0
    tiles_per_group = num_tiles // h_groups

    c_pad = _round_up(c, _CH_GROUP)         # pad channels with -1e9 planes
    h1p = _round_up(h1, 16)                 # sublane-tile aligned cache slices
    h2p = _round_up(h2, 16)

    # Interpolation matrices: zero-pad columns (h_in pad) and rows (H pad).
    mh1 = jnp.pad(bilinear_matrix(H, h1), ((0, H_pad - H), (0, h1p - h1)))
    mh2 = jnp.pad(bilinear_matrix(H, h2), ((0, H_pad - H), (0, h2p - h2)))
    mw1t = bilinear_matrix(W, w1).T                    # (w1, W)
    mw2t = bilinear_matrix(W, w2).T                    # (w2, W)
    mh1 = mh1.astype(matmul_dtype)
    mh2 = mh2.astype(matmul_dtype)
    mw1t = mw1t.astype(matmul_dtype)
    mw2t = mw2t.astype(matmul_dtype)

    def prep(p, h, hp):
        if c_pad > c:
            p = jnp.pad(p, ((0, 0), (0, c_pad - c), (0, 0), (0, 0)),
                        constant_values=NEG_FILL)
        p = jnp.pad(p, ((0, 0), (0, 0), (0, hp - h), (0, 0)))
        return p.astype(matmul_dtype).reshape(n, c_pad * hp, p.shape[-1])

    p1r = prep(p1, h1, h1p)
    p2r = prep(p2, h2, h2p)

    # uint8 target: 4x less per-tile DMA; padded rows are ignore_index.
    tgt_dtype = jnp.uint8 if c_pad < IGNORE_INDEX else jnp.int32
    tgt = jnp.pad(target, ((0, 0), (0, H_pad - H), (0, 0)),
                  constant_values=IGNORE_INDEX).astype(tgt_dtype)

    loss_part = pl.pallas_call(
        _criterion_kernel,
        out_shape=jax.ShapeDtypeStruct((n * h_groups, 1, W), jnp.float32),
        grid=(n, h_groups, tiles_per_group),
        in_specs=[
            # Low-res preds stay resident across the h_tile axis.
            pl.BlockSpec((1, c_pad * h1p, w1), lambda b, g, t: (b, 0, 0)),
            pl.BlockSpec((1, c_pad * h2p, w2), lambda b, g, t: (b, 0, 0)),
            pl.BlockSpec((1, tile_h, W),
                         lambda b, g, t: (b, g * tiles_per_group + t, 0)),
            pl.BlockSpec((tile_h, h1p),
                         lambda b, g, t: (g * tiles_per_group + t, 0)),
            pl.BlockSpec((w1, W), lambda b, g, t: (0, 0)),
            pl.BlockSpec((tile_h, h2p),
                         lambda b, g, t: (g * tiles_per_group + t, 0)),
            pl.BlockSpec((w2, W), lambda b, g, t: (0, 0)),
        ],
        out_specs=pl.BlockSpec((1, 1, W),
                               lambda b, g, t: (b * h_groups + g, 0, 0)),
        scratch_shapes=[pltpu.VMEM((c_pad * h1p, W), matmul_dtype),
                        pltpu.VMEM((c_pad * h2p, W), matmul_dtype)],
        compiler_params=pltpu.CompilerParams(
            dimension_semantics=("parallel", "parallel", "arbitrary"),
            vmem_limit_bytes=vmem_limit_bytes),
    )(p1r, p2r, tgt, mh1, mw1t, mh2, mw2t)

    # loss1 + loss2 == (sum of per-pixel CE over both heads) / n_valid.
    # n_valid does not depend on preds -> computed as a tiny XLA reduce here.
    total = jnp.sum(loss_part)
    count = jnp.sum((target != IGNORE_INDEX).astype(jnp.float32))
    return total / count


def criterion_all2_reference(preds, target):
    """Pure-JAX reference for validation."""
    H, W = target.shape[1], target.shape[2]
    valid = target != IGNORE_INDEX

    def one(p):
        mh = bilinear_matrix(H, p.shape[2])
        mw = bilinear_matrix(W, p.shape[3])
        up = jnp.einsum('Hh,nchw,Ww->ncHW', mh, p.astype(jnp.float32), mw)
        lse = jax.scipy.special.logsumexp(up, axis=1)          # (N,H,W)
        safe_t = jnp.where(valid, target, 0)
        sel = jnp.take_along_axis(up, safe_t[:, None], axis=1)[:, 0]
        return jnp.sum(jnp.where(valid, lse - sel, 0.0))

    return (one(preds[0]) + one(preds[1])) / jnp.sum(valid)


if __name__ == "__main__":
    key = jax.random.PRNGKey(0)

    def make_case(k, N, C, H, W, h1, w1, h2, w2, p_ignore=0.1):
        k1, k2, k3, k4 = jax.random.split(k, 4)
        pred1 = jax.random.normal(k1, (N, C, h1, w1), jnp.float32)
        pred2 = jax.random.normal(k2, (N, C, h2, w2), jnp.float32)
        labels = jax.random.randint(k3, (N, H, W), 0, C)
        ign = jax.random.uniform(k4, (N, H, W)) < p_ignore
        tgt = jnp.where(ign, IGNORE_INDEX, labels).astype(jnp.int32)
        return [pred1, pred2], tgt

    ka, kb, kc = jax.random.split(key, 3)

    # Case A: batch 2, C=5 (channel padding to 8), multiple H-tiles.
    preds, target = make_case(ka, 2, 5, 160, 160, 80, 80, 40, 40)
    ref = criterion_all2_reference(preds, target)
    loss_f32 = jax.block_until_ready(
        criterion_all2(preds, target, matmul_dtype=jnp.float32))
    assert jnp.allclose(loss_f32, ref, rtol=2e-3, atol=2e-3), (loss_f32, ref)
    loss_bf16 = jax.block_until_ready(criterion_all2(preds, target))
    assert jnp.allclose(loss_bf16, ref, rtol=2e-2, atol=2e-2), (loss_bf16, ref)

    # Case B: H % 8 != 0 (padded target rows) and odd channel count.
    preds, target = make_case(kb, 1, 3, 20, 20, 10, 10, 5, 5)
    ref = criterion_all2_reference(preds, target)
    loss = jax.block_until_ready(criterion_all2(preds, target))
    assert jnp.allclose(loss, ref, rtol=2e-2, atol=2e-2), (loss, ref)

    # Case C: batch 1 -> H-tile groups feed the second TensorCore on v7x.
    preds, target = make_case(kc, 1, 4, 256, 256, 128, 128, 64, 64)
    ref = criterion_all2_reference(preds, target)
    loss = jax.block_until_ready(criterion_all2(preds, target))
    assert jnp.allclose(loss, ref, rtol=2e-2, atol=2e-2), (loss, ref)

    print("KERNEL_OK")
</pallas_src>

<mosaic_0001>
module attributes {stable_mosaic.version = 11 : i64} {
  func.func @_criterion_kernel(%arg0: i32, %arg1: i32, %arg2: i32, %arg3: memref<1x640x80xf32, #tpu.memory_space<vmem>>, %arg4: memref<1x384x40xf32, #tpu.memory_space<vmem>>, %arg5: memref<1x32x160xi8, #tpu.memory_space<vmem>>, %arg6: memref<32x80xf32, #tpu.memory_space<vmem>>, %arg7: memref<80x160xf32, #tpu.memory_space<vmem>>, %arg8: memref<32x48xf32, #tpu.memory_space<vmem>>, %arg9: memref<40x160xf32, #tpu.memory_space<vmem>>, %arg10: memref<1x1x160xf32, #tpu.memory_space<vmem>>, %arg11: memref<640x160xf32, #tpu.memory_space<vmem>>, %arg12: memref<384x160xf32, #tpu.memory_space<vmem>>) attributes {dimension_semantics = [#tpu.dimension_semantics<parallel>, #tpu.dimension_semantics<parallel>, #tpu.dimension_semantics<arbitrary>], iteration_bounds = array<i64: 2, 1, 5>, scalar_prefetch = 0 : i64, scratch_operands = 2 : i64, tpu.core_type = #tpu.core_type<tc>, window_params = [{transform_indices = @transform_0, window_bounds = array<i64: 1, 640, 80>}, {transform_indices = @transform_1, window_bounds = array<i64: 1, 384, 40>}, {transform_indices = @transform_2, window_bounds = array<i64: 1, 32, 160>}, {transform_indices = @transform_3, window_bounds = array<i64: 32, 80>}, {pipeline_mode = #tpu.pipeline_mode<synchronous>, transform_indices = @transform_4, window_bounds = array<i64: 80, 160>}, {transform_indices = @transform_5, window_bounds = array<i64: 32, 48>}, {pipeline_mode = #tpu.pipeline_mode<synchronous>, transform_indices = @transform_6, window_bounds = array<i64: 40, 160>}, {transform_indices = @transform_7, window_bounds = array<i64: 1, 1, 160>}]} {
    %c0_i32 = arith.constant 0 : i32
    %0 = arith.cmpi eq, %arg2, %c0_i32 : i32
    %1 = arith.extui %0 : i1 to i32
    %c0_i32_0 = arith.constant 0 : i32
    %2 = arith.cmpi ne, %1, %c0_i32_0 : i32
    scf.if %2 {
      %cst_91 = arith.constant 0.000000e+00 : f32
      %251 = vector.broadcast %cst_91 : f32 to vector<1x1x160xf32>
      %c0_92 = arith.constant 0 : index
      %c0_93 = arith.constant 0 : index
      %c0_94 = arith.constant 0 : index
      %252 = vector.load %arg10[%c0_92, %c0_93, %c0_94] : memref<1x1x160xf32, #tpu.memory_space<vmem>>, vector<1x1x160xf32>
      tpu.vector_store %arg10[%c0_92, %c0_93, %c0_94], %251 {strides = array<i32>} : memref<1x1x160xf32, #tpu.memory_space<vmem>>, vector<1x1x160xf32>,
      %c0_95 = arith.constant 0 : index
      %c0_96 = arith.constant 0 : index
      %c0_97 = arith.constant 0 : index
      %253 = vector.load %arg3[%c0_95, %c0_96, %c0_97] : memref<1x640x80xf32, #tpu.memory_space<vmem>>, vector<1x640x80xf32>
      %254 = vector.shape_cast %253 : vector<1x640x80xf32> to vector<640x80xf32>
      %c0_98 = arith.constant 0 : index
      %c0_99 = arith.constant 0 : index
      %255 = vector.load %arg7[%c0_98, %c0_99] : memref<80x160xf32, #tpu.memory_space<vmem>>, vector<80x160xf32>
      %cst_100 = arith.constant dense<0.000000e+00> : vector<640x160xf32>
      %256 = tpu.matmul %254, %255, %cst_100 {dimension_numbers = #tpu.dot_dimension_numbers<[1], [0], [0], [1], [0, 0, 1, 1], [], []>} : vector<640x80xf32>, vector<80x160xf32>, vector<640x160xf32> -> vector<640x160xf32>
      %c0_101 = arith.constant 0 : index
      %c0_102 = arith.constant 0 : index
      %257 = vector.load %arg11[%c0_101, %c0_102] : memref<640x160xf32, #tpu.memory_space<vmem>>, vector<640x160xf32>
      tpu.vector_store %arg11[%c0_101, %c0_102], %256 {strides = array<i32>} : memref<640x160xf32, #tpu.memory_space<vmem>>, vector<640x160xf32>,
      %c0_103 = arith.constant 0 : index
      %c0_104 = arith.constant 0 : index
      %c0_105 = arith.constant 0 : index
      %258 = vector.load %arg4[%c0_103, %c0_104, %c0_105] : memref<1x384x40xf32, #tpu.memory_space<vmem>>, vector<1x384x40xf32>
      %259 = vector.shape_cast %258 : vector<1x384x40xf32> to vector<384x40xf32>
      %c0_106 = arith.constant 0 : index
      %c0_107 = arith.constant 0 : index
      %260 = vector.load %arg9[%c0_106, %c0_107] : memref<40x160xf32, #tpu.memory_space<vmem>>, vector<40x160xf32>
      %cst_108 = arith.constant dense<0.000000e+00> : vector<384x160xf32>
      %261 = tpu.matmul %259, %260, %cst_108 {dimension_numbers = #tpu.dot_dimension_numbers<[1], [0], [0], [1], [0, 0, 1, 1], [], []>} : vector<384x40xf32>, vector<40x160xf32>, vector<384x160xf32> -> vector<384x160xf32>
      %c0_109 = arith.constant 0 : index
      %c0_110 = arith.constant 0 : index
      %262 = vector.load %arg12[%c0_109, %c0_110] : memref<384x160xf32, #tpu.memory_space<vmem>>, vector<384x160xf32>
      tpu.vector_store %arg12[%c0_109, %c0_110], %261 {strides = array<i32>} : memref<384x160xf32, #tpu.memory_space<vmem>>, vector<384x160xf32>,
    } else {
    }
    %c0 = arith.constant 0 : index
    %c0_1 = arith.constant 0 : index
    %c0_2 = arith.constant 0 : index
    %3 = vector.load %arg5[%c0, %c0_1, %c0_2] : memref<1x32x160xi8, #tpu.memory_space<vmem>>, vector<1x32x160xi8>
    %4 = vector.shape_cast %3 : vector<1x32x160xi8> to vector<32x160xi8>
    %5 = arith.extui %4 : vector<32x160xi8> to vector<32x160xi32>
    %c255_i32 = arith.constant 255 : i32
    %6 = vector.broadcast %c255_i32 : i32 to vector<32x160xi32>
    %7 = arith.cmpi ne, %5, %6 : vector<32x160xi32>
    %c0_3 = arith.constant 0 : index
    %c0_4 = arith.constant 0 : index
    %8 = vector.load %arg6[%c0_3, %c0_4] : memref<32x80xf32, #tpu.memory_space<vmem>>, vector<32x80xf32>
    %c0_5 = arith.constant 0 : index
    %c0_6 = arith.constant 0 : index
    %9 = vector.load %arg8[%c0_5, %c0_6] : memref<32x48xf32, #tpu.memory_space<vmem>>, vector<32x48xf32>
    %cst = arith.constant 0xFF800000 : f32
    %10 = vector.broadcast %cst : f32 to vector<32x160xf32>
    %cst_7 = arith.constant 0.000000e+00 : f32
    %11 = vector.broadcast %cst_7 : f32 to vector<32x160xf32>
    %cst_8 = arith.constant 0.000000e+00 : f32
    %12 = vector.broadcast %cst_8 : f32 to vector<32x160xf32>
    %cst_9 = arith.constant 0xFF800000 : f32
    %13 = vector.broadcast %cst_9 : f32 to vector<32x160xf32>
    %cst_10 = arith.constant 0.000000e+00 : f32
    %14 = vector.broadcast %cst_10 : f32 to vector<32x160xf32>
    %cst_11 = arith.constant 0.000000e+00 : f32
    %15 = vector.broadcast %cst_11 : f32 to vector<32x160xf32>
    %c0_i32_12 = arith.constant 0 : i32
    %c320_i32 = arith.constant 320 : i32
    %16 = arith.muli %c0_i32_12, %c320_i32 : i32
    %c0_i32_13 = arith.constant 0 : i32
    %17 = arith.addi %16, %c0_i32_13 : i32
    %18 = tpu.assume_multiple %17, 16 : i32
    %c192_i32 = arith.constant 192 : i32
    %19 = arith.muli %c0_i32_12, %c192_i32 : i32
    %c0_i32_14 = arith.constant 0 : i32
    %20 = arith.addi %19, %c0_i32_14 : i32
    %21 = tpu.assume_multiple %20, 16 : i32
    %22 = arith.index_cast %18 : i32 to index
    %c0_15 = arith.constant 0 : index
    %23 = vector.load %arg11[%22, %c0_15] : memref<640x160xf32, #tpu.memory_space<vmem>>, vector<80x160xf32>
    %cst_16 = arith.constant dense<0.000000e+00> : vector<32x160xf32>
    %24 = tpu.matmul %8, %23, %cst_16 {dimension_numbers = #tpu.dot_dimension_numbers<[1], [0], [0], [1], [0, 0, 1, 1], [], []>} : vector<32x80xf32>, vector<80x160xf32>, vector<32x160xf32> -> vector<32x160xf32>
    %25 = arith.index_cast %21 : i32 to index
    %c0_17 = arith.constant 0 : index
    %26 = vector.load %arg12[%25, %c0_17] : memref<384x160xf32, #tpu.memory_space<vmem>>, vector<48x160xf32>
    %cst_18 = arith.constant dense<0.000000e+00> : vector<32x160xf32>
    %27 = tpu.matmul %9, %26, %cst_18 {dimension_numbers = #tpu.dot_dimension_numbers<[1], [0], [0], [1], [0, 0, 1, 1], [], []>} : vector<32x48xf32>, vector<48x160xf32>, vector<32x160xf32> -> vector<32x160xf32>
    %c320_i32_19 = arith.constant 320 : i32
    %28 = arith.muli %c0_i32_12, %c320_i32_19 : i32
    %c80_i32 = arith.constant 80 : i32
    %29 = arith.addi %28, %c80_i32 : i32
    %30 = tpu.assume_multiple %29, 16 : i32
    %c192_i32_20 = arith.constant 192 : i32
    %31 = arith.muli %c0_i32_12, %c192_i32_20 : i32
    %c48_i32 = arith.constant 48 : i32
    %32 = arith.addi %31, %c48_i32 : i32
    %33 = tpu.assume_multiple %32, 16 : i32
    %34 = arith.index_cast %30 : i32 to index
    %c0_21 = arith.constant 0 : index
    %35 = vector.load %arg11[%34, %c0_21] : memref<640x160xf32, #tpu.memory_space<vmem>>, vector<80x160xf32>
    %cst_22 = arith.constant dense<0.000000e+00> : vector<32x160xf32>
    %36 = tpu.matmul %8, %35, %cst_22 {dimension_numbers = #tpu.dot_dimension_numbers<[1], [0], [0], [1], [0, 0, 1, 1], [], []>} : vector<32x80xf32>, vector<80x160xf32>, vector<32x160xf32> -> vector<32x160xf32>
    %37 = arith.index_cast %33 : i32 to index
    %c0_23 = arith.constant 0 : index
    %38 = vector.load %arg12[%37, %c0_23] : memref<384x160xf32, #tpu.memory_space<vmem>>, vector<48x160xf32>
    %cst_24 = arith.constant dense<0.000000e+00> : vector<32x160xf32>
    %39 = tpu.matmul %9, %38, %cst_24 {dimension_numbers = #tpu.dot_dimension_numbers<[1], [0], [0], [1], [0, 0, 1, 1], [], []>} : vector<32x48xf32>, vector<48x160xf32>, vector<32x160xf32> -> vector<32x160xf32>
    %c320_i32_25 = arith.constant 320 : i32
    %40 = arith.muli %c0_i32_12, %c320_i32_25 : i32
    %c160_i32 = arith.constant 160 : i32
    %41 = arith.addi %40, %c160_i32 : i32
    %42 = tpu.assume_multiple %41, 16 : i32
    %c192_i32_26 = arith.constant 192 : i32
    %43 = arith.muli %c0_i32_12, %c192_i32_26 : i32
    %c96_i32 = arith.constant 96 : i32
    %44 = arith.addi %43, %c96_i32 : i32
    %45 = tpu.assume_multiple %44, 16 : i32
    %46 = arith.index_cast %42 : i32 to index
    %c0_27 = arith.constant 0 : index
    %47 = vector.load %arg11[%46, %c0_27] : memref<640x160xf32, #tpu.memory_space<vmem>>, vector<80x160xf32>
    %cst_28 = arith.constant dense<0.000000e+00> : vector<32x160xf32>
    %48 = tpu.matmul %8, %47, %cst_28 {dimension_numbers = #tpu.dot_dimension_numbers<[1], [0], [0], [1], [0, 0, 1, 1], [], []>} : vector<32x80xf32>, vector<80x160xf32>, vector<32x160xf32> -> vector<32x160xf32>
    %49 = arith.index_cast %45 : i32 to index
    %c0_29 = arith.constant 0 : index
    %50 = vector.load %arg12[%49, %c0_29] : memref<384x160xf32, #tpu.memory_space<vmem>>, vector<48x160xf32>
    %cst_30 = arith.constant dense<0.000000e+00> : vector<32x160xf32>
    %51 = tpu.matmul %9, %50, %cst_30 {dimension_numbers = #tpu.dot_dimension_numbers<[1], [0], [0], [1], [0, 0, 1, 1], [], []>} : vector<32x48xf32>, vector<48x160xf32>, vector<32x160xf32> -> vector<32x160xf32>
    %c320_i32_31 = arith.constant 320 : i32
    %52 = arith.muli %c0_i32_12, %c320_i32_31 : i32
    %c240_i32 = arith.constant 240 : i32
    %53 = arith.addi %52, %c240_i32 : i32
    %54 = tpu.assume_multiple %53, 16 : i32
    %c192_i32_32 = arith.constant 192 : i32
    %55 = arith.muli %c0_i32_12, %c192_i32_32 : i32
    %c144_i32 = arith.constant 144 : i32
    %56 = arith.addi %55, %c144_i32 : i32
    %57 = tpu.assume_multiple %56, 16 : i32
    %58 = arith.index_cast %54 : i32 to index
    %c0_33 = arith.constant 0 : index
    %59 = vector.load %arg11[%58, %c0_33] : memref<640x160xf32, #tpu.memory_space<vmem>>, vector<80x160xf32>
    %cst_34 = arith.constant dense<0.000000e+00> : vector<32x160xf32>
    %60 = tpu.matmul %8, %59, %cst_34 {dimension_numbers = #tpu.dot_dimension_numbers<[1], [0], [0], [1], [0, 0, 1, 1], [], []>} : vector<32x80xf32>, vector<80x160xf32>, vector<32x160xf32> -> vector<32x160xf32>
    %61 = arith.index_cast %57 : i32 to index
    %c0_35 = arith.constant 0 : index
    %62 = vector.load %arg12[%61, %c0_35] : memref<384x160xf32, #tpu.memory_space<vmem>>, vector<48x160xf32>
    %cst_36 = arith.constant dense<0.000000e+00> : vector<32x160xf32>
    %63 = tpu.matmul %9, %62, %cst_36 {dimension_numbers = #tpu.dot_dimension_numbers<[1], [0], [0], [1], [0, 0, 1, 1], [], []>} : vector<32x48xf32>, vector<48x160xf32>, vector<32x160xf32> -> vector<32x160xf32>
    %64 = arith.maximumf %24, %36 : vector<32x160xf32>
    %65 = arith.maximumf %27, %39 : vector<32x160xf32>
    %66 = arith.maximumf %64, %48 : vector<32x160xf32>
    %67 = arith.maximumf %65, %51 : vector<32x160xf32>
    %68 = arith.maximumf %66, %60 : vector<32x160xf32>
    %69 = arith.maximumf %67, %63 : vector<32x160xf32>
    %70 = arith.maximumf %10, %68 : vector<32x160xf32>
    %71 = arith.maximumf %13, %69 : vector<32x160xf32>
    %72 = arith.subf %10, %70 : vector<32x160xf32>
    %73 = math.exp %72 : vector<32x160xf32>
    %74 = arith.mulf %11, %73 : vector<32x160xf32>
    %75 = arith.subf %13, %71 : vector<32x160xf32>
    %76 = math.exp %75 : vector<32x160xf32>
    %77 = arith.mulf %14, %76 : vector<32x160xf32>
    %78 = arith.subf %24, %70 : vector<32x160xf32>
    %79 = math.exp %78 : vector<32x160xf32>
    %80 = arith.addf %74, %79 : vector<32x160xf32>
    %81 = arith.subf %27, %71 : vector<32x160xf32>
    %82 = math.exp %81 : vector<32x160xf32>
    %83 = arith.addf %77, %82 : vector<32x160xf32>
    %c4_i32 = arith.constant 4 : i32
    %84 = arith.muli %c0_i32_12, %c4_i32 : i32
    %c0_i32_37 = arith.constant 0 : i32
    %85 = arith.addi %84, %c0_i32_37 : i32
    %86 = vector.broadcast %85 : i32 to vector<32x160xi32>
    %87 = arith.cmpi eq, %5, %86 : vector<32x160xi32>
    %88 = arith.select %87, %24, %12 : vector<32x160xi1>, vector<32x160xf32>
    %89 = arith.select %87, %27, %15 : vector<32x160xi1>, vector<32x160xf32>
    %90 = arith.subf %36, %70 : vector<32x160xf32>
    %91 = math.exp %90 : vector<32x160xf32>
    %92 = arith.addf %80, %91 : vector<32x160xf32>
    %93 = arith.subf %39, %71 : vector<32x160xf32>
    %94 = math.exp %93 : vector<32x160xf32>
    %95 = arith.addf %83, %94 : vector<32x160xf32>
    %c4_i32_38 = arith.constant 4 : i32
    %96 = arith.muli %c0_i32_12, %c4_i32_38 : i32
    %c1_i32 = arith.constant 1 : i32
    %97 = arith.addi %96, %c1_i32 : i32
    %98 = vector.broadcast %97 : i32 to vector<32x160xi32>
    %99 = arith.cmpi eq, %5, %98 : vector<32x160xi32>
    %100 = arith.select %99, %36, %88 : vector<32x160xi1>, vector<32x160xf32>
    %101 = arith.select %99, %39, %89 : vector<32x160xi1>, vector<32x160xf32>
    %102 = arith.subf %48, %70 : vector<32x160xf32>
    %103 = math.exp %102 : vector<32x160xf32>
    %104 = arith.addf %92, %103 : vector<32x160xf32>
    %105 = arith.subf %51, %71 : vector<32x160xf32>
    %106 = math.exp %105 : vector<32x160xf32>
    %107 = arith.addf %95, %106 : vector<32x160xf32>
    %c4_i32_39 = arith.constant 4 : i32
    %108 = arith.muli %c0_i32_12, %c4_i32_39 : i32
    %c2_i32 = arith.constant 2 : i32
    %109 = arith.addi %108, %c2_i32 : i32
    %110 = vector.broadcast %109 : i32 to vector<32x160xi32>
    %111 = arith.cmpi eq, %5, %110 : vector<32x160xi32>
    %112 = arith.select %111, %48, %100 : vector<32x160xi1>, vector<32x160xf32>
    %113 = arith.select %111, %51, %101 : vector<32x160xi1>, vector<32x160xf32>
    %114 = arith.subf %60, %70 : vector<32x160xf32>
    %115 = math.exp %114 : vector<32x160xf32>
    %116 = arith.addf %104, %115 : vector<32x160xf32>
    %117 = arith.subf %63, %71 : vector<32x160xf32>
    %118 = math.exp %117 : vector<32x160xf32>
    %119 = arith.addf %107, %118 : vector<32x160xf32>
    %c4_i32_40 = arith.constant 4 : i32
    %120 = arith.muli %c0_i32_12, %c4_i32_40 : i32
    %c3_i32 = arith.constant 3 : i32
    %121 = arith.addi %120, %c3_i32 : i32
    %122 = vector.broadcast %121 : i32 to vector<32x160xi32>
    %123 = arith.cmpi eq, %5, %122 : vector<32x160xi32>
    %124 = arith.select %123, %60, %112 : vector<32x160xi1>, vector<32x160xf32>
    %125 = arith.select %123, %63, %113 : vector<32x160xi1>, vector<32x160xf32>
    %c1_i32_41 = arith.constant 1 : i32
    %c320_i32_42 = arith.constant 320 : i32
    %126 = arith.muli %c1_i32_41, %c320_i32_42 : i32
    %c0_i32_43 = arith.constant 0 : i32
    %127 = arith.addi %126, %c0_i32_43 : i32
    %128 = tpu.assume_multiple %127, 16 : i32
    %c192_i32_44 = arith.constant 192 : i32
    %129 = arith.muli %c1_i32_41, %c192_i32_44 : i32
    %c0_i32_45 = arith.constant 0 : i32
    %130 = arith.addi %129, %c0_i32_45 : i32
    %131 = tpu.assume_multiple %130, 16 : i32
    %132 = arith.index_cast %128 : i32 to index
    %c0_46 = arith.constant 0 : index
    %133 = vector.load %arg11[%132, %c0_46] : memref<640x160xf32, #tpu.memory_space<vmem>>, vector<80x160xf32>
    %cst_47 = arith.constant dense<0.000000e+00> : vector<32x160xf32>
    %134 = tpu.matmul %8, %133, %cst_47 {dimension_numbers = #tpu.dot_dimension_numbers<[1], [0], [0], [1], [0, 0, 1, 1], [], []>} : vector<32x80xf32>, vector<80x160xf32>, vector<32x160xf32> -> vector<32x160xf32>
    %135 = arith.index_cast %131 : i32 to index
    %c0_48 = arith.constant 0 : index
    %136 = vector.load %arg12[%135, %c0_48] : memref<384x160xf32, #tpu.memory_space<vmem>>, vector<48x160xf32>
    %cst_49 = arith.constant dense<0.000000e+00> : vector<32x160xf32>
    %137 = tpu.matmul %9, %136, %cst_49 {dimension_numbers = #tpu.dot_dimension_numbers<[1], [0], [0], [1], [0, 0, 1, 1], [], []>} : vector<32x48xf32>, vector<48x160xf32>, vector<32x160xf32> -> vector<32x160xf32>
    %c320_i32_50 = arith.constant 320 : i32
    %138 = arith.muli %c1_i32_41, %c320_i32_50 : i32
    %c80_i32_51 = arith.constant 80 : i32
    %139 = arith.addi %138, %c80_i32_51 : i32
    %140 = tpu.assume_multiple %139, 16 : i32
    %c192_i32_52 = arith.constant 192 : i32
    %141 = arith.muli %c1_i32_41, %c192_i32_52 : i32
    %c48_i32_53 = arith.constant 48 : i32
    %142 = arith.addi %141, %c48_i32_53 : i32
    %143 = tpu.assume_multiple %142, 16 : i32
    %144 = arith.index_cast %140 : i32 to index
    %c0_54 = arith.constant 0 : index
    %145 = vector.load %arg11[%144, %c0_54] : memref<640x160xf32, #tpu.memory_space<vmem>>, vector<80x160xf32>
    %cst_55 = arith.constant dense<0.000000e+00> : vector<32x160xf32>
    %146 = tpu.matmul %8, %145, %cst_55 {dimension_numbers = #tpu.dot_dimension_numbers<[1], [0], [0], [1], [0, 0, 1, 1], [], []>} : vector<32x80xf32>, vector<80x160xf32>, vector<32x160xf32> -> vector<32x160xf32>
    %147 = arith.index_cast %143 : i32 to index
    %c0_56 = arith.constant 0 : index
    %148 = vector.load %arg12[%147, %c0_56] : memref<384x160xf32, #tpu.memory_space<vmem>>, vector<48x160xf32>
    %cst_57 = arith.constant dense<0.000000e+00> : vector<32x160xf32>
    %149 = tpu.matmul %9, %148, %cst_57 {dimension_numbers = #tpu.dot_dimension_numbers<[1], [0], [0], [1], [0, 0, 1, 1], [], []>} : vector<32x48xf32>, vector<48x160xf32>, vector<32x160xf32> -> vector<32x160xf32>
    %c320_i32_58 = arith.constant 320 : i32
    %150 = arith.muli %c1_i32_41, %c320_i32_58 : i32
    %c160_i32_59 = arith.constant 160 : i32
    %151 = arith.addi %150, %c160_i32_59 : i32
    %152 = tpu.assume_multiple %151, 16 : i32
    %c192_i32_60 = arith.constant 192 : i32
    %153 = arith.muli %c1_i32_41, %c192_i32_60 : i32
    %c96_i32_61 = arith.constant 96 : i32
    %154 = arith.addi %153, %c96_i32_61 : i32
    %155 = tpu.assume_multiple %154, 16 : i32
    %156 = arith.index_cast %152 : i32 to index
    %c0_62 = arith.constant 0 : index
    %157 = vector.load %arg11[%156, %c0_62] : memref<640x160xf32, #tpu.memory_space<vmem>>, vector<80x160xf32>
    %cst_63 = arith.constant dense<0.000000e+00> : vector<32x160xf32>
    %158 = tpu.matmul %8, %157, %cst_63 {dimension_numbers = #tpu.dot_dimension_numbers<[1], [0], [0], [1], [0, 0, 1, 1], [], []>} : vector<32x80xf32>, vector<80x160xf32>, vector<32x160xf32> -> vector<32x160xf32>
    %159 = arith.index_cast %155 : i32 to index
    %c0_64 = arith.constant 0 : index
    %160 = vector.load %arg12[%159, %c0_64] : memref<384x160xf32, #tpu.memory_space<vmem>>, vector<48x160xf32>
    %cst_65 = arith.constant dense<0.000000e+00> : vector<32x160xf32>
    %161 = tpu.matmul %9, %160, %cst_65 {dimension_numbers = #tpu.dot_dimension_numbers<[1], [0], [0], [1], [0, 0, 1, 1], [], []>} : vector<32x48xf32>, vector<48x160xf32>, vector<32x160xf32> -> vector<32x160xf32>
    %c320_i32_66 = arith.constant 320 : i32
    %162 = arith.muli %c1_i32_41, %c320_i32_66 : i32
    %c240_i32_67 = arith.constant 240 : i32
    %163 = arith.addi %162, %c240_i32_67 : i32
    %164 = tpu.assume_multiple %163, 16 : i32
    %c192_i32_68 = arith.constant 192 : i32
    %165 = arith.muli %c1_i32_41, %c192_i32_68 : i32
    %c144_i32_69 = arith.constant 144 : i32
    %166 = arith.addi %165, %c144_i32_69 : i32
    %167 = tpu.assume_multiple %166, 16 : i32
    %168 = arith.index_cast %164 : i32 to index
    %c0_70 = arith.constant 0 : index
    %169 = vector.load %arg11[%168, %c0_70] : memref<640x160xf32, #tpu.memory_space<vmem>>, vector<80x160xf32>
    %cst_71 = arith.constant dense<0.000000e+00> : vector<32x160xf32>
    %170 = tpu.matmul %8, %169, %cst_71 {dimension_numbers = #tpu.dot_dimension_numbers<[1], [0], [0], [1], [0, 0, 1, 1], [], []>} : vector<32x80xf32>, vector<80x160xf32>, vector<32x160xf32> -> vector<32x160xf32>
    %171 = arith.index_cast %167 : i32 to index
    %c0_72 = arith.constant 0 : index
    %172 = vector.load %arg12[%171, %c0_72] : memref<384x160xf32, #tpu.memory_space<vmem>>, vector<48x160xf32>
    %cst_73 = arith.constant dense<0.000000e+00> : vector<32x160xf32>
    %173 = tpu.matmul %9, %172, %cst_73 {dimension_numbers = #tpu.dot_dimension_numbers<[1], [0], [0], [1], [0, 0, 1, 1], [], []>} : vector<32x48xf32>, vector<48x160xf32>, vector<32x160xf32> -> vector<32x160xf32>
    %174 = arith.maximumf %134, %146 : vector<32x160xf32>
    %175 = arith.maximumf %137, %149 : vector<32x160xf32>
    %176 = arith.maximumf %174, %158 : vector<32x160xf32>
    %177 = arith.maximumf %175, %161 : vector<32x160xf32>
    %178 = arith.maximumf %176, %170 : vector<32x160xf32>
    %179 = arith.maximumf %177, %173 : vector<32x160xf32>
    %180 = arith.maximumf %70, %178 : vector<32x160xf32>
    %181 = arith.maximumf %71, %179 : vector<32x160xf32>
    %182 = arith.subf %70, %180 : vector<32x160xf32>
    %183 = math.exp %182 : vector<32x160xf32>
    %184 = arith.mulf %116, %183 : vector<32x160xf32>
    %185 = arith.subf %71, %181 : vector<32x160xf32>
    %186 = math.exp %185 : vector<32x160xf32>
    %187 = arith.mulf %119, %186 : vector<32x160xf32>
    %188 = arith.subf %134, %180 : vector<32x160xf32>
    %189 = math.exp %188 : vector<32x160xf32>
    %190 = arith.addf %184, %189 : vector<32x160xf32>
    %191 = arith.subf %137, %181 : vector<32x160xf32>
    %192 = math.exp %191 : vector<32x160xf32>
    %193 = arith.addf %187, %192 : vector<32x160xf32>
    %c4_i32_74 = arith.constant 4 : i32
    %194 = arith.muli %c1_i32_41, %c4_i32_74 : i32
    %c0_i32_75 = arith.constant 0 : i32
    %195 = arith.addi %194, %c0_i32_75 : i32
    %196 = vector.broadcast %195 : i32 to vector<32x160xi32>
    %197 = arith.cmpi eq, %5, %196 : vector<32x160xi32>
    %198 = arith.select %197, %134, %124 : vector<32x160xi1>, vector<32x160xf32>
    %199 = arith.select %197, %137, %125 : vector<32x160xi1>, vector<32x160xf32>
    %200 = arith.subf %146, %180 : vector<32x160xf32>
    %201 = math.exp %200 : vector<32x160xf32>
    %202 = arith.addf %190, %201 : vector<32x160xf32>
    %203 = arith.subf %149, %181 : vector<32x160xf32>
    %204 = math.exp %203 : vector<32x160xf32>
    %205 = arith.addf %193, %204 : vector<32x160xf32>
    %c4_i32_76 = arith.constant 4 : i32
    %206 = arith.muli %c1_i32_41, %c4_i32_76 : i32
    %c1_i32_77 = arith.constant 1 : i32
    %207 = arith.addi %206, %c1_i32_77 : i32
    %208 = vector.broadcast %207 : i32 to vector<32x160xi32>
    %209 = arith.cmpi eq, %5, %208 : vector<32x160xi32>
    %210 = arith.select %209, %146, %198 : vector<32x160xi1>, vector<32x160xf32>
    %211 = arith.select %209, %149, %199 : vector<32x160xi1>, vector<32x160xf32>
    %212 = arith.subf %158, %180 : vector<32x160xf32>
    %213 = math.exp %212 : vector<32x160xf32>
    %214 = arith.addf %202, %213 : vector<32x160xf32>
    %215 = arith.subf %161, %181 : vector<32x160xf32>
    %216 = math.exp %215 : vector<32x160xf32>
    %217 = arith.addf %205, %216 : vector<32x160xf32>
    %c4_i32_78 = arith.constant 4 : i32
    %218 = arith.muli %c1_i32_41, %c4_i32_78 : i32
    %c2_i32_79 = arith.constant 2 : i32
    %219 = arith.addi %218, %c2_i32_79 : i32
    %220 = vector.broadcast %219 : i32 to vector<32x160xi32>
    %221 = arith.cmpi eq, %5, %220 : vector<32x160xi32>
    %222 = arith.select %221, %158, %210 : vector<32x160xi1>, vector<32x160xf32>
    %223 = arith.select %221, %161, %211 : vector<32x160xi1>, vector<32x160xf32>
    %224 = arith.subf %170, %180 : vector<32x160xf32>
    %225 = math.exp %224 : vector<32x160xf32>
    %226 = arith.addf %214, %225 : vector<32x160xf32>
    %227 = arith.subf %173, %181 : vector<32x160xf32>
    %228 = math.exp %227 : vector<32x160xf32>
    %229 = arith.addf %217, %228 : vector<32x160xf32>
    %c4_i32_80 = arith.constant 4 : i32
    %230 = arith.muli %c1_i32_41, %c4_i32_80 : i32
    %c3_i32_81 = arith.constant 3 : i32
    %231 = arith.addi %230, %c3_i32_81 : i32
    %232 = vector.broadcast %231 : i32 to vector<32x160xi32>
    %233 = arith.cmpi eq, %5, %232 : vector<32x160xi32>
    %234 = arith.select %233, %170, %222 : vector<32x160xi1>, vector<32x160xf32>
    %235 = arith.select %233, %173, %223 : vector<32x160xi1>, vector<32x160xf32>
    %c2_i32_82 = arith.constant 2 : i32
    %236 = math.log %226 : vector<32x160xf32>
    %237 = arith.addf %180, %236 : vector<32x160xf32>
    %238 = math.log %229 : vector<32x160xf32>
    %239 = arith.addf %181, %238 : vector<32x160xf32>
    %240 = arith.subf %237, %234 : vector<32x160xf32>
    %241 = arith.subf %239, %235 : vector<32x160xf32>
    %242 = arith.addf %240, %241 : vector<32x160xf32>
    %cst_83 = arith.constant 0.000000e+00 : f32
    %243 = vector.broadcast %cst_83 : f32 to vector<32x160xf32>
    %244 = arith.select %7, %242, %243 : vector<32x160xi1>, vector<32x160xf32>
    %c0_84 = arith.constant 0 : index
    %c0_85 = arith.constant 0 : index
    %c0_86 = arith.constant 0 : index
    %245 = vector.load %arg10[%c0_84, %c0_85, %c0_86] : memref<1x1x160xf32, #tpu.memory_space<vmem>>, vector<1x1x160xf32>
    %cst_87 = arith.constant dense<0.000000e+00> : vector<160xf32>
    %246 = vector.multi_reduction <add>, %244, %cst_87 [0] : vector<32x160xf32> to vector<160xf32>
    %247 = vector.shape_cast %246 : vector<160xf32> to vector<1x160xf32>
    %248 = vector.shape_cast %247 : vector<1x160xf32> to vector<1x1x160xf32>
    %249 = arith.addf %245, %248 : vector<1x1x160xf32>
    %c0_88 = arith.constant 0 : index
    %c0_89 = arith.constant 0 : index
    %c0_90 = arith.constant 0 : index
    %250 = vector.load %arg10[%c0_88, %c0_89, %c0_90] : memref<1x1x160xf32, #tpu.memory_space<vmem>>, vector<1x1x160xf32>
    tpu.vector_store %arg10[%c0_88, %c0_89, %c0_90], %249 {strides = array<i32>} : memref<1x1x160xf32, #tpu.memory_space<vmem>>, vector<1x1x160xf32>,
    return
  }
  func.func @transform_0(%arg0: i32, %arg1: i32, %arg2: i32) -> (i32, i32, i32) {
    %c0_i32 = arith.constant 0 : i32
    %c0_i32_0 = arith.constant 0 : i32
    %c0_i32_1 = arith.constant 0 : i32
    return %arg0, %c0_i32, %c0_i32_0 : i32, i32, i32
  }
  func.func @transform_1(%arg0: i32, %arg1: i32, %arg2: i32) -> (i32, i32, i32) {
    %c0_i32 = arith.constant 0 : i32
    %c0_i32_0 = arith.constant 0 : i32
    %c0_i32_1 = arith.constant 0 : i32
    return %arg0, %c0_i32, %c0_i32_0 : i32, i32, i32
  }
  func.func @transform_2(%arg0: i32, %arg1: i32, %arg2: i32) -> (i32, i32, i32) {
    %c5_i32 = arith.constant 5 : i32
    %0 = arith.muli %arg1, %c5_i32 : i32
    %1 = arith.addi %0, %arg2 : i32
    %c0_i32 = arith.constant 0 : i32
    %c0_i32_0 = arith.constant 0 : i32
    return %arg0, %1, %c0_i32 : i32, i32, i32
  }
  func.func @transform_3(%arg0: i32, %arg1: i32, %arg2: i32) -> (i32, i32) {
    %c5_i32 = arith.constant 5 : i32
    %0 = arith.muli %arg1, %c5_i32 : i32
    %1 = arith.addi %0, %arg2 : i32
    %c0_i32 = arith.constant 0 : i32
    %c0_i32_0 = arith.constant 0 : i32
    return %1, %c0_i32 : i32, i32
  }
  func.func @transform_4(%arg0: i32, %arg1: i32, %arg2: i32) -> (i32, i32) {
    %c0_i32 = arith.constant 0 : i32
    %c0_i32_0 = arith.constant 0 : i32
    %c0_i32_1 = arith.constant 0 : i32
    return %c0_i32, %c0_i32_0 : i32, i32
  }
  func.func @transform_5(%arg0: i32, %arg1: i32, %arg2: i32) -> (i32, i32) {
    %c5_i32 = arith.constant 5 : i32
    %0 = arith.muli %arg1, %c5_i32 : i32
    %1 = arith.addi %0, %arg2 : i32
    %c0_i32 = arith.constant 0 : i32
    %c0_i32_0 = arith.constant 0 : i32
    return %1, %c0_i32 : i32, i32
  }
  func.func @transform_6(%arg0: i32, %arg1: i32, %arg2: i32) -> (i32, i32) {
    %c0_i32 = arith.constant 0 : i32
    %c0_i32_0 = arith.constant 0 : i32
    %c0_i32_1 = arith.constant 0 : i32
    return %c0_i32, %c0_i32_0 : i32, i32
  }
  func.func @transform_7(%arg0: i32, %arg1: i32, %arg2: i32) -> (i32, i32, i32) {
    %c1_i32 = arith.constant 1 : i32
    %0 = arith.muli %arg0, %c1_i32 : i32
    %1 = arith.addi %0, %arg1 : i32
    %c0_i32 = arith.constant 0 : i32
    %c0_i32_0 = arith.constant 0 : i32
    %c0_i32_1 = arith.constant 0 : i32
    return %1, %c0_i32, %c0_i32_0 : i32, i32, i32
  }
}

</mosaic_0001>

<bundles_post_ra>
// kernel: tpu_custom_call.1
= control target key start
LH: loop header
LB: loop body
LE: loop exit
PB: predicated region body
PF: predicated region fallthrough
CT: control target
= control target key end

     0   :  { %s8852_s0 = inlined_call_operand.vmem [shape: f32[2,640,80], index: 0, kind: input, shape index: {}]   ;;  %s8853_s1 = inlined_call_operand.vmem [shape: f32[2,384,40], index: 1, kind: input, shape index: {}]   ;;  %s8854_s2 = inlined_call_operand.vmem [shape: u8[2,160,160], index: 2, kind: input, shape index: {}]   ;;  %s8855_s3 = inlined_call_operand.vmem [shape: f32[160,80], index: 3, kind: input, shape index: {}]   ;;  %s8856_s4 = inlined_call_operand.vmem [shape: f32[80,160], index: 4, kind: input, shape index: {}]   ;;  %s8857_s5 = inlined_call_operand.vmem [shape: f32[160,48], index: 5, kind: input, shape index: {}]   ;;  %s8858_s6 = inlined_call_operand.vmem [shape: f32[40,160], index: 6, kind: input, shape index: {}]   ;;  %s8859_s7 = inlined_call_operand.hbm [shape: f32[2,1,160], index: 7, kind: output, shape index: {}]  }
   0x1   :  { %9021 = sst [smem:[#allocation108_spill]] %s8859_s7 }
   0x2   :  { %12 = vsyncpa [#allocation5], 0 }
   0x3   :  { %14 = vsyncpa [#allocation5 + $0x1], 0  ;;  %s6247_s24 = smov 0   ;;  %s6249_s25 = smov 0  }
   0x4   :  { %s6251_s26 = smov 0   ;;  %s6253_s27 = smov 0  }
   0x5   :  { %s6255_s28 = smov 0   ;;  %s6257_s29 = smov 0  }
   0x6   :  { %s6259_s30 = smov 0   ;;  %s6261_s8 = smov 0  }
   0x7 LB: > { %9022 = sst [smem:[#allocation7_spill]] %s6173_s24  ;;  %s5166_s9 = sadd.s32 4294967295, %s6201_s8   ;;  %s6201_s8 = sphi %s6261_s8, %s20_s8   ;;  %s6197_s30 = sphi %s6259_s30, %s9379_s30   ;;  %s6193_s29 = sphi %s6257_s29, %s9378_s29   ;;  %s6189_s28 = sphi %s6255_s28, %s9377_s28   ;;  %s6185_s27 = sphi %s6253_s27, %s9376_s27   ;;  %s6181_s26 = sphi %s6251_s26, %s9375_s26   ;;  %s6177_s25 = sphi %s6249_s25, %s9381_s25   ;;  %s6173_s24 = sphi %s6247_s24, %s9380_s24  }
   0x8   : > { %9023 = sst [smem:[#allocation8_spill]] %s6181_s26  ;;  %s5167_s10 = sadd.s32 4294967294, %s6201_s8  }
   0x9   : > { %9024 = sst [smem:[#allocation9_spill]] %s6193_s29  ;;  %s32_s11 = sadd.s32 1, %s6193_s29 }
   0xa   : > { %9025 = sst [smem:[#allocation10_spill]] %s6197_s30  ;;  %p33_p0 = scmp.ge.s32.totalorder %s32_s11, 5 }
   0xb   : > { %9026 = sst [smem:[#allocation11_spill]] %s6201_s8  ;;  %s39_s12 = sadd.s32 1, %s6197_s30 }
   0xc   : > { %p244_p1 = scmp.ne.s32.totalorder %s6181_s26, %s6177_s25  ;;  %p245_p2 = scmp.eq.s32.totalorder %s5166_s9, 9 }
   0xd   : > { %s9383_s11 = smov (%p33_p0, %s32_s11), 0  ;;  %s9385_s12 = smov (!%p33_p0, %s39_s12), %s6197_s30 }
   0xe   : > { %9027 = sst [smem:[#allocation12_spill]] %s9383_s11  ;;  %p6296_p3 = por %p245_p2, %p244_p1 }
   0xf   : > { %p250_p4 = scmp.ne.s32.totalorder %s6177_s25, %s6173_s24  ;;  %p41_p5 = scmp.ge.s32.totalorder %s9385_s12, 2 }
  0x10   : > { %p251_p6 = scmp.eq.s32.totalorder %s5167_s10, 9  ;;  %p5170_p7 = scmp.ge.s32.totalorder %s6201_s8, 1 }
  0x11   : > { %p333_p8 = scmp.lt.s32.totalorder %s6201_s8, 11  ;;  %s9387_s12 = smov (%p41_p5, %s9385_s12), 0 }
  0x12   : > { %9029 = sst [smem:[#allocation13_spill]] %s9387_s12  ;;  %p6306_p9 = por %p251_p6, %p250_p4 }
  0x13   : > { %p334_p10 = pnand %p5170_p7, %p333_p8  ;;  %s231_s15 = ssub.s32 %s6197_s30, %s9387_s12 }
  0x14   : > { %s9030_s14 = scalar_select %p6306_p9, 1, 0 }
  0x15   : > { %s234_s16 = sadd.s32 1, %s6181_s26  ;;  %p232_p11 = scmp.eq.s32.totalorder %s231_s15, 0 }
  0x16   : > { %9031 = sst [smem:[#allocation14_spill]] %s9030_s14  ;;  %337 = sbr.rel (%p334_p10) target bundleno = 1115 (0x45b), region = 48 }
  0x17   : > { %s6314_s17 = scalar_select %p232_p11, %s6181_s26, %s234_s16  }
  0x19   : > { %9032 = sst [smem:[#allocation15_spill]] %s6314_s17 }
  0x1d   : > { %s8863_s18 = sand.u32 1, %s6177_s25   ;;  %p395_p12 = scmp.lt.s32.totalorder %s6189_s28, 1 }
  0x1e   : > { %s5171_s19 = sshll.u32 %s8863_s18, 1  ;;  %p409_p13 = scmp.lt.s32.totalorder %s6185_s27, 4 }
  0x1f   : > { %s396_s20 = scalar_select %p395_p12, %s6189_s28, 1 }
  0x20   : > { %s410_s21 = scalar_select %p409_p13, %s6185_s27, 4 }
  0x21   : > { %s5673_s22 = smul.u32 640, %s396_s20  ;;  %s5176_s23 = sshll.u32 %s6185_s27, 2 }
  0x22   : > { %s5674_s9 = smul.u32 384, %s396_s20  ;;  %s5174_s10 = sshll.u32 %s410_s21, 1 }
  0x23   : > { %s6327_s12 = scalar_lea.vmem %s8852_s0, %s5673_s22  ;;  %s5675_s11 = smul.u32 10, %s396_s20 }
  0x24   : > { %s6332_s17 = scalar_lea.vmem %s8853_s1, %s5674_s9  ;;  %p421_p0 = scmp.lt.s32.totalorder %s5176_s23, 19 }
  0x25   : > { %s413_s18 = sadd.s32 %s5675_s11, %s5174_s10  ;;  %s6349_s30 = scalar_lea.vmem [#allocation4], %s5171_s19 }
  0x26   : > { %s5175_s26 = sshll.u32 %s413_s18, 3  ;;  %s9389_s23 = smov (!%p421_p0, %s5176_s23), 19 }
  0x27   : > { %s6337_s8 = scalar_lea.vmem %s8854_s2, %s5175_s26  ;;  %s5177_s21 = sshll.u32 %s9389_s23, 3 }
  0x28   : > { %s6342_s22 = scalar_lea.vmem %s8855_s3, %s5177_s21  ;;  %s6347_s29 = scalar_lea.vmem %s8857_s5, %s5177_s21 }
  0x29   : > { %p5180_p1 = scmp.ne.s32.totalorder %s6185_s27, 0 }
  0x2a   : > { %v443_v0 = vlaneseq (!%p5180_p1)  ;;  %v529_v1 = vld [vmem:[%s8856_s4 + $0x8] sm:$0xff] (!%p5180_p1)  ;;  %v531_v2 = vld [vmem:[%s8856_s4 + $0x18] sm:$0xff] (!%p5180_p1)  ;;  %v528_v3 = vld [vmem:[%s8856_s4] sm:$0xff] (!%p5180_p1)  ;;  %v6203_v8 = vmov (!%p5180_p1), 0.0   ;;  %vm548_vm1 = vcmask (!%p5180_p1), 654336   ;;  %vm1553_vm2 = vcmask (!%p5180_p1), 326656  }
  0x2b   : > { %442 = sbr.rel (%p5180_p1) target bundleno = 531 (0x213), region = 52  ;;  %v5379_v4 = vpack.c.bf16 (!%p5180_p1), %v531_v2, %v529_v1  ;;  %v530_v5 = vld [vmem:[%s8856_s4 + $0x10] sm:$0xff] (!%p5180_p1)  ;;  %v533_v6 = vld [vmem:[%s8856_s4 + $0x28] sm:$0xff] (!%p5180_p1)  ;;  %v535_v7 = vld [vmem:[%s8856_s4 + $0x38] sm:$0xff] (!%p5180_p1)  ;;  %853 = vmatprep.mubr.f32.mxu0 (!%p5180_p1), %v6203_v8  ;;  %1237 = vmatprep.mubr.f32.mxu1 (!%p5180_p1), %v6203_v8  ;;  %vm1335_vm3 = vcmask (!%p5180_p1), 261120  }
  0x2c   : > { %vm445_vm0 = vcmp.lt.s32.totalorder (!%p5180_p1), %v443_v0, 160  ;;  %v5381_v9 = vpack.c.bf16 (!%p5180_p1), %v530_v5, %v528_v3  ;;  %v5383_v10 = vpack.c.bf16 (!%p5180_p1), %v535_v7, %v533_v6  ;;  %v532_v11 = vld [vmem:[%s8856_s4 + $0x20] sm:$0xff] (!%p5180_p1)  ;;  %v534_v12 = vld [vmem:[%s8856_s4 + $0x30] sm:$0xff] (!%p5180_p1)  ;;  %v537_v13 = vld [vmem:[%s8856_s4 + $0x48] sm:$0xff] (!%p5180_p1) }
  0x2d   : > { %5380 = vmatprep.subr.bf16.mxu0 (!%p5180_p1), %v5379_v4  ;;  %5663 = vmatprep.subr.bf16.mxu1 (!%p5180_p1), %v5379_v4  ;;  %v539_v14 = vld [vmem:[%s8856_s4 + $0x58] sm:$0xff] (!%p5180_p1)  ;;  %447 = vst.msk [vmem:[%s6349_s30] sm:$0x3] (!%p5180_p1), %vm445_vm0, %v6203_v8  ;;  %v5385_v15 = vpack.c.bf16 (!%p5180_p1), %v534_v12, %v532_v11  ;;  %v536_v17 = vld [vmem:[%s8856_s4 + $0x40] sm:$0xff] (!%p5180_p1)  ;;  %v538_v18 = vld [vmem:[%s8856_s4 + $0x50] sm:$0xff] (!%p5180_p1) }
  0x2e   : > { %5382 = vmatpush1.bf16.msra.mxu0 (!%p5180_p1), %v5381_v9  ;;  %5668 = vmatpush1.bf16.msra.mxu1 (!%p5180_p1), %v5381_v9  ;;  %v5387_v16 = vpack.c.bf16 (!%p5180_p1), %v539_v14, %v537_v13  ;;  %v541_v19 = vld [vmem:[%s8856_s4 + $0x68] sm:$0xff] (!%p5180_p1)  ;;  %v543_v20 = vld [vmem:[%s8856_s4 + $0x78] sm:$0xff] (!%p5180_p1)  ;;  %v5389_v21 = vpack.c.bf16 (!%p5180_p1), %v538_v18, %v536_v17  ;;  %v540_v23 = vld [vmem:[%s8856_s4 + $0x60] sm:$0xff] (!%p5180_p1) }
  0x2f   : > { %5384 = vmatprep.subr.bf16.mxu0 (!%p5180_p1), %v5383_v10  ;;  %5664 = vmatprep.subr.bf16.mxu1 (!%p5180_p1), %v5383_v10  ;;  %v5391_v22 = vpack.c.bf16 (!%p5180_p1), %v543_v20, %v541_v19  ;;  %v542_v24 = vld [vmem:[%s8856_s4 + $0x70] sm:$0xff] (!%p5180_p1)  ;;  %v545_v25 = vld [vmem:[%s8856_s4 + $0x88] sm:$0xff] (!%p5180_p1)  ;;  %v547_v26 = vld [vmem:[%s8856_s4 + $0x98] sm:$0xff] (!%p5180_p1) }
  0x30   : > { %v5393_v27 = vpack.c.bf16 (!%p5180_p1), %v542_v24, %v540_v23  ;;  %v5395_v28 = vpack.c.bf16 (!%p5180_p1), %v547_v26, %v545_v25  ;;  %v544_v29 = vld [vmem:[%s8856_s4 + $0x80] sm:$0xff] (!%p5180_p1)  ;;  %v546_v30 = vld [vmem:[%s8856_s4 + $0x90] sm:$0xff] (!%p5180_p1)  ;;  %v1544_v31 = vld [vmem:[%s8858_s6 + $0x8] sm:$0xff] (!%p5180_p1) }
  0x31   : > { %v1546_v32 = vld [vmem:[%s8858_s6 + $0x18] sm:$0xff] (!%p5180_p1)  ;;  %v5397_v33 = vpack.c.bf16 (!%p5180_p1), %v546_v30, %v544_v29  ;;  %v1543_v35 = vld [vmem:[%s8858_s6] sm:$0xff] (!%p5180_p1)  ;;  %v1545_v36 = vld [vmem:[%s8858_s6 + $0x10] sm:$0xff] (!%p5180_p1) }
  0x32   : > { %5386 = vmatpush1.bf16.msra.mxu0 %v5385_v15  ;;  %5669 = vmatpush1.bf16.msra.mxu1 %v5385_v15  ;;  %v5399_v34 = vpack.c.bf16 %v1546_v32, %v1544_v31  ;;  %v1548_v37 = vld [vmem:[%s8858_s6 + $0x28] sm:$0xff]  ;;  %v1550_v38 = vld [vmem:[%s8858_s6 + $0x38] sm:$0xff]  ;;  %v448_v39 = vld [vmem:[%s6327_s12] sm:$0xff]  ;;  %v5401_v41 = vpack.c.bf16 %v1545_v36, %v1543_v35 }
  0x33   : > { %5388 = vmatprep.subr.bf16.mxu0 %v5387_v16  ;;  %5665 = vmatprep.subr.bf16.mxu1 %v5387_v16  ;;  %v512_v40 = vld [vmem:[%s6327_s12 + $0x200] sm:$0xff]  ;;  %v5403_v42 = vpack.c.bf16 %v1550_v38, %v1548_v37  ;;  %v1549_v44 = vld [vmem:[%s8858_s6 + $0x30] sm:$0xff]  ;;  %v449_v45 = vld [vmem:[%s6327_s12 + $0x8] sm:$0xff] }
  0x34   : > { %v1547_v43 = vld [vmem:[%s8858_s6 + $0x20] sm:$0xff]  ;;  %v513_v46 = vld [vmem:[%s6327_s12 + $0x208] sm:$0xff]  ;;  %v450_v49 = vld [vmem:[%s6327_s12 + $0x10] sm:$0xff] }
  0x35   : > { %v5405_v47 = vpack.c.bf16 %v1549_v44, %v1547_v43  ;;  %v1552_v48 = vld [vmem:[%s8858_s6 + $0x48] sm:$0xff]  ;;  %v514_v50 = vld [vmem:[%s6327_s12 + $0x210] sm:$0xff]  ;;  %v1551_v51 = vld [vmem:[%s8858_s6 + $0x40] sm:$0xff] }
  0x36   : > { %5390 = vmatpush1.bf16.msra.mxu0 %v5389_v21  ;;  %5670 = vmatpush1.bf16.msra.mxu1 %v5389_v21  ;;  %v451_v52 = vld [vmem:[%s6327_s12 + $0x18] sm:$0xff]  ;;  %v452_v54 = vld [vmem:[%s6327_s12 + $0x20] sm:$0xff]  ;;  %v453_v56 = vld [vmem:[%s6327_s12 + $0x28] sm:$0xff] }
  0x37   : > { %5392 = vmatprep.subr.bf16.mxu0 %v5391_v22  ;;  %5666 = vmatprep.subr.bf16.mxu1 %v5391_v22  ;;  %v515_v53 = vld [vmem:[%s6327_s12 + $0x218] sm:$0xff]  ;;  %v516_v55 = vld [vmem:[%s6327_s12 + $0x220] sm:$0xff]  ;;  %v517_v57 = vld [vmem:[%s6327_s12 + $0x228] sm:$0xff] }
  0x38   : > { %v454_v58 = vld [vmem:[%s6327_s12 + $0x30] sm:$0xff]  ;;  %v455_v60 = vld [vmem:[%s6327_s12 + $0x38] sm:$0xff]  ;;  %v456_v62 = vld [vmem:[%s6327_s12 + $0x40] sm:$0xff] }
  0x39   : > { %v518_v59 = vld [vmem:[%s6327_s12 + $0x230] sm:$0xff]  ;;  %v519_v61 = vld [vmem:[%s6327_s12 + $0x238] sm:$0xff]  ;;  %v520_v63 = vld [vmem:[%s6327_s12 + $0x240] sm:$0xff] }
  0x3a   : > { %5394 = vmatpush1.bf16.msra.mxu0 %v5393_v27  ;;  %5671 = vmatpush1.bf16.msra.mxu1 %v5393_v27  ;;  %v457_v0 = vld [vmem:[%s6327_s12 + $0x48] sm:$0xff]  ;;  %v458_v2 = vld [vmem:[%s6327_s12 + $0x50] sm:$0xff]  ;;  %v459_v4 = vld [vmem:[%s6327_s12 + $0x58] sm:$0xff] }
  0x3b   : > { %5396 = vmatprep.subr.bf16.mxu0 %v5395_v28  ;;  %5667 = vmatprep.subr.bf16.mxu1 %v5395_v28  ;;  %v521_v1 = vld [vmem:[%s6327_s12 + $0x248] sm:$0xff]  ;;  %v522_v3 = vld [vmem:[%s6327_s12 + $0x250] sm:$0xff]  ;;  %v523_v5 = vld [vmem:[%s6327_s12 + $0x258] sm:$0xff] }
  0x3c   : > { %v460_v6 = vld [vmem:[%s6327_s12 + $0x60] sm:$0xff]  ;;  %v461_v9 = vld [vmem:[%s6327_s12 + $0x68] sm:$0xff]  ;;  %v462_v11 = vld [vmem:[%s6327_s12 + $0x70] sm:$0xff] }
  0x3d   : > { %v524_v7 = vld [vmem:[%s6327_s12 + $0x260] sm:$0xff]  ;;  %v525_v10 = vld [vmem:[%s6327_s12 + $0x268] sm:$0xff]  ;;  %v526_v12 = vld [vmem:[%s6327_s12 + $0x270] sm:$0xff] }
  0x3e   : > { %5398 = vmatpush1.bf16.msra.mxu0 %v5397_v33  ;;  %5672 = vmatpush1.bf16.msra.mxu1 %v5397_v33  ;;  %v463_v13 = vld [vmem:[%s6327_s12 + $0x78] sm:$0xff]  ;;  %v464_v15 = vld [vmem:[%s6327_s12 + $0x80] sm:$0xff]  ;;  %v465_v17 = vld [vmem:[%s6327_s12 + $0x88] sm:$0xff] }
  0x3f   : > { %5400 = vmatprep.subr.bf16.mxu1 %v5399_v34  ;;  %v527_v14 = vld [vmem:[%s6327_s12 + $0x278] sm:$0xff]  ;;  %v1495_v16 = vld [vmem:[%s6332_s17] sm:$0xff]  ;;  %v1496_v18 = vld [vmem:[%s6332_s17 + $0x8] sm:$0xff] }
  0x40   : > { %v466_v19 = vld [vmem:[%s6327_s12 + $0x90] sm:$0xff]  ;;  %v467_v21 = vld [vmem:[%s6327_s12 + $0x98] sm:$0xff]  ;;  %v468_v23 = vld [vmem:[%s6327_s12 + $0xa0] sm:$0xff] }
  0x41   : > { %5181 = vmatmul.mubr.msk.f32.vlgmr.msra.gmra.mrb[0].mxu0 %vm548_vm1, %v448_v39  ;;  %5245 = vmatmul.mubr.msk.f32.vlgmr.msra.gmra.mrb[0].mxu1 %vm548_vm1, %v512_v40  ;;  %v1497_v20 = vld [vmem:[%s6332_s17 + $0x10] sm:$0xff]  ;;  %v1498_v22 = vld [vmem:[%s6332_s17 + $0x18] sm:$0xff]  ;;  %v1499_v24 = vld [vmem:[%s6332_s17 + $0x20] sm:$0xff] }
  0x42   : > { %5402 = vmatpush1.bf16.msra.mxu1 %v5401_v41  ;;  %859 = vmatprep.mubr.f32.mxu0 %v6203_v8  ;;  %v469_v25 = vld [vmem:[%s6327_s12 + $0xa8] sm:$0xff]  ;;  %v470_v27 = vld [vmem:[%s6327_s12 + $0xb0] sm:$0xff]  ;;  %v471_v29 = vld [vmem:[%s6327_s12 + $0xb8] sm:$0xff] }
  0x43   : > { %1243 = vmatprep.mubr.f32.mxu1 %v6203_v8  ;;  %5404 = vmatprep.subr.bf16.mxu1 %v5403_v42  ;;  %v1500_v26 = vld [vmem:[%s6332_s17 + $0x28] sm:$0xff]  ;;  %v1501_v28 = vld [vmem:[%s6332_s17 + $0x30] sm:$0xff]  ;;  %v1502_v30 = vld [vmem:[%s6332_s17 + $0x38] sm:$0xff] }
  0x44   : > { %v472_v31 = vld [vmem:[%s6327_s12 + $0xc0] sm:$0xff]  ;;  %v473_v33 = vld [vmem:[%s6327_s12 + $0xc8] sm:$0xff]  ;;  %v474_v35 = vld [vmem:[%s6327_s12 + $0xd0] sm:$0xff] }
  0x45   : > { %5182 = vmatmul.mubr.msk.f32.gmra.mrb[2].mxu0 %vm548_vm1, %v449_v45  ;;  %5246 = vmatmul.mubr.msk.f32.gmra.mrb[2].mxu1 %vm548_vm1, %v513_v46  ;;  %v1503_v32 = vld [vmem:[%s6332_s17 + $0x40] sm:$0xff]  ;;  %v1504_v34 = vld [vmem:[%s6332_s17 + $0x48] sm:$0xff]  ;;  %v1505_v36 = vld [vmem:[%s6332_s17 + $0x50] sm:$0xff] }
  0x46   : > { %865 = vmatprep.mubr.f32.mxu0 %v6203_v8  ;;  %1249 = vmatprep.mubr.f32.mxu1 %v6203_v8  ;;  %v475_v37 = vld [vmem:[%s6327_s12 + $0xd8] sm:$0xff]  ;;  %v476_v39 = vld [vmem:[%s6327_s12 + $0xe0] sm:$0xff]  ;;  %v477_v41 = vld [vmem:[%s6327_s12 + $0xe8] sm:$0xff] }
  0x47   : > { %5406 = vmatpush1.bf16.msra.mxu1 %v5405_v47  ;;  %v1506_v38 = vld [vmem:[%s6332_s17 + $0x58] sm:$0xff]  ;;  %v1507_v40 = vld [vmem:[%s6332_s17 + $0x60] sm:$0xff]  ;;  %v1508_v42 = vld [vmem:[%s6332_s17 + $0x68] sm:$0xff] }
  0x48   : > { %1706 = vmatprep.subr.mxu1 %v1552_v48  ;;  %v478_v43 = vld [vmem:[%s6327_s12 + $0xf0] sm:$0xff]  ;;  %v479_v45 = vld [vmem:[%s6327_s12 + $0xf8] sm:$0xff]  ;;  %v480_v47 = vld [vmem:[%s6327_s12 + $0x100] sm:$0xff] }
  0x49   : > { %5183 = vmatmul.mubr.msk.f32.gmra.mrb[4].mxu0 %vm548_vm1, %v450_v49  ;;  %5247 = vmatmul.mubr.msk.f32.gmra.mrb[4].mxu1 %vm548_vm1, %v514_v50  ;;  %v1509_v44 = vld [vmem:[%s6332_s17 + $0x70] sm:$0xff]  ;;  %v1510_v46 = vld [vmem:[%s6332_s17 + $0x78] sm:$0xff]  ;;  %v1511_v48 = vld [vmem:[%s6332_s17 + $0x80] sm:$0xff] }
  0x4a   : > { %871 = vmatprep.mubr.f32.mxu0 %v6203_v8  ;;  %1255 = vmatprep.mubr.f32.mxu1 %v6203_v8  ;;  %v481_v49 = vld [vmem:[%s6327_s12 + $0x108] sm:$0xff] }
  0x4b   : > { %1707 = vmatpush1.msra.mxu1 %v1551_v51  ;;  %v1512_v50 = vld [vmem:[%s6332_s17 + $0x88] sm:$0xff]  ;;  %v482_v51 = vld [vmem:[%s6327_s12 + $0x110] sm:$0xff] }
  0x4d   : > { %5184 = vmatmul.mubr.msk.f32.gmra.mrb[6].mxu0 %vm548_vm1, %v451_v52  ;;  %5248 = vmatmul.mubr.msk.f32.gmra.mrb[6].mxu1 %vm548_vm1, %v515_v53  ;;  %v1513_v52 = vld [vmem:[%s6332_s17 + $0x90] sm:$0xff]  ;;  %v483_v53 = vld [vmem:[%s6327_s12 + $0x118] sm:$0xff] }
  0x4e   : > { %877 = vmatprep.mubr.f32.mxu0 %v6203_v8  ;;  %1261 = vmatprep.mubr.f32.mxu1 %v6203_v8 }
  0x51   : > { %5185 = vmatmul.mubr.msk.f32.gmra.mrb[8].mxu0 %vm548_vm1, %v452_v54  ;;  %5249 = vmatmul.mubr.msk.f32.gmra.mrb[8].mxu1 %vm548_vm1, %v516_v55  ;;  %v1514_v54 = vld [vmem:[%s6332_s17 + $0x98] sm:$0xff]  ;;  %v484_v55 = vld [vmem:[%s6327_s12 + $0x120] sm:$0xff] }
  0x52   : > { %883 = vmatprep.mubr.f32.mxu0 %v6203_v8  ;;  %1267 = vmatprep.mubr.f32.mxu1 %v6203_v8 }
  0x55   : > { %5186 = vmatmul.mubr.msk.f32.gmra.mrb[10].mxu0 %vm548_vm1, %v453_v56  ;;  %5250 = vmatmul.mubr.msk.f32.gmra.mrb[10].mxu1 %vm548_vm1, %v517_v57  ;;  %v1515_v56 = vld [vmem:[%s6332_s17 + $0xa0] sm:$0xff]  ;;  %v485_v57 = vld [vmem:[%s6327_s12 + $0x128] sm:$0xff] }
  0x56   : > { %889 = vmatprep.mubr.f32.mxu0 %v6203_v8  ;;  %1273 = vmatprep.mubr.f32.mxu1 %v6203_v8 }
  0x59   : > { %5187 = vmatmul.mubr.msk.f32.gmra.mrb[12].mxu0 %vm548_vm1, %v454_v58  ;;  %5251 = vmatmul.mubr.msk.f32.gmra.mrb[12].mxu1 %vm548_vm1, %v518_v59  ;;  %v1516_v58 = vld [vmem:[%s6332_s17 + $0xa8] sm:$0xff]  ;;  %v486_v59 = vld [vmem:[%s6327_s12 + $0x130] sm:$0xff] }
  0x5a   : > { %895 = vmatprep.mubr.f32.mxu0 %v6203_v8  ;;  %1279 = vmatprep.mubr.f32.mxu1 %v6203_v8 }
  0x5d   : > { %5188 = vmatmul.mubr.msk.f32.gmra.mrb[14].mxu0 %vm548_vm1, %v455_v60  ;;  %5252 = vmatmul.mubr.msk.f32.gmra.mrb[14].mxu1 %vm548_vm1, %v519_v61  ;;  %v1517_v60 = vld [vmem:[%s6332_s17 + $0xb0] sm:$0xff]  ;;  %v487_v61 = vld [vmem:[%s6327_s12 + $0x138] sm:$0xff] }
  0x5e   : > { %901 = vmatprep.mubr.f32.mxu0 %v6203_v8  ;;  %1285 = vmatprep.mubr.f32.mxu1 %v6203_v8 }
  0x61   : > { %5189 = vmatmul.mubr.msk.f32.gmra.mrb[16].mxu0 %vm548_vm1, %v456_v62  ;;  %5253 = vmatmul.mubr.msk.f32.gmra.mrb[16].mxu1 %vm548_vm1, %v520_v63  ;;  %v1518_v62 = vld [vmem:[%s6332_s17 + $0xb8] sm:$0xff]  ;;  %v488_v63 = vld [vmem:[%s6327_s12 + $0x140] sm:$0xff] }
  0x62   : > { %907 = vmatprep.mubr.f32.mxu0 %v6203_v8  ;;  %1291 = vmatprep.mubr.f32.mxu1 %v6203_v8 }
  0x65   : > { %5190 = vmatmul.mubr.msk.f32.gmra.mrb[18].mxu0 %vm548_vm1, %v457_v0  ;;  %5254 = vmatmul.mubr.msk.f32.gmra.mrb[18].mxu1 %vm548_vm1, %v521_v1  ;;  %v1519_v0 = vld [vmem:[%s6332_s17 + $0xc0] sm:$0xff]  ;;  %v489_v1 = vld [vmem:[%s6327_s12 + $0x148] sm:$0xff] }
  0x66   : > { %913 = vmatprep.mubr.f32.mxu0 %v6203_v8  ;;  %1297 = vmatprep.mubr.f32.mxu1 %v6203_v8 }
  0x69   : > { %5191 = vmatmul.mubr.msk.f32.gmra.mrb[20].mxu0 %vm548_vm1, %v458_v2  ;;  %5255 = vmatmul.mubr.msk.f32.gmra.mrb[20].mxu1 %vm548_vm1, %v522_v3  ;;  %v1520_v2 = vld [vmem:[%s6332_s17 + $0xc8] sm:$0xff]  ;;  %v490_v3 = vld [vmem:[%s6327_s12 + $0x150] sm:$0xff] }
  0x6a   : > { %919 = vmatprep.mubr.f32.mxu0 %v6203_v8  ;;  %1303 = vmatprep.mubr.f32.mxu1 %v6203_v8 }
  0x6d   : > { %5192 = vmatmul.mubr.msk.f32.gmra.mrb[22].mxu0 %vm548_vm1, %v459_v4  ;;  %5256 = vmatmul.mubr.msk.f32.gmra.mrb[22].mxu1 %vm548_vm1, %v523_v5  ;;  %v1521_v4 = vld [vmem:[%s6332_s17 + $0xd0] sm:$0xff]  ;;  %v491_v5 = vld [vmem:[%s6327_s12 + $0x158] sm:$0xff] }
  0x6e   : > { %925 = vmatprep.mubr.f32.mxu0 %v6203_v8  ;;  %1309 = vmatprep.mubr.f32.mxu1 %v6203_v8 }
  0x71   : > { %5193 = vmatmul.mubr.msk.f32.gmra.mrb[24].mxu0 %vm548_vm1, %v460_v6  ;;  %5257 = vmatmul.mubr.msk.f32.gmra.mrb[24].mxu1 %vm548_vm1, %v524_v7  ;;  %v1522_v6 = vld [vmem:[%s6332_s17 + $0xd8] sm:$0xff]  ;;  %v492_v7 = vld [vmem:[%s6327_s12 + $0x160] sm:$0xff] }
  0x72   : > { %931 = vmatprep.mubr.f32.mxu0 %v6203_v8  ;;  %1315 = vmatprep.mubr.f32.mxu1 %v6203_v8 }
  0x75   : > { %5194 = vmatmul.mubr.msk.f32.gmra.mrb[26].mxu0 %vm548_vm1, %v461_v9  ;;  %5258 = vmatmul.mubr.msk.f32.gmra.mrb[26].mxu1 %vm548_vm1, %v525_v10  ;;  %v1523_v9 = vld [vmem:[%s6332_s17 + $0xe0] sm:$0xff]  ;;  %v493_v10 = vld [vmem:[%s6327_s12 + $0x168] sm:$0xff] }
  0x76   : > { %937 = vmatprep.mubr.f32.mxu0 %v6203_v8  ;;  %1321 = vmatprep.mubr.f32.mxu1 %v6203_v8 }
  0x79   : > { %5195 = vmatmul.mubr.msk.f32.gmra.mrb[28].mxu0 %vm548_vm1, %v462_v11  ;;  %5259 = vmatmul.mubr.msk.f32.gmra.mrb[28].mxu1 %vm548_vm1, %v526_v12  ;;  %v1524_v11 = vld [vmem:[%s6332_s17 + $0xe8] sm:$0xff]  ;;  %v494_v12 = vld [vmem:[%s6327_s12 + $0x170] sm:$0xff] }
  0x7a   : > { %943 = vmatprep.mubr.f32.mxu0 %v6203_v8  ;;  %1327 = vmatprep.mubr.f32.mxu1 %v6203_v8 }
  0x7d   : > { %5196 = vmatmul.mubr.msk.f32.gmra.mrb[30].mxu0 %vm548_vm1, %v463_v13  ;;  %5260 = vmatmul.mubr.msk.f32.gmra.mrb[30].mxu1 %vm548_vm1, %v527_v14  ;;  %v1525_v13 = vld [vmem:[%s6332_s17 + $0xf0] sm:$0xff]  ;;  %v495_v14 = vld [vmem:[%s6327_s12 + $0x178] sm:$0xff] }
  0x7e   : > { %949 = vmatprep.mubr.f32.mxu0 %v6203_v8  ;;  %1762 = vmatprep.mubr.f32.mxu1 %v6203_v8 }
  0x81   : > { %5197 = vmatmul.mubr.msk.f32.gmra.mrb[32].mxu0 %vm548_vm1, %v464_v15  ;;  %5261 = vmatmul.mubr.msk.f32.vlgmr.msra.gmra.mrb[32].mxu1 %vm1553_vm2, %v1495_v16  ;;  %v1526_v15 = vld [vmem:[%s6332_s17 + $0xf8] sm:$0xff]  ;;  %v496_v16 = vld [vmem:[%s6327_s12 + $0x180] sm:$0xff] }
  0x82   : > { %955 = vmatprep.mubr.f32.mxu0 %v6203_v8  ;;  %1768 = vmatprep.mubr.f32.mxu1 %v6203_v8 }
  0x85   : > { %5198 = vmatmul.mubr.msk.f32.gmra.mrb[34].mxu0 %vm548_vm1, %v465_v17  ;;  %5262 = vmatmul.mubr.msk.f32.gmra.mrb[34].mxu1 %vm1553_vm2, %v1496_v18  ;;  %v1527_v17 = vld [vmem:[%s6332_s17 + $0x100] sm:$0xff]  ;;  %v497_v18 = vld [vmem:[%s6327_s12 + $0x188] sm:$0xff] }
  0x86   : > { %961 = vmatprep.mubr.f32.mxu0 %v6203_v8  ;;  %1774 = vmatprep.mubr.f32.mxu1 %v6203_v8 }
  0x89   : > { %5199 = vmatmul.mubr.msk.f32.gmra.mrb[36].mxu0 %vm548_vm1, %v466_v19  ;;  %5263 = vmatmul.mubr.msk.f32.gmra.mrb[36].mxu1 %vm1553_vm2, %v1497_v20  ;;  %v1528_v19 = vld [vmem:[%s6332_s17 + $0x108] sm:$0xff]  ;;  %v498_v20 = vld [vmem:[%s6327_s12 + $0x190] sm:$0xff] }
  0x8a   : > { %967 = vmatprep.mubr.f32.mxu0 %v6203_v8  ;;  %1780 = vmatprep.mubr.f32.mxu1 %v6203_v8 }
  0x8d   : > { %5200 = vmatmul.mubr.msk.f32.gmra.mrb[38].mxu0 %vm548_vm1, %v467_v21  ;;  %5264 = vmatmul.mubr.msk.f32.gmra.mrb[38].mxu1 %vm1553_vm2, %v1498_v22  ;;  %v1529_v21 = vld [vmem:[%s6332_s17 + $0x110] sm:$0xff]  ;;  %v499_v22 = vld [vmem:[%s6327_s12 + $0x198] sm:$0xff] }
  0x8e   : > { %973 = vmatprep.mubr.f32.mxu0 %v6203_v8  ;;  %1786 = vmatprep.mubr.f32.mxu1 %v6203_v8 }
  0x91   : > { %5201 = vmatmul.mubr.msk.f32.gmra.mrb[40].mxu0 %vm548_vm1, %v468_v23  ;;  %5265 = vmatmul.mubr.msk.f32.gmra.mrb[40].mxu1 %vm1553_vm2, %v1499_v24  ;;  %v1530_v23 = vld [vmem:[%s6332_s17 + $0x118] sm:$0xff]  ;;  %v500_v24 = vld [vmem:[%s6327_s12 + $0x1a0] sm:$0xff] }
  0x92   : > { %979 = vmatprep.mubr.f32.mxu0 %v6203_v8  ;;  %1792 = vmatprep.mubr.f32.mxu1 %v6203_v8 }
  0x95   : > { %5202 = vmatmul.mubr.msk.f32.gmra.mrb[42].mxu0 %vm548_vm1, %v469_v25  ;;  %5266 = vmatmul.mubr.msk.f32.gmra.mrb[42].mxu1 %vm1553_vm2, %v1500_v26  ;;  %v1531_v25 = vld [vmem:[%s6332_s17 + $0x120] sm:$0xff]  ;;  %v501_v26 = vld [vmem:[%s6327_s12 + $0x1a8] sm:$0xff] }
  0x96   : > { %985 = vmatprep.mubr.f32.mxu0 %v6203_v8  ;;  %1798 = vmatprep.mubr.f32.mxu1 %v6203_v8 }
  0x99   : > { %5203 = vmatmul.mubr.msk.f32.gmra.mrb[44].mxu0 %vm548_vm1, %v470_v27  ;;  %5267 = vmatmul.mubr.msk.f32.gmra.mrb[44].mxu1 %vm1553_vm2, %v1501_v28  ;;  %v1532_v27 = vld [vmem:[%s6332_s17 + $0x128] sm:$0xff] }
  0x9a   : > { %991 = vmatprep.mubr.f32.mxu0 %v6203_v8  ;;  %1804 = vmatprep.mubr.f32.mxu1 %v6203_v8 }
  0x9d   : > { %5204 = vmatmul.mubr.msk.f32.gmra.mrb[46].mxu0 %vm548_vm1, %v471_v29  ;;  %5268 = vmatmul.mubr.msk.f32.gmra.mrb[46].mxu1 %vm1553_vm2, %v1502_v30 }
  0x9e   : > { %997 = vmatprep.mubr.f32.mxu0 %v6203_v8  ;;  %1810 = vmatprep.mubr.f32.mxu1 %v6203_v8 }
  0xa1   : > { %5205 = vmatmul.mubr.msk.f32.gmra.mrb[48].mxu0 %vm548_vm1, %v472_v31  ;;  %5269 = vmatmul.mubr.msk.f32.gmra.mrb[48].mxu1 %vm1553_vm2, %v1503_v32  ;;  %v502_v32 = vld [vmem:[%s6327_s12 + $0x1b0] sm:$0xff] }
  0xa2   : > { %1003 = vmatprep.mubr.f32.mxu0 %v6203_v8  ;;  %1816 = vmatprep.mubr.f32.mxu1 %v6203_v8 }
  0xa5   : > { %5206 = vmatmul.mubr.msk.f32.gmra.mrb[50].mxu0 %vm548_vm1, %v473_v33  ;;  %5270 = vmatmul.mubr.msk.f32.gmra.mrb[50].mxu1 %vm1553_vm2, %v1504_v34  ;;  %v1533_v33 = vld [vmem:[%s6332_s17 + $0x130] sm:$0xff] }
  0xa6   : > { %1009 = vmatprep.mubr.f32.mxu0 %v6203_v8  ;;  %1822 = vmatprep.mubr.f32.mxu1 %v6203_v8 }
  0xa9   : > { %5207 = vmatmul.mubr.msk.f32.gmra.mrb[52].mxu0 %vm548_vm1, %v474_v35  ;;  %5271 = vmatmul.mubr.msk.f32.gmra.mrb[52].mxu1 %vm1553_vm2, %v1505_v36 }
  0xaa   : > { %1015 = vmatprep.mubr.f32.mxu0 %v6203_v8  ;;  %1828 = vmatprep.mubr.f32.mxu1 %v6203_v8 }
  0xad   : > { %5208 = vmatmul.mubr.msk.f32.gmra.mrb[54].mxu0 %vm548_vm1, %v475_v37  ;;  %5272 = vmatmul.mubr.msk.f32.gmra.mrb[54].mxu1 %vm1553_vm2, %v1506_v38  ;;  %v503_v38 = vld [vmem:[%s6327_s12 + $0x1b8] sm:$0xff] }
  0xae   : > { %1021 = vmatprep.mubr.f32.mxu0 %v6203_v8  ;;  %1834 = vmatprep.mubr.f32.mxu1 %v6203_v8 }
  0xb1   : > { %5209 = vmatmul.mubr.msk.f32.gmra.mrb[56].mxu0 %vm548_vm1, %v476_v39  ;;  %5273 = vmatmul.mubr.msk.f32.gmra.mrb[56].mxu1 %vm1553_vm2, %v1507_v40  ;;  %v1534_v39 = vld [vmem:[%s6332_s17 + $0x138] sm:$0xff] }
  0xb2   : > { %1027 = vmatprep.mubr.f32.mxu0 %v6203_v8  ;;  %1840 = vmatprep.mubr.f32.mxu1 %v6203_v8 }
  0xb5   : > { %5210 = vmatmul.mubr.msk.f32.gmra.mrb[58].mxu0 %vm548_vm1, %v477_v41  ;;  %5274 = vmatmul.mubr.msk.f32.gmra.mrb[58].mxu1 %vm1553_vm2, %v1508_v42 }
  0xb6   : > { %1033 = vmatprep.mubr.f32.mxu0 %v6203_v8  ;;  %1846 = vmatprep.mubr.f32.mxu1 %v6203_v8 }
  0xb9   : > { %5211 = vmatmul.mubr.msk.f32.gmra.mrb[60].mxu0 %vm548_vm1, %v478_v43  ;;  %5275 = vmatmul.mubr.msk.f32.gmra.mrb[60].mxu1 %vm1553_vm2, %v1509_v44  ;;  %v504_v44 = vld [vmem:[%s6327_s12 + $0x1c0] sm:$0xff] }
  0xba   : > { %1039 = vmatprep.mubr.f32.mxu0 %v6203_v8  ;;  %1852 = vmatprep.mubr.f32.mxu1 %v6203_v8 }
  0xbd   : > { %5212 = vmatmul.mubr.msk.f32.gmra.mrb[62].mxu0 %vm548_vm1, %v479_v45  ;;  %5276 = vmatmul.mubr.msk.f32.gmra.mrb[62].mxu1 %vm1553_vm2, %v1510_v46  ;;  %v1535_v45 = vld [vmem:[%s6332_s17 + $0x140] sm:$0xff] }
  0xbe   : > { %1045 = vmatprep.mubr.f32.mxu0 %v6203_v8  ;;  %1858 = vmatprep.mubr.f32.mxu1 %v6203_v8 }
  0xc1   : > { %5213 = vmatmul.mubr.msk.f32.gmra.mrb[64].mxu0 %vm548_vm1, %v480_v47  ;;  %5277 = vmatmul.mubr.msk.f32.gmra.mrb[64].mxu1 %vm1553_vm2, %v1511_v48 }
  0xc2   : > { %1051 = vmatprep.mubr.f32.mxu0 %v6203_v8  ;;  %1864 = vmatprep.mubr.f32.mxu1 %v6203_v8 }
  0xc5   : > { %5214 = vmatmul.mubr.msk.f32.gmra.mrb[66].mxu0 %vm548_vm1, %v481_v49  ;;  %5278 = vmatmul.mubr.msk.f32.gmra.mrb[66].mxu1 %vm1553_vm2, %v1512_v50  ;;  %v505_v50 = vld [vmem:[%s6327_s12 + $0x1c8] sm:$0xff] }
  0xc6   : > { %1057 = vmatprep.mubr.f32.mxu0 %v6203_v8  ;;  %1870 = vmatprep.mubr.f32.mxu1 %v6203_v8 }
  0xc9   : > { %5215 = vmatmul.mubr.msk.f32.gmra.mrb[68].mxu0 %vm548_vm1, %v482_v51  ;;  %5279 = vmatmul.mubr.msk.f32.gmra.mrb[68].mxu1 %vm1553_vm2, %v1513_v52  ;;  %v1536_v51 = vld [vmem:[%s6332_s17 + $0x148] sm:$0xff] }
  0xca   : > { %1063 = vmatprep.mubr.f32.mxu0 %v6203_v8  ;;  %1876 = vmatprep.mubr.f32.mxu1 %v6203_v8 }
  0xcd   : > { %5216 = vmatmul.mubr.msk.f32.gmra.mrb[70].mxu0 %vm548_vm1, %v483_v53  ;;  %5280 = vmatmul.mubr.msk.f32.gmra.mrb[70].mxu1 %vm1553_vm2, %v1514_v54 }
  0xce   : > { %1069 = vmatprep.mubr.f32.mxu0 %v6203_v8  ;;  %1882 = vmatprep.mubr.f32.mxu1 %v6203_v8 }
  0xd1   : > { %5217 = vmatmul.mubr.msk.f32.gmra.mrb[72].mxu0 %vm548_vm1, %v484_v55  ;;  %5281 = vmatmul.mubr.msk.f32.gmra.mrb[72].mxu1 %vm1553_vm2, %v1515_v56  ;;  %v506_v56 = vld [vmem:[%s6327_s12 + $0x1d0] sm:$0xff] }
  0xd2   : > { %1075 = vmatprep.mubr.f32.mxu0 %v6203_v8  ;;  %1888 = vmatprep.mubr.f32.mxu1 %v6203_v8 }
  0xd5   : > { %5218 = vmatmul.mubr.msk.f32.gmra.mrb[74].mxu0 %vm548_vm1, %v485_v57  ;;  %5282 = vmatmul.mubr.msk.f32.gmra.mrb[74].mxu1 %vm1553_vm2, %v1516_v58  ;;  %v1537_v57 = vld [vmem:[%s6332_s17 + $0x150] sm:$0xff] }
  0xd6   : > { %1081 = vmatprep.mubr.f32.mxu0 %v6203_v8  ;;  %1894 = vmatprep.mubr.f32.mxu1 %v6203_v8 }
  0xd9   : > { %5219 = vmatmul.mubr.msk.f32.gmra.mrb[76].mxu0 %vm548_vm1, %v486_v59  ;;  %5283 = vmatmul.mubr.msk.f32.gmra.mrb[76].mxu1 %vm1553_vm2, %v1517_v60 }
  0xda   : > { %1087 = vmatprep.mubr.f32.mxu0 %v6203_v8  ;;  %1900 = vmatprep.mubr.f32.mxu1 %v6203_v8 }
  0xdd   : > { %5220 = vmatmul.mubr.msk.f32.gmra.mrb[78].mxu0 %vm548_vm1, %v487_v61  ;;  %5284 = vmatmul.mubr.msk.f32.gmra.mrb[78].mxu1 %vm1553_vm2, %v1518_v62  ;;  %v507_v62 = vld [vmem:[%s6327_s12 + $0x1d8] sm:$0xff] }
  0xde   : > { %1093 = vmatprep.mubr.f32.mxu0 %v6203_v8  ;;  %1906 = vmatprep.mubr.f32.mxu1 %v6203_v8 }
  0xe1   : > { %5221 = vmatmul.mubr.msk.f32.gmra.mrb[80].mxu0 %vm548_vm1, %v488_v63  ;;  %5285 = vmatmul.mubr.msk.f32.gmra.mrb[80].mxu1 %vm1553_vm2, %v1519_v0  ;;  %v1538_v63 = vld [vmem:[%s6332_s17 + $0x158] sm:$0xff] }
  0xe2   : > { %1099 = vmatprep.mubr.f32.mxu0 %v6203_v8  ;;  %1912 = vmatprep.mubr.f32.mxu1 %v6203_v8 }
  0xe5   : > { %5222 = vmatmul.mubr.msk.f32.gmra.mrb[82].mxu0 %vm548_vm1, %v489_v1  ;;  %5286 = vmatmul.mubr.msk.f32.gmra.mrb[82].mxu1 %vm1553_vm2, %v1520_v2 }
  0xe6   : > { %1105 = vmatprep.mubr.f32.mxu0 %v6203_v8  ;;  %1918 = vmatprep.mubr.f32.mxu1 %v6203_v8 }
  0xe9   : > { %5223 = vmatmul.mubr.msk.f32.gmra.mrb[84].mxu0 %vm548_vm1, %v490_v3  ;;  %5287 = vmatmul.mubr.msk.f32.gmra.mrb[84].mxu1 %vm1553_vm2, %v1521_v4  ;;  %v508_v4 = vld [vmem:[%s6327_s12 + $0x1e0] sm:$0xff] }
  0xea   : > { %1111 = vmatprep.mubr.f32.mxu0 %v6203_v8  ;;  %1924 = vmatprep.mubr.f32.mxu1 %v6203_v8 }
  0xed   : > { %5224 = vmatmul.mubr.msk.f32.gmra.mrb[86].mxu0 %vm548_vm1, %v491_v5  ;;  %5288 = vmatmul.mubr.msk.f32.gmra.mrb[86].mxu1 %vm1553_vm2, %v1522_v6  ;;  %v1539_v5 = vld [vmem:[%s6332_s17 + $0x160] sm:$0xff] }
  0xee   : > { %1117 = vmatprep.mubr.f32.mxu0 %v6203_v8  ;;  %1930 = vmatprep.mubr.f32.mxu1 %v6203_v8 }
  0xf1   : > { %5225 = vmatmul.mubr.msk.f32.gmra.mrb[88].mxu0 %vm548_vm1, %v492_v7  ;;  %5289 = vmatmul.mubr.msk.f32.gmra.mrb[88].mxu1 %vm1553_vm2, %v1523_v9 }
  0xf2   : > { %1123 = vmatprep.mubr.f32.mxu0 %v6203_v8  ;;  %1936 = vmatprep.mubr.f32.mxu1 %v6203_v8 }
  0xf5   : > { %5226 = vmatmul.mubr.msk.f32.gmra.mrb[90].mxu0 %vm548_vm1, %v493_v10  ;;  %5290 = vmatmul.mubr.msk.f32.gmra.mrb[90].mxu1 %vm1553_vm2, %v1524_v11  ;;  %v509_v11 = vld [vmem:[%s6327_s12 + $0x1e8] sm:$0xff] }
  0xf6   : > { %1129 = vmatprep.mubr.f32.mxu0 %v6203_v8  ;;  %1942 = vmatprep.mubr.f32.mxu1 %v6203_v8 }
  0xf9   : > { %5227 = vmatmul.mubr.msk.f32.gmra.mrb[92].mxu0 %vm548_vm1, %v494_v12  ;;  %5291 = vmatmul.mubr.msk.f32.gmra.mrb[92].mxu1 %vm1553_vm2, %v1525_v13  ;;  %v1540_v12 = vld [vmem:[%s6332_s17 + $0x168] sm:$0xff] }
  0xfa   : > { %1135 = vmatprep.mubr.f32.mxu0 %v6203_v8  ;;  %1948 = vmatprep.mubr.f32.mxu1 %v6203_v8 }
  0xfd   : > { %5228 = vmatmul.mubr.msk.f32.gmra.mrb[94].mxu0 %vm548_vm1, %v495_v14  ;;  %5292 = vmatmul.mubr.msk.f32.gmra.mrb[94].mxu1 %vm1553_vm2, %v1526_v15 }
  0xfe   : > { %1141 = vmatprep.mubr.f32.mxu0 %v6203_v8  ;;  %1954 = vmatprep.mubr.f32.mxu1 %v6203_v8 }
 0x101   : > { %5229 = vmatmul.mubr.msk.f32.gmra.mrb[96].mxu0 %vm548_vm1, %v496_v16  ;;  %5293 = vmatmul.mubr.msk.f32.gmra.mrb[96].mxu1 %vm1553_vm2, %v1527_v17  ;;  %v510_v17 = vld [vmem:[%s6327_s12 + $0x1f0] sm:$0xff] }
 0x102   : > { %1147 = vmatprep.mubr.f32.mxu0 %v6203_v8  ;;  %1960 = vmatprep.mubr.f32.mxu1 %v6203_v8 }
 0x105   : > { %5230 = vmatmul.mubr.msk.f32.gmra.mrb[98].mxu0 %vm548_vm1, %v497_v18  ;;  %5294 = vmatmul.mubr.msk.f32.gmra.mrb[98].mxu1 %vm1553_vm2, %v1528_v19  ;;  %v1541_v18 = vld [vmem:[%s6332_s17 + $0x170] sm:$0xff] }
 0x106   : > { %1153 = vmatprep.mubr.f32.mxu0 %v6203_v8  ;;  %1966 = vmatprep.mubr.f32.mxu1 %v6203_v8 }
 0x109   : > { %5231 = vmatmul.mubr.msk.f32.gmra.mrb[100].mxu0 %vm548_vm1, %v498_v20  ;;  %5295 = vmatmul.mubr.msk.f32.gmra.mrb[100].mxu1 %vm1553_vm2, %v1529_v21 }
 0x10a   : > { %1159 = vmatprep.mubr.f32.mxu0 %v6203_v8  ;;  %1972 = vmatprep.mubr.f32.mxu1 %v6203_v8 }
 0x10d   : > { %5232 = vmatmul.mubr.msk.f32.gmra.mrb[102].mxu0 %vm548_vm1, %v499_v22  ;;  %5296 = vmatmul.mubr.msk.f32.gmra.mrb[102].mxu1 %vm1553_vm2, %v1530_v23  ;;  %v511_v23 = vld [vmem:[%s6327_s12 + $0x1f8] sm:$0xff] }
 0x10e   : > { %1165 = vmatprep.mubr.f32.mxu0 %v6203_v8  ;;  %1978 = vmatprep.mubr.f32.mxu1 %v6203_v8 }
 0x111   : > { %5233 = vmatmul.mubr.msk.f32.gmra.mrb[104].mxu0 %vm548_vm1, %v500_v24  ;;  %5297 = vmatmul.mubr.msk.f32.gmra.mrb[104].mxu1 %vm1553_vm2, %v1531_v25  ;;  %v1542_v24 = vld [vmem:[%s6332_s17 + $0x178] sm:$0xff] }
 0x112   : > { %1171 = vmatprep.mubr.f32.mxu0 %v6203_v8  ;;  %1984 = vmatprep.mubr.f32.mxu1 %v6203_v8 }
 0x114   : > { %v855_v28 = vpop.f32.mrb[0].mxu0  ;;  %v1239_v29 = vpop.f32.mrb[0].mxu1 }
 0x115   : > { %1334 = vst [vmem:[#allocation2] sm:$0xff] %v855_v28  ;;  %1463 = vst [vmem:[#allocation2 + $0x400] sm:$0xff] %v1239_v29  ;;  %v857_v30 = vpop.f32.mrb[1].mxu0  ;;  %5234 = vmatmul.mubr.msk.f32.gmra.mrb[106].mxu0 %vm548_vm1, %v501_v26  ;;  %v1241_v31 = vpop.f32.mrb[1].mxu1  ;;  %5298 = vmatmul.mubr.msk.f32.gmra.mrb[106].mxu1 %vm1553_vm2, %v1532_v27 }
 0x116   : > { %1336 = vst.msk [vmem:[#allocation2 + $0x8] sm:$0xff] %vm1335_vm3, %v857_v30  ;;  %1464 = vst.msk [vmem:[#allocation2 + $0x408] sm:$0xff] %vm1335_vm3, %v1241_v31  ;;  %1177 = vmatprep.mubr.f32.mxu0 %v6203_v8  ;;  %1990 = vmatprep.mubr.f32.mxu1 %v6203_v8 }
 0x118   : > { %v861_v34 = vpop.f32.mrb[2].mxu0  ;;  %v1245_v35 = vpop.f32.mrb[2].mxu1 }
 0x119   : > { %1337 = vst [vmem:[#allocation2 + $0x10] sm:$0xff] %v861_v34  ;;  %1465 = vst [vmem:[#allocation2 + $0x410] sm:$0xff] %v1245_v35  ;;  %v863_v36 = vpop.f32.mrb[3].mxu0  ;;  %5235 = vmatmul.mubr.msk.f32.gmra.mrb[108].mxu0 %vm548_vm1, %v502_v32  ;;  %v1247_v37 = vpop.f32.mrb[3].mxu1  ;;  %5299 = vmatmul.mubr.msk.f32.gmra.mrb[108].mxu1 %vm1553_vm2, %v1533_v33 }
 0x11a   : > { %1338 = vst.msk [vmem:[#allocation2 + $0x18] sm:$0xff] %vm1335_vm3, %v863_v36  ;;  %1466 = vst.msk [vmem:[#allocation2 + $0x418] sm:$0xff] %vm1335_vm3, %v1247_v37  ;;  %1183 = vmatprep.mubr.f32.mxu0 %v6203_v8  ;;  %1996 = vmatprep.mubr.f32.mxu1 %v6203_v8 }
 0x11c   : > { %v867_v40 = vpop.f32.mrb[4].mxu0  ;;  %v1251_v41 = vpop.f32.mrb[4].mxu1 }
 0x11d   : > { %1339 = vst [vmem:[#allocation2 + $0x20] sm:$0xff] %v867_v40  ;;  %1467 = vst [vmem:[#allocation2 + $0x420] sm:$0xff] %v1251_v41  ;;  %v869_v42 = vpop.f32.mrb[5].mxu0  ;;  %5236 = vmatmul.mubr.msk.f32.gmra.mrb[110].mxu0 %vm548_vm1, %v503_v38  ;;  %v1253_v43 = vpop.f32.mrb[5].mxu1  ;;  %5300 = vmatmul.mubr.msk.f32.gmra.mrb[110].mxu1 %vm1553_vm2, %v1534_v39 }
 0x11e   : > { %1340 = vst.msk [vmem:[#allocation2 + $0x28] sm:$0xff] %vm1335_vm3, %v869_v42  ;;  %1468 = vst.msk [vmem:[#allocation2 + $0x428] sm:$0xff] %vm1335_vm3, %v1253_v43  ;;  %1189 = vmatprep.mubr.f32.mxu0 %v6203_v8  ;;  %2002 = vmatprep.mubr.f32.mxu1 %v6203_v8 }
 0x120   : > { %v873_v46 = vpop.f32.mrb[6].mxu0  ;;  %v1257_v47 = vpop.f32.mrb[6].mxu1 }
 0x121   : > { %1341 = vst [vmem:[#allocation2 + $0x30] sm:$0xff] %v873_v46  ;;  %1469 = vst [vmem:[#allocation2 + $0x430] sm:$0xff] %v1257_v47  ;;  %v875_v48 = vpop.f32.mrb[7].mxu0  ;;  %5237 = vmatmul.mubr.msk.f32.gmra.mrb[112].mxu0 %vm548_vm1, %v504_v44  ;;  %v1259_v49 = vpop.f32.mrb[7].mxu1  ;;  %5301 = vmatmul.mubr.msk.f32.gmra.mrb[112].mxu1 %vm1553_vm2, %v1535_v45 }
 0x122   : > { %1342 = vst.msk [vmem:[#allocation2 + $0x38] sm:$0xff] %vm1335_vm3, %v875_v48  ;;  %1470 = vst.msk [vmem:[#allocation2 + $0x438] sm:$0xff] %vm1335_vm3, %v1259_v49  ;;  %1195 = vmatprep.mubr.f32.mxu0 %v6203_v8  ;;  %2008 = vmatprep.mubr.f32.mxu1 %v6203_v8 }
 0x124   : > { %v879_v52 = vpop.f32.mrb[8].mxu0  ;;  %v1263_v53 = vpop.f32.mrb[8].mxu1 }
 0x125   : > { %1343 = vst [vmem:[#allocation2 + $0x40] sm:$0xff] %v879_v52  ;;  %1471 = vst [vmem:[#allocation2 + $0x440] sm:$0xff] %v1263_v53  ;;  %v881_v54 = vpop.f32.mrb[9].mxu0  ;;  %5238 = vmatmul.mubr.msk.f32.gmra.mrb[114].mxu0 %vm548_vm1, %v505_v50  ;;  %v1265_v55 = vpop.f32.mrb[9].mxu1  ;;  %5302 = vmatmul.mubr.msk.f32.gmra.mrb[114].mxu1 %vm1553_vm2, %v1536_v51 }
 0x126   : > { %1344 = vst.msk [vmem:[#allocation2 + $0x48] sm:$0xff] %vm1335_vm3, %v881_v54  ;;  %1472 = vst.msk [vmem:[#allocation2 + $0x448] sm:$0xff] %vm1335_vm3, %v1265_v55  ;;  %1201 = vmatprep.mubr.f32.mxu0 %v6203_v8  ;;  %2014 = vmatprep.mubr.f32.mxu1 %v6203_v8 }
 0x128   : > { %v885_v58 = vpop.f32.mrb[10].mxu0  ;;  %v1269_v59 = vpop.f32.mrb[10].mxu1 }
 0x129   : > { %1345 = vst [vmem:[#allocation2 + $0x50] sm:$0xff] %v885_v58  ;;  %1473 = vst [vmem:[#allocation2 + $0x450] sm:$0xff] %v1269_v59  ;;  %v887_v60 = vpop.f32.mrb[11].mxu0  ;;  %5239 = vmatmul.mubr.msk.f32.gmra.mrb[116].mxu0 %vm548_vm1, %v506_v56  ;;  %v1271_v61 = vpop.f32.mrb[11].mxu1  ;;  %5303 = vmatmul.mubr.msk.f32.gmra.mrb[116].mxu1 %vm1553_vm2, %v1537_v57 }
 0x12a   : > { %1346 = vst.msk [vmem:[#allocation2 + $0x58] sm:$0xff] %vm1335_vm3, %v887_v60  ;;  %1474 = vst.msk [vmem:[#allocation2 + $0x458] sm:$0xff] %vm1335_vm3, %v1271_v61  ;;  %1207 = vmatprep.mubr.f32.mxu0 %v6203_v8  ;;  %2020 = vmatprep.mubr.f32.mxu1 %v6203_v8 }
 0x12c   : > { %v891_v0 = vpop.f32.mrb[12].mxu0  ;;  %v1275_v1 = vpop.f32.mrb[12].mxu1 }
 0x12d   : > { %1347 = vst [vmem:[#allocation2 + $0x60] sm:$0xff] %v891_v0  ;;  %1475 = vst [vmem:[#allocation2 + $0x460] sm:$0xff] %v1275_v1  ;;  %v893_v2 = vpop.f32.mrb[13].mxu0  ;;  %5240 = vmatmul.mubr.msk.f32.gmra.mrb[118].mxu0 %vm548_vm1, %v507_v62  ;;  %v1277_v3 = vpop.f32.mrb[13].mxu1  ;;  %5304 = vmatmul.mubr.msk.f32.gmra.mrb[118].mxu1 %vm1553_vm2, %v1538_v63 }
 0x12e   : > { %1348 = vst.msk [vmem:[#allocation2 + $0x68] sm:$0xff] %vm1335_vm3, %v893_v2  ;;  %1476 = vst.msk [vmem:[#allocation2 + $0x468] sm:$0xff] %vm1335_vm3, %v1277_v3  ;;  %1213 = vmatprep.mubr.f32.mxu0 %v6203_v8  ;;  %2026 = vmatprep.mubr.f32.mxu1 %v6203_v8 }
 0x130   : > { %v897_v6 = vpop.f32.mrb[14].mxu0  ;;  %v1281_v7 = vpop.f32.mrb[14].mxu1 }
 0x131   : > { %1349 = vst [vmem:[#allocation2 + $0x70] sm:$0xff] %v897_v6  ;;  %1477 = vst [vmem:[#allocation2 + $0x470] sm:$0xff] %v1281_v7  ;;  %v899_v9 = vpop.f32.mrb[15].mxu0  ;;  %5241 = vmatmul.mubr.msk.f32.gmra.mrb[120].mxu0 %vm548_vm1, %v508_v4  ;;  %v1283_v10 = vpop.f32.mrb[15].mxu1  ;;  %5305 = vmatmul.mubr.msk.f32.gmra.mrb[120].mxu1 %vm1553_vm2, %v1539_v5 }
 0x132   : > { %1350 = vst.msk [vmem:[#allocation2 + $0x78] sm:$0xff] %vm1335_vm3, %v899_v9  ;;  %1478 = vst.msk [vmem:[#allocation2 + $0x478] sm:$0xff] %vm1335_vm3, %v1283_v10  ;;  %1219 = vmatprep.mubr.f32.mxu0 %v6203_v8  ;;  %2032 = vmatprep.mubr.f32.mxu1 %v6203_v8 }
 0x134   : > { %v903_v13 = vpop.f32.mrb[16].mxu0  ;;  %v1287_v14 = vpop.f32.mrb[16].mxu1 }
 0x135   : > { %1351 = vst [vmem:[#allocation2 + $0x80] sm:$0xff] %v903_v13  ;;  %1479 = vst [vmem:[#allocation2 + $0x480] sm:$0xff] %v1287_v14  ;;  %v905_v15 = vpop.f32.mrb[17].mxu0  ;;  %5242 = vmatmul.mubr.msk.f32.gmra.mrb[122].mxu0 %vm548_vm1, %v509_v11  ;;  %v1289_v16 = vpop.f32.mrb[17].mxu1  ;;  %5306 = vmatmul.mubr.msk.f32.gmra.mrb[122].mxu1 %vm1553_vm2, %v1540_v12 }
 0x136   : > { %1352 = vst.msk [vmem:[#allocation2 + $0x88] sm:$0xff] %vm1335_vm3, %v905_v15  ;;  %1480 = vst.msk [vmem:[#allocation2 + $0x488] sm:$0xff] %vm1335_vm3, %v1289_v16  ;;  %1225 = vmatprep.mubr.f32.mxu0 %v6203_v8  ;;  %2038 = vmatprep.mubr.f32.mxu1 %v6203_v8 }
 0x138   : > { %v909_v19 = vpop.f32.mrb[18].mxu0  ;;  %v1293_v20 = vpop.f32.mrb[18].mxu1 }
 0x139   : > { %1353 = vst [vmem:[#allocation2 + $0x90] sm:$0xff] %v909_v19  ;;  %1481 = vst [vmem:[#allocation2 + $0x490] sm:$0xff] %v1293_v20  ;;  %v911_v21 = vpop.f32.mrb[19].mxu0  ;;  %5243 = vmatmul.mubr.msk.f32.gmra.mrb[124].mxu0 %vm548_vm1, %v510_v17  ;;  %v1295_v22 = vpop.f32.mrb[19].mxu1  ;;  %5307 = vmatmul.mubr.msk.f32.gmra.mrb[124].mxu1 %vm1553_vm2, %v1541_v18 }
 0x13a   : > { %1354 = vst.msk [vmem:[#allocation2 + $0x98] sm:$0xff] %vm1335_vm3, %v911_v21  ;;  %1482 = vst.msk [vmem:[#allocation2 + $0x498] sm:$0xff] %vm1335_vm3, %v1295_v22  ;;  %1231 = vmatprep.mubr.f32.mxu0 %v6203_v8  ;;  %2044 = vmatprep.mubr.f32.mxu1 %v6203_v8 }
 0x13c   : > { %v915_v25 = vpop.f32.mrb[20].mxu0  ;;  %v1299_v26 = vpop.f32.mrb[20].mxu1 }
 0x13d   : > { %1355 = vst [vmem:[#allocation2 + $0xa0] sm:$0xff] %v915_v25  ;;  %1483 = vst [vmem:[#allocation2 + $0x4a0] sm:$0xff] %v1299_v26  ;;  %v917_v27 = vpop.f32.mrb[21].mxu0  ;;  %5244 = vmatmul.mubr.msk.f32.gmra.mrb[126].mxu0 %vm548_vm1, %v511_v23  ;;  %v1301_v28 = vpop.f32.mrb[21].mxu1  ;;  %5308 = vmatmul.mubr.msk.f32.gmra.mrb[126].mxu1 %vm1553_vm2, %v1542_v24 }
 0x13e   : > { %1356 = vst.msk [vmem:[#allocation2 + $0xa8] sm:$0xff] %vm1335_vm3, %v917_v27  ;;  %1484 = vst.msk [vmem:[#allocation2 + $0x4a8] sm:$0xff] %vm1335_vm3, %v1301_v28 }
 0x140   : > { %v921_v29 = vpop.f32.mrb[22].mxu0  ;;  %v1305_v30 = vpop.f32.mrb[22].mxu1 }
 0x141   : > { %1357 = vst [vmem:[#allocation2 + $0xb0] sm:$0xff] %v921_v29  ;;  %1485 = vst [vmem:[#allocation2 + $0x4b0] sm:$0xff] %v1305_v30  ;;  %v923_v8 = vpop.f32.mrb[23].mxu0  ;;  %v1307_v31 = vpop.f32.mrb[23].mxu1 }
 0x142   : > { %1358 = vst.msk [vmem:[#allocation2 + $0xb8] sm:$0xff] %vm1335_vm3, %v923_v8  ;;  %1486 = vst.msk [vmem:[#allocation2 + $0x4b8] sm:$0xff] %vm1335_vm3, %v1307_v31 }
 0x144   : > { %v927_v32 = vpop.f32.mrb[24].mxu0  ;;  %v1311_v33 = vpop.f32.mrb[24].mxu1 }
 0x145   : > { %1359 = vst [vmem:[#allocation2 + $0xc0] sm:$0xff] %v927_v32  ;;  %1487 = vst [vmem:[#allocation2 + $0x4c0] sm:$0xff] %v1311_v33  ;;  %v929_v34 = vpop.f32.mrb[25].mxu0  ;;  %v1313_v35 = vpop.f32.mrb[25].mxu1 }
 0x146   : > { %1360 = vst.msk [vmem:[#allocation2 + $0xc8] sm:$0xff] %vm1335_vm3, %v929_v34  ;;  %1488 = vst.msk [vmem:[#allocation2 + $0x4c8] sm:$0xff] %vm1335_vm3, %v1313_v35 }
 0x148   : > { %v933_v36 = vpop.f32.mrb[26].mxu0  ;;  %v1317_v37 = vpop.f32.mrb[26].mxu1 }
 0x149   : > { %1361 = vst [vmem:[#allocation2 + $0xd0] sm:$0xff] %v933_v36  ;;  %1489 = vst [vmem:[#allocation2 + $0x4d0] sm:$0xff] %v1317_v37  ;;  %v935_v38 = vpop.f32.mrb[27].mxu0  ;;  %v1319_v39 = vpop.f32.mrb[27].mxu1 }
 0x14a   : > { %1362 = vst.msk [vmem:[#allocation2 + $0xd8] sm:$0xff] %vm1335_vm3, %v935_v38  ;;  %1490 = vst.msk [vmem:[#allocation2 + $0x4d8] sm:$0xff] %vm1335_vm3, %v1319_v39 }
 0x14c   : > { %v939_v40 = vpop.f32.mrb[28].mxu0  ;;  %v1323_v41 = vpop.f32.mrb[28].mxu1 }
 0x14d   : > { %1363 = vst [vmem:[#allocation2 + $0xe0] sm:$0xff] %v939_v40  ;;  %1491 = vst [vmem:[#allocation2 + $0x4e0] sm:$0xff] %v1323_v41  ;;  %v941_v42 = vpop.f32.mrb[29].mxu0  ;;  %v1325_v43 = vpop.f32.mrb[29].mxu1 }
 0x14e   : > { %1364 = vst.msk [vmem:[#allocation2 + $0xe8] sm:$0xff] %vm1335_vm3, %v941_v42  ;;  %1492 = vst.msk [vmem:[#allocation2 + $0x4e8] sm:$0xff] %vm1335_vm3, %v1325_v43 }
 0x150   : > { %v945_v44 = vpop.f32.mrb[30].mxu0  ;;  %v1329_v45 = vpop.f32.mrb[30].mxu1 }
 0x151   : > { %1365 = vst [vmem:[#allocation2 + $0xf0] sm:$0xff] %v945_v44  ;;  %1493 = vst [vmem:[#allocation2 + $0x4f0] sm:$0xff] %v1329_v45  ;;  %v947_v46 = vpop.f32.mrb[31].mxu0  ;;  %v1331_v47 = vpop.f32.mrb[31].mxu1 }
 0x152   : > { %1366 = vst.msk [vmem:[#allocation2 + $0xf8] sm:$0xff] %vm1335_vm3, %v947_v46  ;;  %1494 = vst.msk [vmem:[#allocation2 + $0x4f8] sm:$0xff] %vm1335_vm3, %v1331_v47 }
 0x154   : > { %v951_v48 = vpop.f32.mrb[32].mxu0  ;;  %v1764_v49 = vpop.f32.mrb[32].mxu1 }
 0x155   : > { %1367 = vst [vmem:[#allocation2 + $0x100] sm:$0xff] %v951_v48  ;;  %2051 = vst [vmem:[#allocation3] sm:$0xff] %v1764_v49  ;;  %v953_v50 = vpop.f32.mrb[33].mxu0  ;;  %v1766_v51 = vpop.f32.mrb[33].mxu1 }
 0x156   : > { %1368 = vst.msk [vmem:[#allocation2 + $0x108] sm:$0xff] %vm1335_vm3, %v953_v50  ;;  %2052 = vst.msk [vmem:[#allocation3 + $0x8] sm:$0xff] %vm1335_vm3, %v1766_v51 }
 0x158   : > { %v957_v52 = vpop.f32.mrb[34].mxu0  ;;  %v1770_v53 = vpop.f32.mrb[34].mxu1 }
 0x159   : > { %1369 = vst [vmem:[#allocation2 + $0x110] sm:$0xff] %v957_v52  ;;  %2053 = vst [vmem:[#allocation3 + $0x10] sm:$0xff] %v1770_v53  ;;  %v959_v54 = vpop.f32.mrb[35].mxu0  ;;  %v1772_v55 = vpop.f32.mrb[35].mxu1 }
 0x15a   : > { %1370 = vst.msk [vmem:[#allocation2 + $0x118] sm:$0xff] %vm1335_vm3, %v959_v54  ;;  %2054 = vst.msk [vmem:[#allocation3 + $0x18] sm:$0xff] %vm1335_vm3, %v1772_v55 }
 0x15c   : > { %v963_v56 = vpop.f32.mrb[36].mxu0  ;;  %v1776_v57 = vpop.f32.mrb[36].mxu1 }
 0x15d   : > { %1371 = vst [vmem:[#allocation2 + $0x120] sm:$0xff] %v963_v56  ;;  %2055 = vst [vmem:[#allocation3 + $0x20] sm:$0xff] %v1776_v57  ;;  %v965_v58 = vpop.f32.mrb[37].mxu0  ;;  %v1778_v59 = vpop.f32.mrb[37].mxu1 }
 0x15e   : > { %1372 = vst.msk [vmem:[#allocation2 + $0x128] sm:$0xff] %vm1335_vm3, %v965_v58  ;;  %2056 = vst.msk [vmem:[#allocation3 + $0x28] sm:$0xff] %vm1335_vm3, %v1778_v59 }
 0x160   : > { %v969_v60 = vpop.f32.mrb[38].mxu0  ;;  %v1782_v61 = vpop.f32.mrb[38].mxu1 }
 0x161   : > { %1373 = vst [vmem:[#allocation2 + $0x130] sm:$0xff] %v969_v60  ;;  %2057 = vst [vmem:[#allocation3 + $0x30] sm:$0xff] %v1782_v61  ;;  %v971_v62 = vpop.f32.mrb[39].mxu0  ;;  %v1784_v63 = vpop.f32.mrb[39].mxu1 }
 0x162   : > { %1374 = vst.msk [vmem:[#allocation2 + $0x138] sm:$0xff] %vm1335_vm3, %v971_v62  ;;  %2058 = vst.msk [vmem:[#allocation3 + $0x38] sm:$0xff] %vm1335_vm3, %v1784_v63 }
 0x164   : > { %v975_v0 = vpop.f32.mrb[40].mxu0  ;;  %v1788_v1 = vpop.f32.mrb[40].mxu1 }
 0x165   : > { %1375 = vst [vmem:[#allocation2 + $0x140] sm:$0xff] %v975_v0  ;;  %2059 = vst [vmem:[#allocation3 + $0x40] sm:$0xff] %v1788_v1  ;;  %v977_v2 = vpop.f32.mrb[41].mxu0  ;;  %v1790_v3 = vpop.f32.mrb[41].mxu1 }
 0x166   : > { %1376 = vst.msk [vmem:[#allocation2 + $0x148] sm:$0xff] %vm1335_vm3, %v977_v2  ;;  %2060 = vst.msk [vmem:[#allocation3 + $0x48] sm:$0xff] %vm1335_vm3, %v1790_v3 }
 0x168   : > { %v981_v4 = vpop.f32.mrb[42].mxu0  ;;  %v1794_v5 = vpop.f32.mrb[42].mxu1 }
 0x169   : > { %1377 = vst [vmem:[#allocation2 + $0x150] sm:$0xff] %v981_v4  ;;  %2061 = vst [vmem:[#allocation3 + $0x50] sm:$0xff] %v1794_v5  ;;  %v983_v6 = vpop.f32.mrb[43].mxu0  ;;  %v1796_v7 = vpop.f32.mrb[43].mxu1 }
 0x16a   : > { %1378 = vst.msk [vmem:[#allocation2 + $0x158] sm:$0xff] %vm1335_vm3, %v983_v6  ;;  %2062 = vst.msk [vmem:[#allocation3 + $0x58] sm:$0xff] %vm1335_vm3, %v1796_v7 }
 0x16c   : > { %v987_v9 = vpop.f32.mrb[44].mxu0  ;;  %v1800_v10 = vpop.f32.mrb[44].mxu1 }
 0x16d   : > { %1379 = vst [vmem:[#allocation2 + $0x160] sm:$0xff] %v987_v9  ;;  %2063 = vst [vmem:[#allocation3 + $0x60] sm:$0xff] %v1800_v10  ;;  %v989_v11 = vpop.f32.mrb[45].mxu0  ;;  %v1802_v12 = vpop.f32.mrb[45].mxu1 }
 0x16e   : > { %1380 = vst.msk [vmem:[#allocation2 + $0x168] sm:$0xff] %vm1335_vm3, %v989_v11  ;;  %2064 = vst.msk [vmem:[#allocation3 + $0x68] sm:$0xff] %vm1335_vm3, %v1802_v12 }
 0x170   : > { %v993_v13 = vpop.f32.mrb[46].mxu0  ;;  %v1806_v14 = vpop.f32.mrb[46].mxu1 }
 0x171   : > { %1381 = vst [vmem:[#allocation2 + $0x170] sm:$0xff] %v993_v13  ;;  %2065 = vst [vmem:[#allocation3 + $0x70] sm:$0xff] %v1806_v14  ;;  %v995_v15 = vpop.f32.mrb[47].mxu0  ;;  %v1808_v16 = vpop.f32.mrb[47].mxu1 }
 0x172   : > { %1382 = vst.msk [vmem:[#allocation2 + $0x178] sm:$0xff] %vm1335_vm3, %v995_v15  ;;  %2066 = vst.msk [vmem:[#allocation3 + $0x78] sm:$0xff] %vm1335_vm3, %v1808_v16 }
 0x174   : > { %v999_v17 = vpop.f32.mrb[48].mxu0  ;;  %v1812_v18 = vpop.f32.mrb[48].mxu1 }
 0x175   : > { %1383 = vst [vmem:[#allocation2 + $0x180] sm:$0xff] %v999_v17  ;;  %2067 = vst [vmem:[#allocation3 + $0x80] sm:$0xff] %v1812_v18  ;;  %v1001_v19 = vpop.f32.mrb[49].mxu0  ;;  %v1814_v20 = vpop.f32.mrb[49].mxu1 }
 0x176   : > { %1384 = vst.msk [vmem:[#allocation2 + $0x188] sm:$0xff] %vm1335_vm3, %v1001_v19  ;;  %2068 = vst.msk [vmem:[#allocation3 + $0x88] sm:$0xff] %vm1335_vm3, %v1814_v20 }
 0x178   : > { %v1005_v21 = vpop.f32.mrb[50].mxu0  ;;  %v1818_v22 = vpop.f32.mrb[50].mxu1 }
 0x179   : > { %1385 = vst [vmem:[#allocation2 + $0x190] sm:$0xff] %v1005_v21  ;;  %2069 = vst [vmem:[#allocation3 + $0x90] sm:$0xff] %v1818_v22  ;;  %v1007_v23 = vpop.f32.mrb[51].mxu0  ;;  %v1820_v24 = vpop.f32.mrb[51].mxu1 }
 0x17a   : > { %1386 = vst.msk [vmem:[#allocation2 + $0x198] sm:$0xff] %vm1335_vm3, %v1007_v23  ;;  %2070 = vst.msk [vmem:[#allocation3 + $0x98] sm:$0xff] %vm1335_vm3, %v1820_v24 }
 0x17c   : > { %v1011_v25 = vpop.f32.mrb[52].mxu0  ;;  %v1824_v26 = vpop.f32.mrb[52].mxu1 }
 0x17d   : > { %1387 = vst [vmem:[#allocation2 + $0x1a0] sm:$0xff] %v1011_v25  ;;  %2071 = vst [vmem:[#allocation3 + $0xa0] sm:$0xff] %v1824_v26  ;;  %v1013_v27 = vpop.f32.mrb[53].mxu0  ;;  %v1826_v28 = vpop.f32.mrb[53].mxu1 }
 0x17e   : > { %1388 = vst.msk [vmem:[#allocation2 + $0x1a8] sm:$0xff] %vm1335_vm3, %v1013_v27  ;;  %2072 = vst.msk [vmem:[#allocation3 + $0xa8] sm:$0xff] %vm1335_vm3, %v1826_v28 }
 0x180   : > { %v1017_v29 = vpop.f32.mrb[54].mxu0  ;;  %v1830_v30 = vpop.f32.mrb[54].mxu1 }
 0x181   : > { %1389 = vst [vmem:[#allocation2 + $0x1b0] sm:$0xff] %v1017_v29  ;;  %2073 = vst [vmem:[#allocation3 + $0xb0] sm:$0xff] %v1830_v30  ;;  %v1019_v8 = vpop.f32.mrb[55].mxu0  ;;  %v1832_v31 = vpop.f32.mrb[55].mxu1 }
 0x182   : > { %1390 = vst.msk [vmem:[#allocation2 + $0x1b8] sm:$0xff] %vm1335_vm3, %v1019_v8  ;;  %2074 = vst.msk [vmem:[#allocation3 + $0xb8] sm:$0xff] %vm1335_vm3, %v1832_v31 }
 0x184   : > { %v1023_v32 = vpop.f32.mrb[56].mxu0  ;;  %v1836_v33 = vpop.f32.mrb[56].mxu1 }
 0x185   : > { %1391 = vst [vmem:[#allocation2 + $0x1c0] sm:$0xff] %v1023_v32  ;;  %2075 = vst [vmem:[#allocation3 + $0xc0] sm:$0xff] %v1836_v33  ;;  %v1025_v34 = vpop.f32.mrb[57].mxu0  ;;  %v1838_v35 = vpop.f32.mrb[57].mxu1 }
 0x186   : > { %1392 = vst.msk [vmem:[#allocation2 + $0x1c8] sm:$0xff] %vm1335_vm3, %v1025_v34  ;;  %2076 = vst.msk [vmem:[#allocation3 + $0xc8] sm:$0xff] %vm1335_vm3, %v1838_v35 }
 0x188   : > { %v1029_v36 = vpop.f32.mrb[58].mxu0  ;;  %v1842_v37 = vpop.f32.mrb[58].mxu1 }
 0x189   : > { %1393 = vst [vmem:[#allocation2 + $0x1d0] sm:$0xff] %v1029_v36  ;;  %2077 = vst [vmem:[#allocation3 + $0xd0] sm:$0xff] %v1842_v37  ;;  %v1031_v38 = vpop.f32.mrb[59].mxu0  ;;  %v1844_v39 = vpop.f32.mrb[59].mxu1 }
 0x18a   : > { %1394 = vst.msk [vmem:[#allocation2 + $0x1d8] sm:$0xff] %vm1335_vm3, %v1031_v38  ;;  %2078 = vst.msk [vmem:[#allocation3 + $0xd8] sm:$0xff] %vm1335_vm3, %v1844_v39 }
 0x18c   : > { %v1035_v40 = vpop.f32.mrb[60].mxu0  ;;  %v1848_v41 = vpop.f32.mrb[60].mxu1 }
 0x18d   : > { %1395 = vst [vmem:[#allocation2 + $0x1e0] sm:$0xff] %v1035_v40  ;;  %2079 = vst [vmem:[#allocation3 + $0xe0] sm:$0xff] %v1848_v41  ;;  %v1037_v42 = vpop.f32.mrb[61].mxu0  ;;  %v1850_v43 = vpop.f32.mrb[61].mxu1 }
 0x18e   : > { %1396 = vst.msk [vmem:[#allocation2 + $0x1e8] sm:$0xff] %vm1335_vm3, %v1037_v42  ;;  %2080 = vst.msk [vmem:[#allocation3 + $0xe8] sm:$0xff] %vm1335_vm3, %v1850_v43 }
 0x190   : > { %v1041_v44 = vpop.f32.mrb[62].mxu0  ;;  %v1854_v45 = vpop.f32.mrb[62].mxu1 }
 0x191   : > { %1397 = vst [vmem:[#allocation2 + $0x1f0] sm:$0xff] %v1041_v44  ;;  %2081 = vst [vmem:[#allocation3 + $0xf0] sm:$0xff] %v1854_v45  ;;  %v1043_v46 = vpop.f32.mrb[63].mxu0  ;;  %v1856_v47 = vpop.f32.mrb[63].mxu1 }
 0x192   : > { %1398 = vst.msk [vmem:[#allocation2 + $0x1f8] sm:$0xff] %vm1335_vm3, %v1043_v46  ;;  %2082 = vst.msk [vmem:[#allocation3 + $0xf8] sm:$0xff] %vm1335_vm3, %v1856_v47 }
 0x194   : > { %v1047_v48 = vpop.f32.mrb[64].mxu0  ;;  %v1860_v49 = vpop.f32.mrb[64].mxu1 }
 0x195   : > { %1399 = vst [vmem:[#allocation2 + $0x200] sm:$0xff] %v1047_v48  ;;  %2083 = vst [vmem:[#allocation3 + $0x100] sm:$0xff] %v1860_v49  ;;  %v1049_v50 = vpop.f32.mrb[65].mxu0  ;;  %v1862_v51 = vpop.f32.mrb[65].mxu1 }
 0x196   : > { %1400 = vst.msk [vmem:[#allocation2 + $0x208] sm:$0xff] %vm1335_vm3, %v1049_v50  ;;  %2084 = vst.msk [vmem:[#allocation3 + $0x108] sm:$0xff] %vm1335_vm3, %v1862_v51 }
 0x198   : > { %v1053_v52 = vpop.f32.mrb[66].mxu0  ;;  %v1866_v53 = vpop.f32.mrb[66].mxu1 }
 0x199   : > { %1401 = vst [vmem:[#allocation2 + $0x210] sm:$0xff] %v1053_v52  ;;  %2085 = vst [vmem:[#allocation3 + $0x110] sm:$0xff] %v1866_v53  ;;  %v1055_v54 = vpop.f32.mrb[67].mxu0  ;;  %v1868_v55 = vpop.f32.mrb[67].mxu1 }
 0x19a   : > { %1402 = vst.msk [vmem:[#allocation2 + $0x218] sm:$0xff] %vm1335_vm3, %v1055_v54  ;;  %2086 = vst.msk [vmem:[#allocation3 + $0x118] sm:$0xff] %vm1335_vm3, %v1868_v55 }
 0x19c   : > { %v1059_v56 = vpop.f32.mrb[68].mxu0  ;;  %v1872_v57 = vpop.f32.mrb[68].mxu1 }
 0x19d   : > { %1403 = vst [vmem:[#allocation2 + $0x220] sm:$0xff] %v1059_v56  ;;  %2087 = vst [vmem:[#allocation3 + $0x120] sm:$0xff] %v1872_v57  ;;  %v1061_v58 = vpop.f32.mrb[69].mxu0  ;;  %v1874_v59 = vpop.f32.mrb[69].mxu1 }
 0x19e   : > { %1404 = vst.msk [vmem:[#allocation2 + $0x228] sm:$0xff] %vm1335_vm3, %v1061_v58  ;;  %2088 = vst.msk [vmem:[#allocation3 + $0x128] sm:$0xff] %vm1335_vm3, %v1874_v59 }
 0x1a0   : > { %v1065_v60 = vpop.f32.mrb[70].mxu0  ;;  %v1878_v61 = vpop.f32.mrb[70].mxu1 }
 0x1a1   : > { %1405 = vst [vmem:[#allocation2 + $0x230] sm:$0xff] %v1065_v60  ;;  %2089 = vst [vmem:[#allocation3 + $0x130] sm:$0xff] %v1878_v61  ;;  %v1067_v62 = vpop.f32.mrb[71].mxu0  ;;  %v1880_v63 = vpop.f32.mrb[71].mxu1 }
 0x1a2   : > { %1406 = vst.msk [vmem:[#allocation2 + $0x238] sm:$0xff] %vm1335_vm3, %v1067_v62  ;;  %2090 = vst.msk [vmem:[#allocation3 + $0x138] sm:$0xff] %vm1335_vm3, %v1880_v63 }
 0x1a4   : > { %v1071_v0 = vpop.f32.mrb[72].mxu0  ;;  %v1884_v1 = vpop.f32.mrb[72].mxu1 }
 0x1a5   : > { %1407 = vst [vmem:[#allocation2 + $0x240] sm:$0xff] %v1071_v0  ;;  %2091 = vst [vmem:[#allocation3 + $0x140] sm:$0xff] %v1884_v1  ;;  %v1073_v2 = vpop.f32.mrb[73].mxu0  ;;  %v1886_v3 = vpop.f32.mrb[73].mxu1 }
 0x1a6   : > { %1408 = vst.msk [vmem:[#allocation2 + $0x248] sm:$0xff] %vm1335_vm3, %v1073_v2  ;;  %2092 = vst.msk [vmem:[#allocation3 + $0x148] sm:$0xff] %vm1335_vm3, %v1886_v3 }
 0x1a8   : > { %v1077_v4 = vpop.f32.mrb[74].mxu0  ;;  %v1890_v5 = vpop.f32.mrb[74].mxu1 }
 0x1a9   : > { %1409 = vst [vmem:[#allocation2 + $0x250] sm:$0xff] %v1077_v4  ;;  %2093 = vst [vmem:[#allocation3 + $0x150] sm:$0xff] %v1890_v5  ;;  %v1079_v6 = vpop.f32.mrb[75].mxu0  ;;  %v1892_v7 = vpop.f32.mrb[75].mxu1 }
 0x1aa   : > { %1410 = vst.msk [vmem:[#allocation2 + $0x258] sm:$0xff] %vm1335_vm3, %v1079_v6  ;;  %2094 = vst.msk [vmem:[#allocation3 + $0x158] sm:$0xff] %vm1335_vm3, %v1892_v7 }
 0x1ac   : > { %v1083_v9 = vpop.f32.mrb[76].mxu0  ;;  %v1896_v10 = vpop.f32.mrb[76].mxu1 }
 0x1ad   : > { %1411 = vst [vmem:[#allocation2 + $0x260] sm:$0xff] %v1083_v9  ;;  %2095 = vst [vmem:[#allocation3 + $0x160] sm:$0xff] %v1896_v10  ;;  %v1085_v11 = vpop.f32.mrb[77].mxu0  ;;  %v1898_v12 = vpop.f32.mrb[77].mxu1 }
 0x1ae   : > { %1412 = vst.msk [vmem:[#allocation2 + $0x268] sm:$0xff] %vm1335_vm3, %v1085_v11  ;;  %2096 = vst.msk [vmem:[#allocation3 + $0x168] sm:$0xff] %vm1335_vm3, %v1898_v12 }
 0x1b0   : > { %v1089_v13 = vpop.f32.mrb[78].mxu0  ;;  %v1902_v14 = vpop.f32.mrb[78].mxu1 }
 0x1b1   : > { %1413 = vst [vmem:[#allocation2 + $0x270] sm:$0xff] %v1089_v13  ;;  %2097 = vst [vmem:[#allocation3 + $0x170] sm:$0xff] %v1902_v14  ;;  %v1091_v15 = vpop.f32.mrb[79].mxu0  ;;  %v1904_v16 = vpop.f32.mrb[79].mxu1 }
 0x1b2   : > { %1414 = vst.msk [vmem:[#allocation2 + $0x278] sm:$0xff] %vm1335_vm3, %v1091_v15  ;;  %2098 = vst.msk [vmem:[#allocation3 + $0x178] sm:$0xff] %vm1335_vm3, %v1904_v16 }
 0x1b4   : > { %v1095_v17 = vpop.f32.mrb[80].mxu0  ;;  %v1908_v18 = vpop.f32.mrb[80].mxu1 }
 0x1b5   : > { %1415 = vst [vmem:[#allocation2 + $0x280] sm:$0xff] %v1095_v17  ;;  %2099 = vst [vmem:[#allocation3 + $0x180] sm:$0xff] %v1908_v18  ;;  %v1097_v19 = vpop.f32.mrb[81].mxu0  ;;  %v1910_v20 = vpop.f32.mrb[81].mxu1 }
 0x1b6   : > { %1416 = vst.msk [vmem:[#allocation2 + $0x288] sm:$0xff] %vm1335_vm3, %v1097_v19  ;;  %2100 = vst.msk [vmem:[#allocation3 + $0x188] sm:$0xff] %vm1335_vm3, %v1910_v20 }
 0x1b8   : > { %v1101_v21 = vpop.f32.mrb[82].mxu0  ;;  %v1914_v22 = vpop.f32.mrb[82].mxu1 }
 0x1b9   : > { %1417 = vst [vmem:[#allocation2 + $0x290] sm:$0xff] %v1101_v21  ;;  %2101 = vst [vmem:[#allocation3 + $0x190] sm:$0xff] %v1914_v22  ;;  %v1103_v23 = vpop.f32.mrb[83].mxu0  ;;  %v1916_v24 = vpop.f32.mrb[83].mxu1 }
 0x1ba   : > { %1418 = vst.msk [vmem:[#allocation2 + $0x298] sm:$0xff] %vm1335_vm3, %v1103_v23  ;;  %2102 = vst.msk [vmem:[#allocation3 + $0x198] sm:$0xff] %vm1335_vm3, %v1916_v24 }
 0x1bc   : > { %v1107_v25 = vpop.f32.mrb[84].mxu0  ;;  %v1920_v26 = vpop.f32.mrb[84].mxu1 }
 0x1bd   : > { %1419 = vst [vmem:[#allocation2 + $0x2a0] sm:$0xff] %v1107_v25  ;;  %2103 = vst [vmem:[#allocation3 + $0x1a0] sm:$0xff] %v1920_v26  ;;  %v1109_v27 = vpop.f32.mrb[85].mxu0  ;;  %v1922_v28 = vpop.f32.mrb[85].mxu1 }
 0x1be   : > { %1420 = vst.msk [vmem:[#allocation2 + $0x2a8] sm:$0xff] %vm1335_vm3, %v1109_v27  ;;  %2104 = vst.msk [vmem:[#allocation3 + $0x1a8] sm:$0xff] %vm1335_vm3, %v1922_v28 }
 0x1c0   : > { %v1113_v29 = vpop.f32.mrb[86].mxu0  ;;  %v1926_v30 = vpop.f32.mrb[86].mxu1 }
 0x1c1   : > { %1421 = vst [vmem:[#allocation2 + $0x2b0] sm:$0xff] %v1113_v29  ;;  %2105 = vst [vmem:[#allocation3 + $0x1b0] sm:$0xff] %v1926_v30  ;;  %v1115_v8 = vpop.f32.mrb[87].mxu0  ;;  %v1928_v31 = vpop.f32.mrb[87].mxu1 }
 0x1c2   : > { %1422 = vst.msk [vmem:[#allocation2 + $0x2b8] sm:$0xff] %vm1335_vm3, %v1115_v8  ;;  %2106 = vst.msk [vmem:[#allocation3 + $0x1b8] sm:$0xff] %vm1335_vm3, %v1928_v31 }
 0x1c4   : > { %v1119_v32 = vpop.f32.mrb[88].mxu0  ;;  %v1932_v33 = vpop.f32.mrb[88].mxu1 }
 0x1c5   : > { %1423 = vst [vmem:[#allocation2 + $0x2c0] sm:$0xff] %v1119_v32  ;;  %2107 = vst [vmem:[#allocation3 + $0x1c0] sm:$0xff] %v1932_v33  ;;  %v1121_v34 = vpop.f32.mrb[89].mxu0  ;;  %v1934_v35 = vpop.f32.mrb[89].mxu1 }
 0x1c6   : > { %1424 = vst.msk [vmem:[#allocation2 + $0x2c8] sm:$0xff] %vm1335_vm3, %v1121_v34  ;;  %2108 = vst.msk [vmem:[#allocation3 + $0x1c8] sm:$0xff] %vm1335_vm3, %v1934_v35 }
 0x1c8   : > { %v1125_v36 = vpop.f32.mrb[90].mxu0  ;;  %v1938_v37 = vpop.f32.mrb[90].mxu1 }
 0x1c9   : > { %1425 = vst [vmem:[#allocation2 + $0x2d0] sm:$0xff] %v1125_v36  ;;  %2109 = vst [vmem:[#allocation3 + $0x1d0] sm:$0xff] %v1938_v37  ;;  %v1127_v38 = vpop.f32.mrb[91].mxu0  ;;  %v1940_v39 = vpop.f32.mrb[91].mxu1 }
 0x1ca   : > { %1426 = vst.msk [vmem:[#allocation2 + $0x2d8] sm:$0xff] %vm1335_vm3, %v1127_v38  ;;  %2110 = vst.msk [vmem:[#allocation3 + $0x1d8] sm:$0xff] %vm1335_vm3, %v1940_v39 }
 0x1cc   : > { %v1131_v40 = vpop.f32.mrb[92].mxu0  ;;  %v1944_v41 = vpop.f32.mrb[92].mxu1 }
 0x1cd   : > { %1427 = vst [vmem:[#allocation2 + $0x2e0] sm:$0xff] %v1131_v40  ;;  %2111 = vst [vmem:[#allocation3 + $0x1e0] sm:$0xff] %v1944_v41  ;;  %v1133_v42 = vpop.f32.mrb[93].mxu0  ;;  %v1946_v43 = vpop.f32.mrb[93].mxu1 }
 0x1ce   : > { %1428 = vst.msk [vmem:[#allocation2 + $0x2e8] sm:$0xff] %vm1335_vm3, %v1133_v42  ;;  %2112 = vst.msk [vmem:[#allocation3 + $0x1e8] sm:$0xff] %vm1335_vm3, %v1946_v43 }
 0x1d0   : > { %v1137_v44 = vpop.f32.mrb[94].mxu0  ;;  %v1950_v45 = vpop.f32.mrb[94].mxu1 }
 0x1d1   : > { %1429 = vst [vmem:[#allocation2 + $0x2f0] sm:$0xff] %v1137_v44  ;;  %2113 = vst [vmem:[#allocation3 + $0x1f0] sm:$0xff] %v1950_v45  ;;  %v1139_v46 = vpop.f32.mrb[95].mxu0  ;;  %v1952_v47 = vpop.f32.mrb[95].mxu1 }
 0x1d2   : > { %1430 = vst.msk [vmem:[#allocation2 + $0x2f8] sm:$0xff] %vm1335_vm3, %v1139_v46  ;;  %2114 = vst.msk [vmem:[#allocation3 + $0x1f8] sm:$0xff] %vm1335_vm3, %v1952_v47 }
 0x1d4   : > { %v1143_v48 = vpop.f32.mrb[96].mxu0  ;;  %v1956_v49 = vpop.f32.mrb[96].mxu1 }
 0x1d5   : > { %1431 = vst [vmem:[#allocation2 + $0x300] sm:$0xff] %v1143_v48  ;;  %2115 = vst [vmem:[#allocation3 + $0x200] sm:$0xff] %v1956_v49  ;;  %v1145_v50 = vpop.f32.mrb[97].mxu0  ;;  %v1958_v51 = vpop.f32.mrb[97].mxu1 }
 0x1d6   : > { %1432 = vst.msk [vmem:[#allocation2 + $0x308] sm:$0xff] %vm1335_vm3, %v1145_v50  ;;  %2116 = vst.msk [vmem:[#allocation3 + $0x208] sm:$0xff] %vm1335_vm3, %v1958_v51 }
 0x1d8   : > { %v1149_v52 = vpop.f32.mrb[98].mxu0  ;;  %v1962_v53 = vpop.f32.mrb[98].mxu1 }
 0x1d9   : > { %1433 = vst [vmem:[#allocation2 + $0x310] sm:$0xff] %v1149_v52  ;;  %2117 = vst [vmem:[#allocation3 + $0x210] sm:$0xff] %v1962_v53  ;;  %v1151_v54 = vpop.f32.mrb[99].mxu0  ;;  %v1964_v55 = vpop.f32.mrb[99].mxu1 }
 0x1da   : > { %1434 = vst.msk [vmem:[#allocation2 + $0x318] sm:$0xff] %vm1335_vm3, %v1151_v54  ;;  %2118 = vst.msk [vmem:[#allocation3 + $0x218] sm:$0xff] %vm1335_vm3, %v1964_v55 }
 0x1dc   : > { %v1155_v56 = vpop.f32.mrb[100].mxu0  ;;  %v1968_v57 = vpop.f32.mrb[100].mxu1 }
 0x1dd   : > { %1435 = vst [vmem:[#allocation2 + $0x320] sm:$0xff] %v1155_v56  ;;  %2119 = vst [vmem:[#allocation3 + $0x220] sm:$0xff] %v1968_v57  ;;  %v1157_v58 = vpop.f32.mrb[101].mxu0  ;;  %v1970_v59 = vpop.f32.mrb[101].mxu1 }
 0x1de   : > { %1436 = vst.msk [vmem:[#allocation2 + $0x328] sm:$0xff] %vm1335_vm3, %v1157_v58  ;;  %2120 = vst.msk [vmem:[#allocation3 + $0x228] sm:$0xff] %vm1335_vm3, %v1970_v59 }
 0x1e0   : > { %v1161_v60 = vpop.f32.mrb[102].mxu0  ;;  %v1974_v61 = vpop.f32.mrb[102].mxu1 }
 0x1e1   : > { %1437 = vst [vmem:[#allocation2 + $0x330] sm:$0xff] %v1161_v60  ;;  %2121 = vst [vmem:[#allocation3 + $0x230] sm:$0xff] %v1974_v61  ;;  %v1163_v62 = vpop.f32.mrb[103].mxu0  ;;  %v1976_v63 = vpop.f32.mrb[103].mxu1 }
 0x1e2   : > { %1438 = vst.msk [vmem:[#allocation2 + $0x338] sm:$0xff] %vm1335_vm3, %v1163_v62  ;;  %2122 = vst.msk [vmem:[#allocation3 + $0x238] sm:$0xff] %vm1335_vm3, %v1976_v63 }
 0x1e4   : > { %v1167_v0 = vpop.f32.mrb[104].mxu0  ;;  %v1980_v1 = vpop.f32.mrb[104].mxu1 }
 0x1e5   : > { %1439 = vst [vmem:[#allocation2 + $0x340] sm:$0xff] %v1167_v0  ;;  %2123 = vst [vmem:[#allocation3 + $0x240] sm:$0xff] %v1980_v1  ;;  %v1169_v2 = vpop.f32.mrb[105].mxu0  ;;  %v1982_v3 = vpop.f32.mrb[105].mxu1 }
 0x1e6   : > { %1440 = vst.msk [vmem:[#allocation2 + $0x348] sm:$0xff] %vm1335_vm3, %v1169_v2  ;;  %2124 = vst.msk [vmem:[#allocation3 + $0x248] sm:$0xff] %vm1335_vm3, %v1982_v3 }
 0x1e8   : > { %v1173_v4 = vpop.f32.mrb[106].mxu0  ;;  %v1986_v5 = vpop.f32.mrb[106].mxu1 }
 0x1e9   : > { %1441 = vst [vmem:[#allocation2 + $0x350] sm:$0xff] %v1173_v4  ;;  %2125 = vst [vmem:[#allocation3 + $0x250] sm:$0xff] %v1986_v5  ;;  %v1175_v6 = vpop.f32.mrb[107].mxu0  ;;  %v1988_v7 = vpop.f32.mrb[107].mxu1 }
 0x1ea   : > { %1442 = vst.msk [vmem:[#allocation2 + $0x358] sm:$0xff] %vm1335_vm3, %v1175_v6  ;;  %2126 = vst.msk [vmem:[#allocation3 + $0x258] sm:$0xff] %vm1335_vm3, %v1988_v7 }
 0x1ec   : > { %v1179_v9 = vpop.f32.mrb[108].mxu0  ;;  %v1992_v10 = vpop.f32.mrb[108].mxu1 }
 0x1ed   : > { %1443 = vst [vmem:[#allocation2 + $0x360] sm:$0xff] %v1179_v9  ;;  %2127 = vst [vmem:[#allocation3 + $0x260] sm:$0xff] %v1992_v10  ;;  %v1181_v11 = vpop.f32.mrb[109].mxu0  ;;  %v1994_v12 = vpop.f32.mrb[109].mxu1 }
 0x1ee   : > { %1444 = vst.msk [vmem:[#allocation2 + $0x368] sm:$0xff] %vm1335_vm3, %v1181_v11  ;;  %2128 = vst.msk [vmem:[#allocation3 + $0x268] sm:$0xff] %vm1335_vm3, %v1994_v12 }
 0x1f0   : > { %v1185_v13 = vpop.f32.mrb[110].mxu0  ;;  %v1998_v14 = vpop.f32.mrb[110].mxu1 }
 0x1f1   : > { %1445 = vst [vmem:[#allocation2 + $0x370] sm:$0xff] %v1185_v13  ;;  %2129 = vst [vmem:[#allocation3 + $0x270] sm:$0xff] %v1998_v14  ;;  %v1187_v15 = vpop.f32.mrb[111].mxu0  ;;  %v2000_v16 = vpop.f32.mrb[111].mxu1 }
 0x1f2   : > { %1446 = vst.msk [vmem:[#allocation2 + $0x378] sm:$0xff] %vm1335_vm3, %v1187_v15  ;;  %2130 = vst.msk [vmem:[#allocation3 + $0x278] sm:$0xff] %vm1335_vm3, %v2000_v16 }
 0x1f4   : > { %v1191_v17 = vpop.f32.mrb[112].mxu0  ;;  %v2004_v18 = vpop.f32.mrb[112].mxu1 }
 0x1f5   : > { %1447 = vst [vmem:[#allocation2 + $0x380] sm:$0xff] %v1191_v17  ;;  %2131 = vst [vmem:[#allocation3 + $0x280] sm:$0xff] %v2004_v18  ;;  %v1193_v19 = vpop.f32.mrb[113].mxu0  ;;  %v2006_v20 = vpop.f32.mrb[113].mxu1 }
 0x1f6   : > { %1448 = vst.msk [vmem:[#allocation2 + $0x388] sm:$0xff] %vm1335_vm3, %v1193_v19  ;;  %2132 = vst.msk [vmem:[#allocation3 + $0x288] sm:$0xff] %vm1335_vm3, %v2006_v20 }
 0x1f8   : > { %v1197_v21 = vpop.f32.mrb[114].mxu0  ;;  %v2010_v22 = vpop.f32.mrb[114].mxu1 }
 0x1f9   : > { %1449 = vst [vmem:[#allocation2 + $0x390] sm:$0xff] %v1197_v21  ;;  %2133 = vst [vmem:[#allocation3 + $0x290] sm:$0xff] %v2010_v22  ;;  %v1199_v23 = vpop.f32.mrb[115].mxu0  ;;  %v2012_v24 = vpop.f32.mrb[115].mxu1 }
 0x1fa   : > { %1450 = vst.msk [vmem:[#allocation2 + $0x398] sm:$0xff] %vm1335_vm3, %v1199_v23  ;;  %2134 = vst.msk [vmem:[#allocation3 + $0x298] sm:$0xff] %vm1335_vm3, %v2012_v24 }
 0x1fc   : > { %v1203_v25 = vpop.f32.mrb[116].mxu0  ;;  %v2016_v26 = vpop.f32.mrb[116].mxu1 }
 0x1fd   : > { %1451 = vst [vmem:[#allocation2 + $0x3a0] sm:$0xff] %v1203_v25  ;;  %2135 = vst [vmem:[#allocation3 + $0x2a0] sm:$0xff] %v2016_v26  ;;  %v1205_v27 = vpop.f32.mrb[117].mxu0  ;;  %v2018_v28 = vpop.f32.mrb[117].mxu1 }
 0x1fe   : > { %1452 = vst.msk [vmem:[#allocation2 + $0x3a8] sm:$0xff] %vm1335_vm3, %v1205_v27  ;;  %2136 = vst.msk [vmem:[#allocation3 + $0x2a8] sm:$0xff] %vm1335_vm3, %v2018_v28 }
 0x200   : > { %v1209_v29 = vpop.f32.mrb[118].mxu0  ;;  %v2022_v30 = vpop.f32.mrb[118].mxu1 }
 0x201   : > { %1453 = vst [vmem:[#allocation2 + $0x3b0] sm:$0xff] %v1209_v29  ;;  %2137 = vst [vmem:[#allocation3 + $0x2b0] sm:$0xff] %v2022_v30  ;;  %v1211_v8 = vpop.f32.mrb[119].mxu0  ;;  %v2024_v31 = vpop.f32.mrb[119].mxu1 }
 0x202   : > { %1454 = vst.msk [vmem:[#allocation2 + $0x3b8] sm:$0xff] %vm1335_vm3, %v1211_v8  ;;  %2138 = vst.msk [vmem:[#allocation3 + $0x2b8] sm:$0xff] %vm1335_vm3, %v2024_v31 }
 0x204   : > { %v1215_v32 = vpop.f32.mrb[120].mxu0  ;;  %v2028_v33 = vpop.f32.mrb[120].mxu1 }
 0x205   : > { %1455 = vst [vmem:[#allocation2 + $0x3c0] sm:$0xff] %v1215_v32  ;;  %2139 = vst [vmem:[#allocation3 + $0x2c0] sm:$0xff] %v2028_v33  ;;  %v1217_v34 = vpop.f32.mrb[121].mxu0  ;;  %v2030_v35 = vpop.f32.mrb[121].mxu1 }
 0x206   : > { %1456 = vst.msk [vmem:[#allocation2 + $0x3c8] sm:$0xff] %vm1335_vm3, %v1217_v34  ;;  %2140 = vst.msk [vmem:[#allocation3 + $0x2c8] sm:$0xff] %vm1335_vm3, %v2030_v35 }
 0x208   : > { %v1221_v36 = vpop.f32.mrb[122].mxu0  ;;  %v2034_v37 = vpop.f32.mrb[122].mxu1 }
 0x209   : > { %1457 = vst [vmem:[#allocation2 + $0x3d0] sm:$0xff] %v1221_v36  ;;  %2141 = vst [vmem:[#allocation3 + $0x2d0] sm:$0xff] %v2034_v37  ;;  %v1223_v38 = vpop.f32.mrb[123].mxu0  ;;  %v2036_v39 = vpop.f32.mrb[123].mxu1 }
 0x20a   : > { %1458 = vst.msk [vmem:[#allocation2 + $0x3d8] sm:$0xff] %vm1335_vm3, %v1223_v38  ;;  %2142 = vst.msk [vmem:[#allocation3 + $0x2d8] sm:$0xff] %vm1335_vm3, %v2036_v39 }
 0x20c   : > { %v1227_v40 = vpop.f32.mrb[124].mxu0  ;;  %v2040_v41 = vpop.f32.mrb[124].mxu1 }
 0x20d   : > { %1459 = vst [vmem:[#allocation2 + $0x3e0] sm:$0xff] %v1227_v40  ;;  %2143 = vst [vmem:[#allocation3 + $0x2e0] sm:$0xff] %v2040_v41  ;;  %v1229_v42 = vpop.f32.mrb[125].mxu0  ;;  %v2042_v43 = vpop.f32.mrb[125].mxu1 }
 0x20e   : > { %1460 = vst.msk [vmem:[#allocation2 + $0x3e8] sm:$0xff] %vm1335_vm3, %v1229_v42  ;;  %2144 = vst.msk [vmem:[#allocation3 + $0x2e8] sm:$0xff] %vm1335_vm3, %v2042_v43 }
 0x210   : > { %v1233_v44 = vpop.f32.mrb[126].mxu0  ;;  %v2046_v45 = vpop.f32.mrb[126].mxu1 }
 0x211   : > { %1461 = vst [vmem:[#allocation2 + $0x3f0] sm:$0xff] %v1233_v44  ;;  %2145 = vst [vmem:[#allocation3 + $0x2f0] sm:$0xff] %v2046_v45  ;;  %v1235_v46 = vpop.f32.mrb[127].mxu0  ;;  %v2048_v47 = vpop.f32.mrb[127].mxu1 }
 0x212   : > { %1462 = vst.msk [vmem:[#allocation2 + $0x3f8] sm:$0xff] %vm1335_vm3, %v1235_v46  ;;  %2146 = vst.msk [vmem:[#allocation3 + $0x2f8] sm:$0xff] %vm1335_vm3, %v2048_v47 }
 0x213 PF: > { %v2185_v48 = vld [vmem:[#allocation2 + $0x8] sm:$0xff]  ;;  %v2187_v49 = vld [vmem:[#allocation2 + $0x18] sm:$0xff]  ;;  %v2184_v53 = vld [vmem:[#allocation2] sm:$0xff]  ;;  %v6204_v55 = vmov 0.0   ;;  %vm2320_vm4 = vcmask 392192   ;;  %vm2204_vm5 = vcmask 654336  }
 0x214   : > { %v2309_v50 = vld [vmem:[#allocation3 + $0x8] sm:$0xff]  ;;  %v5407_v51 = vpack.c.bf16 %v2187_v49, %v2185_v48  ;;  %v2311_v52 = vld [vmem:[#allocation3 + $0x18] sm:$0xff]  ;;  %v2186_v54 = vld [vmem:[#allocation2 + $0x10] sm:$0xff]  ;;  %2397 = vmatprep.mubr.f32.mxu1 %v6204_v55  ;;  %2281 = vmatprep.mubr.f32.mxu0 %v6204_v55  ;;  %s5021_s12 = sshll.u32 %s6349_s30, 4  ;;  %s9370_s26 = sand.u32 1, %s6177_s25   ;;  %s8798_s12 = int_to_ptr.vmem [resolvable:$true] %s5021_s12 }
 0x215   : > { %v5427_v56 = vpack.c.bf16 %v2311_v52, %v2309_v50  ;;  %v5409_v57 = vpack.c.bf16 %v2186_v54, %v2184_v53  ;;  %v2308_v58 = vld [vmem:[#allocation3] sm:$0xff]  ;;  %v2310_v59 = vld [vmem:[#allocation3 + $0x10] sm:$0xff]  ;;  %v2189_v60 = vld [vmem:[#allocation2 + $0x28] sm:$0xff]  ;;  %s5006_s14 = scalar_lea.sflag [#allocation5], %s9370_s26  ;;  %s6107_s7 = scalar_lea.vmem %s8798_s12, 32 }
 0x216   : > { %5408 = vmatprep.subr.bf16.mxu0 %v5407_v51  ;;  %v5429_v61 = vpack.c.bf16 %v2310_v59, %v2308_v58  ;;  %v2191_v62 = vld [vmem:[#allocation2 + $0x38] sm:$0xff]  ;;  %v2313_v63 = vld [vmem:[#allocation3 + $0x28] sm:$0xff]  ;;  %v2188_v3 = vld [vmem:[#allocation2 + $0x20] sm:$0xff]  ;;  %p6108_p2 = scmp.ne.s32.totalorder %s8798_s12, %s6107_s7 }
 0x217   : > { %v2315_v0 = vld [vmem:[#allocation3 + $0x38] sm:$0xff]  ;;  %5428 = vmatprep.subr.bf16.mxu1 %v5427_v56  ;;  %5410 = vmatpush1.bf16.msra.mxu0 %v5409_v57  ;;  %v5411_v1 = vpack.c.bf16 %v2191_v62, %v2189_v60  ;;  %v2190_v4 = vld [vmem:[#allocation2 + $0x30] sm:$0xff]  ;;  %v2312_v5 = vld [vmem:[#allocation3 + $0x20] sm:$0xff] }
 0x218   : > { %v5431_v2 = vpack.c.bf16 %v2315_v0, %v2313_v63  ;;  %5430 = vmatpush1.bf16.msra.mxu1 %v5429_v61  ;;  %v5413_v6 = vpack.c.bf16 %v2190_v4, %v2188_v3  ;;  %v2314_v7 = vld [vmem:[#allocation3 + $0x30] sm:$0xff]  ;;  %v2193_v9 = vld [vmem:[#allocation2 + $0x48] sm:$0xff]  ;;  %v2195_v10 = vld [vmem:[#allocation2 + $0x58] sm:$0xff]  ;;  %p6109_p4 = pnand %p6108_p2, %p6296_p3 }
 0x219   : > { %5412 = vmatprep.subr.bf16.mxu0 %v5411_v1  ;;  %v5433_v11 = vpack.c.bf16 %v2314_v7, %v2312_v5  ;;  %v5415_v12 = vpack.c.bf16 %v2195_v10, %v2193_v9  ;;  %v2317_v13 = vld [vmem:[#allocation3 + $0x48] sm:$0xff]  ;;  %v2319_v14 = vld [vmem:[#allocation3 + $0x58] sm:$0xff]  ;;  %v2192_v15 = vld [vmem:[#allocation2 + $0x40] sm:$0xff] }
 0x21a   : > { %5432 = vmatprep.subr.bf16.mxu1 %v5431_v2  ;;  %v5435_v16 = vpack.c.bf16 %v2319_v14, %v2317_v13  ;;  %v2194_v17 = vld [vmem:[#allocation2 + $0x50] sm:$0xff]  ;;  %v2316_v18 = vld [vmem:[#allocation3 + $0x40] sm:$0xff]  ;;  %v2197_v21 = vld [vmem:[#allocation2 + $0x68] sm:$0xff]  ;;  %p6110_p5 = pneg %p6109_p4 }
 0x21b   : > { %v2318_v19 = vld [vmem:[#allocation3 + $0x50] sm:$0xff]  ;;  %5414 = vmatpush1.bf16.msra.mxu0 %v5413_v6  ;;  %v5417_v20 = vpack.c.bf16 %v2194_v17, %v2192_v15  ;;  %v2199_v22 = vld [vmem:[#allocation2 + $0x78] sm:$0xff]  ;;  %v2426_v23 = vld [vmem:[#allocation2 + $0xa8] sm:$0xff] }
 0x21c   : > { %5434 = vmatpush1.bf16.msra.mxu1 %v5433_v11  ;;  %5416 = vmatprep.subr.bf16.mxu0 %v5415_v12  ;;  %v5437_v24 = vpack.c.bf16 %v2318_v19, %v2316_v18  ;;  %v5419_v25 = vpack.c.bf16 %v2199_v22, %v2197_v21  ;;  %v2428_v26 = vld [vmem:[#allocation2 + $0xb8] sm:$0xff]  ;;  %v2196_v27 = vld [vmem:[#allocation2 + $0x60] sm:$0xff]  ;;  %v2198_v28 = vld [vmem:[#allocation2 + $0x70] sm:$0xff] }
 0x21d   : > { %5436 = vmatprep.subr.bf16.mxu1 %v5435_v16  ;;  %v5439_v29 = vpack.c.bf16 %v2428_v26, %v2426_v23  ;;  %v2425_v30 = vld [vmem:[#allocation2 + $0xa0] sm:$0xff]  ;;  %v2427_v8 = vld [vmem:[#allocation2 + $0xb0] sm:$0xff]  ;;  %v2201_v31 = vld [vmem:[#allocation2 + $0x88] sm:$0xff]  ;;  %v5421_v34 = vpack.c.bf16 %v2198_v28, %v2196_v27 }
 0x21e   : > { %v2203_v32 = vld [vmem:[#allocation2 + $0x98] sm:$0xff]  ;;  %v2430_v33 = vld [vmem:[#allocation2 + $0xc8] sm:$0xff]  ;;  %v6959_v36 = vld [vmem:[%s6347_s29] sm:$0xff]  ;;  %v5441_v37 = vpack.c.bf16 %v2427_v8, %v2425_v30 }
 0x21f   : > { %5418 = vmatpush1.bf16.msra.mxu0 %v5417_v20  ;;  %v2432_v35 = vld [vmem:[#allocation2 + $0xd8] sm:$0xff]  ;;  %v5423_v38 = vpack.c.bf16 %v2203_v32, %v2201_v31  ;;  %v2200_v39 = vld [vmem:[#allocation2 + $0x80] sm:$0xff]  ;;  %v2202_v40 = vld [vmem:[#allocation2 + $0x90] sm:$0xff] }
 0x220   : > { %5438 = vmatpush1.bf16.msra.mxu1 %v5437_v24  ;;  %5420 = vmatprep.subr.bf16.mxu0 %v5419_v25  ;;  %v5443_v41 = vpack.c.bf16 %v2432_v35, %v2430_v33  ;;  %v2429_v42 = vld [vmem:[#allocation2 + $0xc0] sm:$0xff]  ;;  %v2431_v43 = vld [vmem:[#allocation2 + $0xd0] sm:$0xff]  ;;  %v2434_v44 = vld [vmem:[#allocation2 + $0xe8] sm:$0xff]  ;;  %v5425_v48 = vpack.c.bf16 %v2202_v40, %v2200_v39 }
 0x221   : > { %5440 = vmatprep.subr.bf16.mxu1 %v5439_v29  ;;  %v2436_v45 = vld [vmem:[#allocation2 + $0xf8] sm:$0xff]  ;;  %v2538_v46 = vld [vmem:[#allocation3 + $0x68] sm:$0xff]  ;;  %v5445_v49 = vpack.c.bf16 %v2431_v43, %v2429_v42  ;;  %v2537_v52 = vld [vmem:[#allocation3 + $0x60] sm:$0xff] }
 0x222   : > { %v2540_v47 = vld [vmem:[#allocation3 + $0x78] sm:$0xff]  ;;  %v6964_v50 = vld [vmem:[%s6347_s29 + $0x8] sm:$0xff]  ;;  %v2539_v53 = vld [vmem:[#allocation3 + $0x70] sm:$0xff]  ;;  %v5447_v54 = vpack.c.bf16 %v2436_v45, %v2434_v44 }
 0x223   : > { %5422 = vmatpush1.bf16.msra.mxu0 %v5421_v34  ;;  %5313 = vmatmul.mubr.msk.f32.vlgmr.msra.gmra.mrb[0].mxu1 %vm2320_vm4, %v6959_v36  ;;  %v5459_v51 = vpack.c.bf16 %v2540_v47, %v2538_v46  ;;  %v2433_v56 = vld [vmem:[#allocation2 + $0xe0] sm:$0xff]  ;;  %v2435_v57 = vld [vmem:[#allocation2 + $0xf0] sm:$0xff]  ;;  %v2438_v58 = vld [vmem:[#allocation2 + $0x108] sm:$0xff]  ;;  %v5461_v63 = vpack.c.bf16 %v2539_v53, %v2537_v52 }
 0x224   : > { %5442 = vmatpush1.bf16.msra.mxu1 %v5441_v37  ;;  %5424 = vmatprep.subr.bf16.mxu0 %v5423_v38  ;;  %v2440_v59 = vld [vmem:[#allocation2 + $0x118] sm:$0xff]  ;;  %v2542_v60 = vld [vmem:[#allocation3 + $0x88] sm:$0xff]  ;;  %v6968_v62 = vld [vmem:[%s6342_s22] sm:$0xff]  ;;  %v5449_v0 = vpack.c.bf16 %v2435_v57, %v2433_v56 }
 0x225   : > { %5444 = vmatprep.subr.bf16.mxu1 %v5443_v41  ;;  %2403 = vmatprep.mubr.f32.mxu1 %v6204_v55  ;;  %v2544_v61 = vld [vmem:[#allocation3 + $0x98] sm:$0xff]  ;;  %v2437_v1 = vld [vmem:[#allocation2 + $0x100] sm:$0xff]  ;;  %v2543_v4 = vld [vmem:[#allocation3 + $0x90] sm:$0xff]  ;;  %v5451_v5 = vpack.c.bf16 %v2440_v59, %v2438_v58 }
 0x226   : > { %v5463_v2 = vpack.c.bf16 %v2544_v61, %v2542_v60  ;;  %v2541_v3 = vld [vmem:[#allocation3 + $0x80] sm:$0xff]  ;;  %v2439_v6 = vld [vmem:[#allocation2 + $0x110] sm:$0xff]  ;;  %v2546_v7 = vld [vmem:[#allocation3 + $0xa8] sm:$0xff] }
 0x227   : > { %5426 = vmatpush1.bf16.msra.mxu0 %v5425_v48  ;;  %5314 = vmatmul.mubr.msk.f32.gmra.mrb[2].mxu1 %vm2320_vm4, %v6964_v50  ;;  %v2548_v9 = vld [vmem:[#allocation3 + $0xb8] sm:$0xff]  ;;  %v6976_v10 = vld [vmem:[%s6347_s29 + $0x10] sm:$0xff]  ;;  %v2442_v11 = vld [vmem:[#allocation2 + $0x128] sm:$0xff]  ;;  %v5465_v14 = vpack.c.bf16 %v2543_v4, %v2541_v3  ;;  %v5453_v15 = vpack.c.bf16 %v2439_v6, %v2437_v1 }
 0x228   : > { %5446 = vmatpush1.bf16.msra.mxu1 %v5445_v49  ;;  %5460 = vmatprep.subr.bf16.mxu0 %v5459_v51  ;;  %v2444_v12 = vld [vmem:[#allocation2 + $0x138] sm:$0xff]  ;;  %v6980_v13 = vld [vmem:[%s6342_s22 + $0x8] sm:$0xff]  ;;  %v2441_v16 = vld [vmem:[#allocation2 + $0x120] sm:$0xff]  ;;  %v5467_v17 = vpack.c.bf16 %v2548_v9, %v2546_v7 }
 0x229   : > { %5448 = vmatprep.subr.bf16.mxu1 %v5447_v54  ;;  %2409 = vmatprep.mubr.f32.mxu1 %v6204_v55  ;;  %v2545_v18 = vld [vmem:[#allocation3 + $0xa0] sm:$0xff]  ;;  %v2547_v19 = vld [vmem:[#allocation3 + $0xb0] sm:$0xff]  ;;  %v5455_v20 = vpack.c.bf16 %v2444_v12, %v2442_v11  ;;  %v2754_v22 = vld [vmem:[#allocation3 + $0xc8] sm:$0xff] }
 0x22a   : > { %5309 = vmatmul.mubr.msk.f32.vlgmr.msra.gmra.mrb[0].mxu0 %vm2204_vm5, %v6968_v62  ;;  %v2443_v21 = vld [vmem:[#allocation2 + $0x130] sm:$0xff]  ;;  %v2756_v23 = vld [vmem:[#allocation3 + $0xd8] sm:$0xff]  ;;  %v2642_v25 = vld [vmem:[#allocation2 + $0x148] sm:$0xff]  ;;  %v5469_v28 = vpack.c.bf16 %v2547_v19, %v2545_v18 }
 0x22b   : > { %5462 = vmatpush1.bf16.msra.mxu0 %v5461_v63  ;;  %2287 = vmatprep.mubr.f32.mxu0 %v6204_v55  ;;  %v6988_v24 = vld [vmem:[%s6347_s29 + $0x18] sm:$0xff]  ;;  %v6992_v27 = vld [vmem:[%s6342_s22 + $0x10] sm:$0xff]  ;;  %v5457_v29 = vpack.c.bf16 %v2443_v21, %v2441_v16  ;;  %v5491_v30 = vpack.c.bf16 %v2756_v23, %v2754_v22  ;;  %v2641_v31 = vld [vmem:[#allocation2 + $0x140] sm:$0xff] }
 0x22c   : > { %5450 = vmatpush1.bf16.msra.mxu1 %v5449_v0  ;;  %5464 = vmatprep.subr.bf16.mxu0 %v5463_v2  ;;  %v2644_v26 = vld [vmem:[#allocation2 + $0x158] sm:$0xff]  ;;  %v2643_v32 = vld [vmem:[#allocation2 + $0x150] sm:$0xff]  ;;  %v2646_v33 = vld [vmem:[#allocation2 + $0x168] sm:$0xff] }
 0x22d   : > { %5315 = vmatmul.mubr.msk.f32.gmra.mrb[4].mxu1 %vm2320_vm4, %v6976_v10  ;;  %5452 = vmatprep.subr.bf16.mxu1 %v5451_v5  ;;  %v5471_v8 = vpack.c.bf16 %v2644_v26, %v2642_v25  ;;  %v2648_v34 = vld [vmem:[#allocation2 + $0x178] sm:$0xff]  ;;  %v5473_v37 = vpack.c.bf16 %v2643_v32, %v2641_v31  ;;  %v2753_v38 = vld [vmem:[#allocation3 + $0xc0] sm:$0xff]  ;;  %v2755_v39 = vld [vmem:[#allocation3 + $0xd0] sm:$0xff] }
 0x22e   : > { %5310 = vmatmul.mubr.msk.f32.gmra.mrb[2].mxu0 %vm2204_vm5, %v6980_v13  ;;  %2415 = vmatprep.mubr.f32.mxu1 %v6204_v55  ;;  %v7001_v35 = vld [vmem:[%s6342_s22 + $0x18] sm:$0xff]  ;;  %v5475_v40 = vpack.c.bf16 %v2648_v34, %v2646_v33  ;;  %v2645_v41 = vld [vmem:[#allocation2 + $0x160] sm:$0xff]  ;;  %v2647_v42 = vld [vmem:[#allocation2 + $0x170] sm:$0xff]  ;;  %v5493_v45 = vpack.c.bf16 %v2755_v39, %v2753_v38 }
 0x22f   : > { %2293 = vmatprep.mubr.f32.mxu0 %v6204_v55  ;;  %5466 = vmatpush1.bf16.msra.mxu0 %v5465_v14  ;;  %v2650_v43 = vld [vmem:[#allocation2 + $0x188] sm:$0xff]  ;;  %v2652_v44 = vld [vmem:[#allocation2 + $0x198] sm:$0xff]  ;;  %v5477_v48 = vpack.c.bf16 %v2647_v42, %v2645_v41  ;;  %v2649_v51 = vld [vmem:[#allocation2 + $0x180] sm:$0xff] }
 0x230   : > { %5454 = vmatpush1.bf16.msra.mxu1 %v5453_v15  ;;  %5468 = vmatprep.subr.bf16.mxu0 %v5467_v17  ;;  %v2758_v46 = vld [vmem:[#allocation3 + $0xe8] sm:$0xff]  ;;  %v2760_v47 = vld [vmem:[#allocation3 + $0xf8] sm:$0xff]  ;;  %v5479_v49 = vpack.c.bf16 %v2652_v44, %v2650_v43  ;;  %v2651_v52 = vld [vmem:[#allocation2 + $0x190] sm:$0xff] }
 0x231   : > { %5316 = vmatmul.mubr.msk.f32.gmra.mrb[6].mxu1 %vm2320_vm4, %v6988_v24  ;;  %5456 = vmatprep.subr.bf16.mxu1 %v5455_v20  ;;  %v2757_v53 = vld [vmem:[#allocation3 + $0xe0] sm:$0xff]  ;;  %v5495_v54 = vpack.c.bf16 %v2760_v47, %v2758_v46  ;;  %v2759_v56 = vld [vmem:[#allocation3 + $0xf0] sm:$0xff]  ;;  %v2654_v57 = vld [vmem:[#allocation2 + $0x1a8] sm:$0xff]  ;;  %v5481_v61 = vpack.c.bf16 %v2651_v52, %v2649_v51 }
 0x232   : > { %5311 = vmatmul.mubr.msk.f32.gmra.mrb[4].mxu0 %vm2204_vm5, %v6992_v27  ;;  %2509 = vmatprep.mubr.f32.mxu1 %v6204_v55  ;;  %v2656_v58 = vld [vmem:[#allocation2 + $0x1b8] sm:$0xff]  ;;  %v2762_v59 = vld [vmem:[#allocation3 + $0x108] sm:$0xff]  ;;  %v5497_v63 = vpack.c.bf16 %v2759_v56, %v2757_v53  ;;  %v2653_v1 = vld [vmem:[#allocation2 + $0x1a0] sm:$0xff] }
 0x233   : > { %2299 = vmatprep.mubr.f32.mxu0 %v6204_v55  ;;  %5470 = vmatpush1.bf16.msra.mxu0 %v5469_v28  ;;  %v2764_v60 = vld [vmem:[#allocation3 + $0x118] sm:$0xff]  ;;  %v5483_v0 = vpack.c.bf16 %v2656_v58, %v2654_v57  ;;  %v2655_v2 = vld [vmem:[#allocation2 + $0x1b0] sm:$0xff]  ;;  %v2658_v3 = vld [vmem:[#allocation2 + $0x1c8] sm:$0xff] }
 0x234   : > { %5458 = vmatpush1.bf16.msra.mxu1 %v5457_v29  ;;  %5492 = vmatprep.subr.bf16.mxu0 %v5491_v30  ;;  %v5499_v4 = vpack.c.bf16 %v2764_v60, %v2762_v59  ;;  %v2660_v5 = vld [vmem:[#allocation2 + $0x1d8] sm:$0xff]  ;;  %v2761_v6 = vld [vmem:[#allocation3 + $0x100] sm:$0xff]  ;;  %v2763_v7 = vld [vmem:[#allocation3 + $0x110] sm:$0xff]  ;;  %v5485_v12 = vpack.c.bf16 %v2655_v2, %v2653_v1 }
 0x235   : > { %5472 = vmatprep.subr.bf16.mxu1 %v5471_v8  ;;  %v2858_v9 = vld [vmem:[#allocation2 + $0x1e8] sm:$0xff]  ;;  %v2860_v11 = vld [vmem:[#allocation2 + $0x1f8] sm:$0xff]  ;;  %v5487_v14 = vpack.c.bf16 %v2660_v5, %v2658_v3  ;;  %v5501_v15 = vpack.c.bf16 %v2763_v7, %v2761_v6  ;;  %v2657_v16 = vld [vmem:[#allocation2 + $0x1c0] sm:$0xff] }
 0x236   : > { %5312 = vmatmul.mubr.msk.f32.gmra.mrb[6].mxu0 %vm2204_vm5, %v7001_v35  ;;  %v2659_v17 = vld [vmem:[#allocation2 + $0x1d0] sm:$0xff]  ;;  %v5503_v18 = vpack.c.bf16 %v2860_v11, %v2858_v9  ;;  %v2970_v19 = vld [vmem:[#allocation3 + $0x128] sm:$0xff]  ;;  %v2972_v20 = vld [vmem:[#allocation3 + $0x138] sm:$0xff] }
 0x237   : > { %5317 = vmatmul.mubr.msk.f32.vlgmr.msra.gmra.mrb[8].mxu1 %vm2204_vm5, %v6968_v62  ;;  %2613 = vmatprep.mubr.f32.mxu0 %v6204_v55  ;;  %v5489_v21 = vpack.c.bf16 %v2659_v17, %v2657_v16  ;;  %v2857_v22 = vld [vmem:[#allocation2 + $0x1e0] sm:$0xff]  ;;  %v2859_v23 = vld [vmem:[#allocation2 + $0x1f0] sm:$0xff]  ;;  %v2862_v25 = vld [vmem:[#allocation2 + $0x208] sm:$0xff]  ;;  %v5523_v26 = vpack.c.bf16 %v2972_v20, %v2970_v19 }
 0x238   : > { %5474 = vmatpush1.bf16.msra.mxu1 %v5473_v37  ;;  %2515 = vmatprep.mubr.f32.mxu1 %v6204_v55  ;;  %v2864_v28 = vld [vmem:[#allocation2 + $0x218] sm:$0xff]  ;;  %v2969_v29 = vld [vmem:[#allocation3 + $0x120] sm:$0xff]  ;;  %v2971_v30 = vld [vmem:[#allocation3 + $0x130] sm:$0xff]  ;;  %v5505_v8 = vpack.c.bf16 %v2859_v23, %v2857_v22 }
 0x239   : > { %5476 = vmatprep.subr.bf16.mxu1 %v5475_v40  ;;  %v2974_v31 = vld [vmem:[#allocation3 + $0x148] sm:$0xff]  ;;  %v2976_v32 = vld [vmem:[#allocation3 + $0x158] sm:$0xff]  ;;  %v2861_v33 = vld [vmem:[#allocation2 + $0x200] sm:$0xff]  ;;  %v5507_v37 = vpack.c.bf16 %v2864_v28, %v2862_v25  ;;  %v5525_v38 = vpack.c.bf16 %v2971_v30, %v2969_v29 }
 0x23a   : > { %5321 = vmatmul.mubr.msk.f32.vlgmr.msra.gmra.mrb[8].mxu0 %vm2320_vm4, %v6959_v36  ;;  %v2863_v34 = vld [vmem:[#allocation2 + $0x210] sm:$0xff]  ;;  %v2866_v39 = vld [vmem:[#allocation2 + $0x228] sm:$0xff]  ;;  %v2868_v40 = vld [vmem:[#allocation2 + $0x238] sm:$0xff]  ;;  %v5527_v41 = vpack.c.bf16 %v2976_v32, %v2974_v31 }
 0x23b   : > { %5318 = vmatmul.mubr.msk.f32.gmra.mrb[10].mxu1 %vm2204_vm5, %v6980_v13  ;;  %5494 = vmatpush1.bf16.msra.mxu0 %v5493_v45  ;;  %v2973_v42 = vld [vmem:[#allocation3 + $0x140] sm:$0xff]  ;;  %v2975_v43 = vld [vmem:[#allocation3 + $0x150] sm:$0xff]  ;;  %v5509_v44 = vpack.c.bf16 %v2863_v34, %v2861_v33  ;;  %v2978_v45 = vld [vmem:[#allocation3 + $0x168] sm:$0xff] }
 0x23c   : > { %5478 = vmatpush1.bf16.msra.mxu1 %v5477_v48  ;;  %2521 = vmatprep.mubr.f32.mxu1 %v6204_v55  ;;  %v2980_v46 = vld [vmem:[#allocation3 + $0x178] sm:$0xff]  ;;  %v2865_v47 = vld [vmem:[#allocation2 + $0x220] sm:$0xff]  ;;  %v2867_v48 = vld [vmem:[#allocation2 + $0x230] sm:$0xff]  ;;  %v5529_v51 = vpack.c.bf16 %v2975_v43, %v2973_v42 }
 0x23d   : > { %2619 = vmatprep.mubr.f32.mxu0 %v6204_v55  ;;  %5480 = vmatprep.subr.bf16.mxu1 %v5479_v49  ;;  %v5511_v49 = vpack.c.bf16 %v2868_v40, %v2866_v39  ;;  %v2870_v52 = vld [vmem:[#allocation2 + $0x248] sm:$0xff]  ;;  %v2872_v53 = vld [vmem:[#allocation2 + $0x258] sm:$0xff]  ;;  %v2977_v56 = vld [vmem:[#allocation3 + $0x160] sm:$0xff]  ;;  %v5513_v58 = vpack.c.bf16 %v2867_v48, %v2865_v47 }
 0x23e   : > { %5322 = vmatmul.mubr.msk.f32.gmra.mrb[10].mxu0 %vm2320_vm4, %v6964_v50  ;;  %5496 = vmatprep.subr.bf16.mxu0 %v5495_v54  ;;  %v5531_v54 = vpack.c.bf16 %v2980_v46, %v2978_v45  ;;  %v2979_v57 = vld [vmem:[#allocation3 + $0x170] sm:$0xff]  ;;  %v3538_v59 = vld [vmem:[#allocation2 + $0x288] sm:$0xff]  ;;  %v3540_v60 = vld [vmem:[#allocation2 + $0x298] sm:$0xff] }
 0x23f   : > { %5319 = vmatmul.mubr.msk.f32.gmra.mrb[12].mxu1 %vm2204_vm5, %v6992_v27  ;;  %2625 = vmatprep.mubr.f32.mxu0 %v6204_v55  ;;  %v5533_v1 = vpack.c.bf16 %v2979_v57, %v2977_v56  ;;  %v2874_v2 = vld [vmem:[#allocation2 + $0x268] sm:$0xff]  ;;  %v2876_v3 = vld [vmem:[#allocation2 + $0x278] sm:$0xff]  ;;  %v2873_v7 = vld [vmem:[#allocation2 + $0x260] sm:$0xff] }
 0x240   : > { %5482 = vmatpush1.bf16.msra.mxu1 %v5481_v61  ;;  %2527 = vmatprep.mubr.f32.mxu1 %v6204_v55  ;;  %v2869_v61 = vld [vmem:[#allocation2 + $0x240] sm:$0xff]  ;;  %v5519_v6 = vpack.c.bf16 %v2876_v3, %v2874_v2  ;;  %v2875_v9 = vld [vmem:[#allocation2 + $0x270] sm:$0xff]  ;;  %v3650_v16 = vld [vmem:[#allocation3 + $0x188] sm:$0xff] }
 0x241   : > { %5498 = vmatpush1.bf16.msra.mxu0 %v5497_v63  ;;  %5484 = vmatprep.subr.bf16.mxu1 %v5483_v0  ;;  %v2871_v63 = vld [vmem:[#allocation2 + $0x250] sm:$0xff]  ;;  %v5515_v0 = vpack.c.bf16 %v2872_v53, %v2870_v52  ;;  %v3537_v11 = vld [vmem:[#allocation2 + $0x280] sm:$0xff]  ;;  %v3652_v17 = vld [vmem:[#allocation3 + $0x198] sm:$0xff] }
 0x242   : > { %5323 = vmatmul.mubr.msk.f32.gmra.mrb[12].mxu0 %vm2320_vm4, %v6976_v10  ;;  %5500 = vmatprep.subr.bf16.mxu0 %v5499_v4  ;;  %v5535_v4 = vpack.c.bf16 %v3540_v60, %v3538_v59  ;;  %v5517_v5 = vpack.c.bf16 %v2871_v63, %v2869_v61  ;;  %v3649_v20 = vld [vmem:[#allocation3 + $0x180] sm:$0xff]  ;;  %v5555_v23 = vpack.c.bf16 %v3652_v17, %v3650_v16  ;;  %v3546_v28 = vld [vmem:[#allocation2 + $0x2c8] sm:$0xff]  ;;  %v3548_v29 = vld [vmem:[#allocation2 + $0x2d8] sm:$0xff] }
 0x243   : > { %5320 = vmatmul.mubr.msk.f32.gmra.mrb[14].mxu1 %vm2204_vm5, %v7001_v35  ;;  %2631 = vmatprep.mubr.f32.mxu0 %v6204_v55  ;;  %v3541_v25 = vld [vmem:[#allocation2 + $0x2a0] sm:$0xff]  ;;  %v3656_v31 = vld [vmem:[#allocation3 + $0x1b8] sm:$0xff]  ;;  %v5543_v34 = vpack.c.bf16 %v3548_v29, %v3546_v28  ;;  %v3655_v39 = vld [vmem:[#allocation3 + $0x1b0] sm:$0xff] }
 0x244   : > { %5486 = vmatpush1.bf16.msra.mxu1 %v5485_v12  ;;  %2725 = vmatprep.mubr.f32.mxu1 %v6204_v55  ;;  %v3539_v12 = vld [vmem:[#allocation2 + $0x290] sm:$0xff]  ;;  %v3545_v33 = vld [vmem:[#allocation2 + $0x2c0] sm:$0xff]  ;;  %v3552_v42 = vld [vmem:[#allocation2 + $0x2f8] sm:$0xff] }
 0x245   : > { %5488 = vmatprep.subr.bf16.mxu1 %v5487_v14  ;;  %5502 = vmatpush1.bf16.msra.mxu0 %v5501_v15  ;;  %v3542_v14 = vld [vmem:[#allocation2 + $0x2a8] sm:$0xff]  ;;  %v3544_v15 = vld [vmem:[#allocation2 + $0x2b8] sm:$0xff]  ;;  %v5537_v19 = vpack.c.bf16 %v3539_v12, %v3537_v11  ;;  %v3549_v47 = vld [vmem:[#allocation2 + $0x2e0] sm:$0xff] }
 0x246   : > { %5324 = vmatmul.mubr.msk.f32.gmra.mrb[14].mxu0 %vm2320_vm4, %v6988_v24  ;;  %5504 = vmatprep.subr.bf16.mxu0 %v5503_v18  ;;  %v5521_v18 = vpack.c.bf16 %v2875_v9, %v2873_v7  ;;  %v5539_v22 = vpack.c.bf16 %v3544_v15, %v3542_v14  ;;  %v3658_v43 = vld [vmem:[#allocation3 + $0x1c8] sm:$0xff]  ;;  %v3659_v52 = vld [vmem:[#allocation3 + $0x1d0] sm:$0xff]  ;;  %v3556_v56 = vld [vmem:[#allocation2 + $0x318] sm:$0xff] }
 0x247   : > { %2829 = vmatprep.mubr.f32.mxu0 %v6204_v55  ;;  %v3754_v57 = vld [vmem:[#allocation2 + $0x328] sm:$0xff]  ;;  %v3553_v63 = vld [vmem:[#allocation2 + $0x300] sm:$0xff]  ;;  %v3867_v3 = vld [vmem:[#allocation3 + $0x1f8] sm:$0xff] }
 0x248   : > { %5490 = vmatpush1.bf16.msra.mxu1 %v5489_v21  ;;  %v3651_v21 = vld [vmem:[#allocation3 + $0x190] sm:$0xff]  ;;  %v3865_v2 = vld [vmem:[#allocation3 + $0x1e8] sm:$0xff]  ;;  %v3760_v11 = vld [vmem:[#allocation2 + $0x358] sm:$0xff] }
 0x249   : > { %5524 = vmatprep.subr.bf16.mxu1 %v5523_v26  ;;  %v3543_v26 = vld [vmem:[#allocation2 + $0x2b0] sm:$0xff]  ;;  %v5557_v30 = vpack.c.bf16 %v3651_v21, %v3649_v20  ;;  %v3758_v7 = vld [vmem:[#allocation2 + $0x348] sm:$0xff]  ;;  %v5587_v9 = vpack.c.bf16 %v3867_v3, %v3865_v2  ;;  %v3864_v12 = vld [vmem:[#allocation3 + $0x1e0] sm:$0xff] }
 0x24a   : > { %5329 = vmatmul.mubr.msk.f32.vlgmr.msra.gmra.mrb[16].mxu0 %vm2320_vm4, %v6959_v36  ;;  %v5541_v32 = vpack.c.bf16 %v3543_v26, %v3541_v25  ;;  %v3866_v14 = vld [vmem:[#allocation3 + $0x1f0] sm:$0xff]  ;;  %v3869_v16 = vld [vmem:[#allocation3 + $0x208] sm:$0xff]  ;;  %v3871_v17 = vld [vmem:[#allocation3 + $0x218] sm:$0xff]  ;;  %v5571_v20 = vpack.c.bf16 %v3760_v11, %v3758_v7 }
 0x24b   : > { %5325 = vmatmul.mubr.msk.f32.vlgmr.msra.gmra.mrb[16].mxu1 %vm2204_vm5, %v6968_v62  ;;  %5506 = vmatpush1.bf16.msra.mxu0 %v5505_v8  ;;  %v3654_v8 = vld [vmem:[#allocation3 + $0x1a8] sm:$0xff]  ;;  %v5589_v21 = vpack.c.bf16 %v3866_v14, %v3864_v12  ;;  %v5591_v25 = vpack.c.bf16 %v3871_v17, %v3869_v16  ;;  %v3868_v26 = vld [vmem:[#allocation3 + $0x200] sm:$0xff]  ;;  %v3870_v28 = vld [vmem:[#allocation3 + $0x210] sm:$0xff] }
 0x24c   : > { %2731 = vmatprep.mubr.f32.mxu1 %v6204_v55  ;;  %2835 = vmatprep.mubr.f32.mxu0 %v6204_v55  ;;  %v5559_v40 = vpack.c.bf16 %v3656_v31, %v3654_v8  ;;  %v3875_v8 = vld [vmem:[#allocation3 + $0x238] sm:$0xff]  ;;  %v3761_v31 = vld [vmem:[#allocation2 + $0x360] sm:$0xff]  ;;  %v3977_v11 = vld [vmem:[#allocation2 + $0x408] sm:$0xff] }
 0x24d   : > { %5508 = vmatprep.subr.bf16.mxu0 %v5507_v37  ;;  %5526 = vmatpush1.bf16.msra.mxu1 %v5525_v38  ;;  %v3547_v37 = vld [vmem:[#allocation2 + $0x2d0] sm:$0xff]  ;;  %v3653_v38 = vld [vmem:[#allocation3 + $0x1a0] sm:$0xff]  ;;  %v3979_v12 = vld [vmem:[#allocation2 + $0x418] sm:$0xff] }
 0x24e   : > { %5330 = vmatmul.mubr.msk.f32.gmra.mrb[18].mxu0 %vm2320_vm4, %v6964_v50  ;;  %5528 = vmatprep.subr.bf16.mxu1 %v5527_v41  ;;  %v3550_v41 = vld [vmem:[#allocation2 + $0x2e8] sm:$0xff]  ;;  %v5545_v45 = vpack.c.bf16 %v3547_v37, %v3545_v33  ;;  %v5561_v46 = vpack.c.bf16 %v3655_v39, %v3653_v38  ;;  %v3768_v38 = vld [vmem:[#allocation2 + $0x398] sm:$0xff]  ;;  %v4080_v3 = vld [vmem:[#allocation3 + $0x240] sm:$0xff] }
 0x24f   : > { %5326 = vmatmul.mubr.msk.f32.gmra.mrb[18].mxu1 %vm2204_vm5, %v6980_v13  ;;  %5510 = vmatpush1.bf16.msra.mxu0 %v5509_v44  ;;  %v3660_v44 = vld [vmem:[#allocation3 + $0x1d8] sm:$0xff]  ;;  %v5547_v48 = vpack.c.bf16 %v3552_v42, %v3550_v41  ;;  %v3766_v37 = vld [vmem:[#allocation2 + $0x388] sm:$0xff]  ;;  %v3874_v41 = vld [vmem:[#allocation3 + $0x230] sm:$0xff] }
 0x250   : > { %2737 = vmatprep.mubr.f32.mxu1 %v6204_v55  ;;  %2841 = vmatprep.mubr.f32.mxu0 %v6204_v55  ;;  %v5563_v53 = vpack.c.bf16 %v3660_v44, %v3658_v43  ;;  %v3969_v43 = vld [vmem:[#allocation2 + $0x3c8] sm:$0xff]  ;;  %v3971_v44 = vld [vmem:[#allocation2 + $0x3d8] sm:$0xff]  ;;  %v3972_v7 = vld [vmem:[#allocation2 + $0x3e0] sm:$0xff] }
 0x251   : > { %5512 = vmatprep.subr.bf16.mxu0 %v5511_v49  ;;  %5530 = vmatpush1.bf16.msra.mxu1 %v5529_v51  ;;  %v3551_v49 = vld [vmem:[#allocation2 + $0x2f0] sm:$0xff]  ;;  %v3657_v51 = vld [vmem:[#allocation3 + $0x1c0] sm:$0xff]  ;;  %v4087_v16 = vld [vmem:[#allocation3 + $0x278] sm:$0xff] }
 0x252   : > { %5331 = vmatmul.mubr.msk.f32.gmra.mrb[20].mxu0 %vm2320_vm4, %v6976_v10  ;;  %5532 = vmatprep.subr.bf16.mxu1 %v5531_v54  ;;  %v3554_v54 = vld [vmem:[#allocation2 + $0x308] sm:$0xff]  ;;  %v5549_v59 = vpack.c.bf16 %v3551_v49, %v3549_v47  ;;  %v5565_v60 = vpack.c.bf16 %v3659_v52, %v3657_v51  ;;  %v5579_v47 = vpack.c.bf16 %v3768_v38, %v3766_v37  ;;  %v3772_v51 = vld [vmem:[#allocation2 + $0x3b8] sm:$0xff] }
 0x253   : > { %5327 = vmatmul.mubr.msk.f32.gmra.mrb[20].mxu1 %vm2204_vm5, %v6992_v27  ;;  %5514 = vmatpush1.bf16.msra.mxu0 %v5513_v58  ;;  %v3756_v58 = vld [vmem:[#allocation2 + $0x338] sm:$0xff]  ;;  %v5551_v61 = vpack.c.bf16 %v3556_v56, %v3554_v54  ;;  %v3770_v49 = vld [vmem:[#allocation2 + $0x3a8] sm:$0xff]  ;;  %v5599_v52 = vpack.c.bf16 %v3971_v44, %v3969_v43  ;;  %v3769_v56 = vld [vmem:[#allocation2 + $0x3a0] sm:$0xff] }
 0x254   : > { %2743 = vmatprep.mubr.f32.mxu1 %v6204_v55  ;;  %2847 = vmatprep.mubr.f32.mxu0 %v6204_v55  ;;  %v5583_v54 = vpack.c.bf16 %v3772_v51, %v3770_v49  ;;  %v3985_v38 = vld [vmem:[#allocation2 + $0x448] sm:$0xff]  ;;  %v4299_v49 = vld [vmem:[#allocation3 + $0x2b8] sm:$0xff] }
 0x255   : > { %5516 = vmatprep.subr.bf16.mxu0 %v5515_v0  ;;  %5534 = vmatpush1.bf16.msra.mxu1 %v5533_v1  ;;  %v3555_v0 = vld [vmem:[#allocation2 + $0x310] sm:$0xff]  ;;  %v5567_v1 = vpack.c.bf16 %v3756_v58, %v3754_v57  ;;  %v3968_v58 = vld [vmem:[#allocation2 + $0x3c0] sm:$0xff] }
 0x256   : > { %5332 = vmatmul.mubr.msk.f32.gmra.mrb[22].mxu0 %vm2320_vm4, %v6988_v24  ;;  %5536 = vmatprep.subr.bf16.mxu1 %v5535_v4  ;;  %v5553_v4 = vpack.c.bf16 %v3555_v0, %v3553_v63  ;;  %v3771_v57 = vld [vmem:[#allocation2 + $0x3b0] sm:$0xff]  ;;  %v4081_v63 = vld [vmem:[#allocation3 + $0x248] sm:$0xff]  ;;  %v4083_v0 = vld [vmem:[#allocation3 + $0x258] sm:$0xff] }
 0x257   : > { %5328 = vmatmul.mubr.msk.f32.gmra.mrb[22].mxu1 %vm2204_vm5, %v7001_v35  ;;  %5518 = vmatpush1.bf16.msra.mxu0 %v5517_v5  ;;  %v3753_v5 = vld [vmem:[#allocation2 + $0x320] sm:$0xff] }
 0x258   : > { %5520 = vmatprep.subr.bf16.mxu0 %v5519_v6  ;;  %3045 = vmatprep.mubr.f32.mxu1 %v6204_v55  ;;  %v3755_v6 = vld [vmem:[#allocation2 + $0x330] sm:$0xff] }
 0x259   : > { %2941 = vmatprep.mubr.f32.mxu0 %v6204_v55  ;;  %v5569_v15 = vpack.c.bf16 %v3755_v6, %v3753_v5  ;;  %v5619_v6 = vpack.c.bf16 %v4083_v0, %v4081_v63  ;;  %v4303_v63 = vld [vmem:[#allocation3 + $0x2d8] sm:$0xff]  ;;  %v4188_v0 = vld [vmem:[#allocation2 + $0x480] sm:$0xff] }
 0x25b   : > { %5522 = vmatpush1.bf16.msra.mxu0 %v5521_v18  ;;  %5337 = vmatmul.mubr.msk.f32.vlgmr.msra.gmra.mrb[24].mxu1 %vm2320_vm4, %v6959_v36  ;;  %v3757_v18 = vld [vmem:[#allocation2 + $0x340] sm:$0xff] }
 0x25c   : > { %5538 = vmatpush1.bf16.msra.mxu1 %v5537_v19  ;;  %3051 = vmatprep.mubr.f32.mxu1 %v6204_v55  ;;  %v3759_v19 = vld [vmem:[#allocation2 + $0x350] sm:$0xff] }
 0x25d   : > { %5540 = vmatprep.subr.bf16.mxu1 %v5539_v22  ;;  %5556 = vmatprep.subr.bf16.mxu0 %v5555_v23  ;;  %v3762_v22 = vld [vmem:[#allocation2 + $0x368] sm:$0xff]  ;;  %v3764_v23 = vld [vmem:[#allocation2 + $0x378] sm:$0xff]  ;;  %v5573_v29 = vpack.c.bf16 %v3759_v19, %v3757_v18  ;;  %v3976_v18 = vld [vmem:[#allocation2 + $0x400] sm:$0xff]  ;;  %v5607_v19 = vpack.c.bf16 %v3979_v12, %v3977_v11 }
 0x25e   : > { %5333 = vmatmul.mubr.msk.f32.vlgmr.msra.gmra.mrb[24].mxu0 %vm2204_vm5, %v6968_v62  ;;  %v5575_v33 = vpack.c.bf16 %v3764_v23, %v3762_v22  ;;  %v4086_v22 = vld [vmem:[#allocation3 + $0x270] sm:$0xff] }
 0x25f   : > { %5338 = vmatmul.mubr.msk.f32.gmra.mrb[26].mxu1 %vm2320_vm4, %v6964_v50  ;;  %5558 = vmatpush1.bf16.msra.mxu0 %v5557_v30  ;;  %v3873_v30 = vld [vmem:[#allocation3 + $0x228] sm:$0xff]  ;;  %v4302_v11 = vld [vmem:[#allocation3 + $0x2d0] sm:$0xff] }
 0x260   : > { %5542 = vmatpush1.bf16.msra.mxu1 %v5541_v32  ;;  %2947 = vmatprep.mubr.f32.mxu0 %v6204_v55  ;;  %v3763_v32 = vld [vmem:[#allocation2 + $0x370] sm:$0xff]  ;;  %v5595_v39 = vpack.c.bf16 %v3875_v8, %v3873_v30  ;;  %v3980_v8 = vld [vmem:[#allocation2 + $0x420] sm:$0xff] }
 0x261   : > { %3057 = vmatprep.mubr.f32.mxu1 %v6204_v55  ;;  %5544 = vmatprep.subr.bf16.mxu1 %v5543_v34  ;;  %v5593_v34 = vpack.c.bf16 %v3870_v28, %v3868_v26  ;;  %v5577_v42 = vpack.c.bf16 %v3763_v32, %v3761_v31  ;;  %v4089_v26 = vld [vmem:[#allocation3 + $0x288] sm:$0xff]  ;;  %v4091_v28 = vld [vmem:[#allocation3 + $0x298] sm:$0xff]  ;;  %v3982_v32 = vld [vmem:[#allocation2 + $0x430] sm:$0xff] }
 0x262   : > { %5334 = vmatmul.mubr.msk.f32.gmra.mrb[26].mxu0 %vm2204_vm5, %v6980_v13  ;;  %5560 = vmatprep.subr.bf16.mxu0 %v5559_v40  ;;  %v3872_v40 = vld [vmem:[#allocation3 + $0x220] sm:$0xff]  ;;  %v5627_v37 = vpack.c.bf16 %v4091_v28, %v4089_v26  ;;  %v4198_v26 = vld [vmem:[#allocation2 + $0x4d0] sm:$0xff] }
 0x263   : > { %5339 = vmatmul.mubr.msk.f32.gmra.mrb[28].mxu1 %vm2320_vm4, %v6976_v10  ;;  %2953 = vmatprep.mubr.f32.mxu0 %v6204_v55 }
 0x264   : > { %5546 = vmatpush1.bf16.msra.mxu1 %v5545_v45  ;;  %5562 = vmatpush1.bf16.msra.mxu0 %v5561_v46  ;;  %v3765_v45 = vld [vmem:[#allocation2 + $0x380] sm:$0xff]  ;;  %v3767_v46 = vld [vmem:[#allocation2 + $0x390] sm:$0xff] }
 0x265   : > { %3063 = vmatprep.mubr.f32.mxu1 %v6204_v55  ;;  %5548 = vmatprep.subr.bf16.mxu1 %v5547_v48  ;;  %v5597_v48 = vpack.c.bf16 %v3874_v41, %v3872_v40  ;;  %v4185_v40 = vld [vmem:[#allocation2 + $0x468] sm:$0xff]  ;;  %v4187_v41 = vld [vmem:[#allocation2 + $0x478] sm:$0xff] }
 0x266   : > { %5335 = vmatmul.mubr.msk.f32.gmra.mrb[28].mxu0 %vm2204_vm5, %v6992_v27  ;;  %5564 = vmatprep.subr.bf16.mxu0 %v5563_v53  ;;  %v5581_v53 = vpack.c.bf16 %v3767_v46, %v3765_v45  ;;  %v3984_v45 = vld [vmem:[#allocation2 + $0x440] sm:$0xff]  ;;  %v3986_v46 = vld [vmem:[#allocation2 + $0x450] sm:$0xff] }
 0x267   : > { %5340 = vmatmul.mubr.msk.f32.gmra.mrb[30].mxu1 %vm2320_vm4, %v6988_v24  ;;  %2959 = vmatprep.mubr.f32.mxu0 %v6204_v55  ;;  %v5617_v51 = vpack.c.bf16 %v3986_v46, %v3984_v45 }
 0x268   : > { %5550 = vmatpush1.bf16.msra.mxu1 %v5549_v59  ;;  %5566 = vmatpush1.bf16.msra.mxu0 %v5565_v60  ;;  %v3970_v59 = vld [vmem:[#allocation2 + $0x3d0] sm:$0xff]  ;;  %v3973_v60 = vld [vmem:[#allocation2 + $0x3e8] sm:$0xff] }
 0x269   : > { %5552 = vmatprep.subr.bf16.mxu1 %v5551_v61  ;;  %3621 = vmatprep.mubr.f32.mxu1 %v6204_v55  ;;  %v3975_v61 = vld [vmem:[#allocation2 + $0x3f8] sm:$0xff]  ;;  %v5601_v2 = vpack.c.bf16 %v3970_v59, %v3968_v58  ;;  %v4296_v58 = vld [vmem:[#allocation3 + $0x2a0] sm:$0xff]  ;;  %v4298_v59 = vld [vmem:[#allocation3 + $0x2b0] sm:$0xff] }
 0x26a   : > { %5336 = vmatmul.mubr.msk.f32.gmra.mrb[30].mxu0 %vm2204_vm5, %v7001_v35  ;;  %5568 = vmatprep.subr.bf16.mxu0 %v5567_v1  ;;  %v5585_v1 = vpack.c.bf16 %v3771_v57, %v3769_v56  ;;  %v5603_v5 = vpack.c.bf16 %v3975_v61, %v3973_v60  ;;  %v4191_v57 = vld [vmem:[#allocation2 + $0x498] sm:$0xff]  ;;  %v4301_v61 = vld [vmem:[#allocation3 + $0x2c8] sm:$0xff] }
 0x26b   : > { %3725 = vmatprep.mubr.f32.mxu0 %v6204_v55 }
 0x26c   : > { %5554 = vmatpush1.bf16.msra.mxu1 %v5553_v4  ;;  %v4082_v4 = vld [vmem:[#allocation3 + $0x250] sm:$0xff] }
 0x26d   : > { %5588 = vmatprep.subr.bf16.mxu1 %v5587_v9  ;;  %v3974_v9 = vld [vmem:[#allocation2 + $0x3f0] sm:$0xff]  ;;  %v5621_v14 = vpack.c.bf16 %v4082_v4, %v4080_v3  ;;  %v5653_v3 = vpack.c.bf16 %v4298_v59, %v4296_v58  ;;  %v4193_v4 = vld [vmem:[#allocation2 + $0x4a8] sm:$0xff] }
 0x26e   : > { %5345 = vmatmul.mubr.msk.f32.vlgmr.msra.gmra.mrb[32].mxu0 %vm2320_vm4, %v6959_v36  ;;  %v5605_v17 = vpack.c.bf16 %v3974_v9, %v3972_v7  ;;  %v5655_v7 = vpack.c.bf16 %v4303_v63, %v4301_v61  ;;  %v4300_v9 = vld [vmem:[#allocation3 + $0x2c0] sm:$0xff] }
 0x26f   : > { %5341 = vmatmul.mubr.msk.f32.vlgmr.msra.gmra.mrb[32].mxu1 %vm2204_vm5, %v6968_v62  ;;  %5570 = vmatpush1.bf16.msra.mxu0 %v5569_v15  ;;  %v4085_v15 = vld [vmem:[#allocation3 + $0x268] sm:$0xff] }
 0x270   : > { %3627 = vmatprep.mubr.f32.mxu1 %v6204_v55  ;;  %3731 = vmatprep.mubr.f32.mxu0 %v6204_v55  ;;  %v5623_v23 = vpack.c.bf16 %v4087_v16, %v4085_v15  ;;  %v4307_v15 = vld [vmem:[#allocation3 + $0x2f8] sm:$0xff]  ;;  %v4192_v16 = vld [vmem:[#allocation2 + $0x4a0] sm:$0xff] }
 0x271   : > { %5572 = vmatprep.subr.bf16.mxu0 %v5571_v20  ;;  %5590 = vmatpush1.bf16.msra.mxu1 %v5589_v21  ;;  %v3978_v20 = vld [vmem:[#allocation2 + $0x410] sm:$0xff]  ;;  %v4084_v21 = vld [vmem:[#allocation3 + $0x260] sm:$0xff] }
 0x272   : > { %5346 = vmatmul.mubr.msk.f32.gmra.mrb[34].mxu0 %vm2320_vm4, %v6964_v50  ;;  %5592 = vmatprep.subr.bf16.mxu1 %v5591_v25  ;;  %v3981_v25 = vld [vmem:[#allocation2 + $0x428] sm:$0xff]  ;;  %v5625_v30 = vpack.c.bf16 %v4086_v22, %v4084_v21  ;;  %v4304_v22 = vld [vmem:[#allocation3 + $0x2e0] sm:$0xff] }
 0x273   : > { %5342 = vmatmul.mubr.msk.f32.gmra.mrb[34].mxu1 %vm2204_vm5, %v6980_v13  ;;  %5574 = vmatpush1.bf16.msra.mxu0 %v5573_v29  ;;  %v5609_v29 = vpack.c.bf16 %v3978_v20, %v3976_v18  ;;  %v4197_v20 = vld [vmem:[#allocation2 + $0x4c8] sm:$0xff] }
 0x274   : > { %3633 = vmatprep.mubr.f32.mxu1 %v6204_v55  ;;  %3737 = vmatprep.mubr.f32.mxu0 %v6204_v55 }
 0x275   : > { %5576 = vmatprep.subr.bf16.mxu0 %v5575_v33  ;;  %5594 = vmatpush1.bf16.msra.mxu1 %v5593_v34  ;;  %v4088_v33 = vld [vmem:[#allocation3 + $0x280] sm:$0xff]  ;;  %v4090_v34 = vld [vmem:[#allocation3 + $0x290] sm:$0xff] }
 0x276   : > { %5347 = vmatmul.mubr.msk.f32.gmra.mrb[36].mxu0 %vm2320_vm4, %v6976_v10  ;;  %5596 = vmatprep.subr.bf16.mxu1 %v5595_v39  ;;  %v3987_v39 = vld [vmem:[#allocation2 + $0x458] sm:$0xff]  ;;  %v5629_v43 = vpack.c.bf16 %v4090_v34, %v4088_v33  ;;  %v6103_v33 = vld [vmem:[%s6342_s22] sm:$0xff]  ;;  %v6104_v34 = vld [vmem:[%s6347_s29 + $0x8] sm:$0xff] }
 0x277   : > { %5343 = vmatmul.mubr.msk.f32.gmra.mrb[36].mxu1 %vm2204_vm5, %v6992_v27  ;;  %5578 = vmatpush1.bf16.msra.mxu0 %v5577_v42  ;;  %v5613_v42 = vpack.c.bf16 %v3982_v32, %v3980_v8  ;;  %v5615_v44 = vpack.c.bf16 %v3987_v39, %v3985_v38  ;;  %v4202_v32 = vld [vmem:[#allocation2 + $0x4f0] sm:$0xff] }
 0x278   : > { %3639 = vmatprep.mubr.f32.mxu1 %v6204_v55  ;;  %3743 = vmatprep.mubr.f32.mxu0 %v6204_v55  ;;  %v6106_v38 = vld [vmem:[%s6347_s29 + $0x10] sm:$0xff] }
 0x279   : > { %5580 = vmatprep.subr.bf16.mxu0 %v5579_v47  ;;  %5598 = vmatpush1.bf16.msra.mxu1 %v5597_v48  ;;  %v5631_v47 = vpack.c.bf16 %v4187_v41, %v4185_v40  ;;  %v4297_v48 = vld [vmem:[#allocation3 + $0x2a8] sm:$0xff] }
 0x27a   : > { %5348 = vmatmul.mubr.msk.f32.gmra.mrb[38].mxu0 %vm2320_vm4, %v6988_v24  ;;  %5600 = vmatprep.subr.bf16.mxu1 %v5599_v52  ;;  %v4184_v52 = vld [vmem:[#allocation2 + $0x460] sm:$0xff]  ;;  %v5651_v56 = vpack.c.bf16 %v4299_v49, %v4297_v48 }
 0x27b   : > { %5344 = vmatmul.mubr.msk.f32.gmra.mrb[38].mxu1 %vm2204_vm5, %v7001_v35  ;;  %5582 = vmatpush1.bf16.msra.mxu0 %v5581_v53  ;;  %v4186_v53 = vld [vmem:[#allocation2 + $0x470] sm:$0xff] }
 0x27c   : > { %5584 = vmatprep.subr.bf16.mxu0 %v5583_v54  ;;  %3940 = vmatprep.mubr.f32.mxu1 %v6204_v55  ;;  %v4189_v54 = vld [vmem:[#allocation2 + $0x488] sm:$0xff]  ;;  %v5633_v60 = vpack.c.bf16 %v4186_v53, %v4184_v52 }
 0x27d   : > { %3837 = vmatprep.mubr.f32.mxu0 %v6204_v55 }
 0x27f   : > { %5586 = vmatpush1.bf16.msra.mxu0 %v5585_v1  ;;  %5353 = vmatmul.mubr.msk.f32.vlgmr.msra.gmra.mrb[40].mxu1 %vm2320_vm4, %v6959_v36  ;;  %v3983_v36 = vld [vmem:[#allocation2 + $0x438] sm:$0xff]  ;;  %v4190_v1 = vld [vmem:[#allocation2 + $0x490] sm:$0xff] }
 0x280   : > { %5602 = vmatpush1.bf16.msra.mxu1 %v5601_v2  ;;  %3946 = vmatprep.mubr.f32.mxu1 %v6204_v55  ;;  %v5611_v31 = vpack.c.bf16 %v3983_v36, %v3981_v25  ;;  %v5635_v2 = vpack.c.bf16 %v4191_v57, %v4189_v54  ;;  %v5637_v12 = vpack.c.bf16 %v4190_v1, %v4188_v0  ;;  %v4196_v36 = vld [vmem:[#allocation2 + $0x4c0] sm:$0xff] }
 0x281   : > { %5604 = vmatprep.subr.bf16.mxu1 %v5603_v5  ;;  %5620 = vmatprep.subr.bf16.mxu0 %v5619_v6  ;;  %v6102_v5 = vld [vmem:[%s6347_s29] sm:$0xff]  ;;  %v4195_v6 = vld [vmem:[#allocation2 + $0x4b8] sm:$0xff]  ;;  %s9368_s29 = sld [smem:[#allocation108_spill]] }
 0x282   : > { %5349 = vmatmul.mubr.msk.f32.vlgmr.msra.gmra.mrb[40].mxu0 %vm2204_vm5, %v6968_v62  ;;  %v5639_v18 = vpack.c.bf16 %v4195_v6, %v4193_v4 }
 0x283   : > { %5354 = vmatmul.mubr.msk.f32.gmra.mrb[42].mxu1 %vm2320_vm4, %v6964_v50  ;;  %5622 = vmatpush1.bf16.msra.mxu0 %v5621_v14  ;;  %v4305_v14 = vld [vmem:[#allocation3 + $0x2e8] sm:$0xff] }
 0x284   : > { %5606 = vmatpush1.bf16.msra.mxu1 %v5605_v17  ;;  %3843 = vmatprep.mubr.f32.mxu0 %v6204_v55  ;;  %v4194_v17 = vld [vmem:[#allocation2 + $0x4b0] sm:$0xff]  ;;  %v5659_v21 = vpack.c.bf16 %v4307_v15, %v4305_v14 }
 0x285   : > { %3952 = vmatprep.mubr.f32.mxu1 %v6204_v55  ;;  %5608 = vmatprep.subr.bf16.mxu1 %v5607_v19  ;;  %v5657_v19 = vpack.c.bf16 %v4302_v11, %v4300_v9  ;;  %v5641_v25 = vpack.c.bf16 %v4194_v17, %v4192_v16 }
 0x286   : > { %5350 = vmatmul.mubr.msk.f32.gmra.mrb[42].mxu0 %vm2204_vm5, %v6980_v13  ;;  %5624 = vmatprep.subr.bf16.mxu0 %v5623_v23  ;;  %v4306_v23 = vld [vmem:[#allocation3 + $0x2f0] sm:$0xff] }
 0x287   : > { %5355 = vmatmul.mubr.msk.f32.gmra.mrb[44].mxu1 %vm2320_vm4, %v6976_v10  ;;  %3849 = vmatprep.mubr.f32.mxu0 %v6204_v55  ;;  %s9369_s11 = smov %s9368_s29 }
 0x288   : > { %5610 = vmatpush1.bf16.msra.mxu1 %v5609_v29  ;;  %5626 = vmatpush1.bf16.msra.mxu0 %v5625_v30  ;;  %v4201_v29 = vld [vmem:[#allocation2 + $0x4e8] sm:$0xff]  ;;  %v4203_v30 = vld [vmem:[#allocation2 + $0x4f8] sm:$0xff] }
 0x289   : > { %3958 = vmatprep.mubr.f32.mxu1 %v6204_v55  ;;  %5612 = vmatprep.subr.bf16.mxu1 %v5611_v31  ;;  %v5647_v8 = vpack.c.bf16 %v4203_v30, %v4201_v29  ;;  %v4200_v31 = vld [vmem:[#allocation2 + $0x4e0] sm:$0xff] }
 0x28a   : > { %5351 = vmatmul.mubr.msk.f32.gmra.mrb[44].mxu0 %vm2204_vm5, %v6992_v27  ;;  %5628 = vmatprep.subr.bf16.mxu0 %v5627_v37  ;;  %v6105_v37 = vld [vmem:[%s6342_s22 + $0x8] sm:$0xff] }
 0x28b   : > { %5356 = vmatmul.mubr.msk.f32.gmra.mrb[46].mxu1 %vm2320_vm4, %v6988_v24  ;;  %3855 = vmatprep.mubr.f32.mxu0 %v6204_v55 }
 0x28c   : > { %5614 = vmatpush1.bf16.msra.mxu1 %v5613_v42  ;;  %5630 = vmatpush1.bf16.msra.mxu0 %v5629_v43 }
 0x28d   : > { %5616 = vmatprep.subr.bf16.mxu1 %v5615_v44  ;;  %4052 = vmatprep.mubr.f32.mxu1 %v6204_v55  ;;  %v2147_v44 = vld [vmem:[%s6337_s8] sm:$0xff] }
 0x28e   : > { %5352 = vmatmul.mubr.msk.f32.gmra.mrb[46].mxu0 %vm2204_vm5, %v7001_v35  ;;  %5632 = vmatprep.subr.bf16.mxu0 %v5631_v47  ;;  %v2151_v48 = vunpack.c.1.s8 %v2147_v44  ;;  %v2153_v52 = vunpack.c.2.s8 %v2147_v44 }
 0x28f   : > { %4156 = vmatprep.mubr.f32.mxu0 %v6204_v55 }
 0x290   : > { %5618 = vmatpush1.bf16.msra.mxu1 %v5617_v51  ;;  %v7207_v63 = vand.u32 255, %v2153_v52 }
 0x291   : > { %5652 = vmatprep.subr.bf16.mxu1 %v5651_v56 }
 0x292   : > { %5361 = vmatmul.mubr.msk.f32.vlgmr.msra.gmra.mrb[48].mxu0 %vm2320_vm4, %v6102_v5  ;;  %vm3250_vm12 = vcmp.eq.s32.totalorder %v7207_v63, 0  ;;  %vm3338_vm1 = vcmp.eq.s32.totalorder %v7207_v63, 1 }
 0x293   : > { %5357 = vmatmul.mubr.msk.f32.vlgmr.msra.gmra.mrb[48].mxu1 %vm2204_vm5, %v6968_v62  ;;  %5634 = vmatpush1.bf16.msra.mxu0 %v5633_v60  ;;  %v4199_v62 = vld [vmem:[#allocation2 + $0x4d8] sm:$0xff]  ;;  %v7203_v60 = vand.u32 255, %v2151_v48 }
 0x294   : > { %4058 = vmatprep.mubr.f32.mxu1 %v6204_v55  ;;  %4162 = vmatprep.mubr.f32.mxu0 %v6204_v55  ;;  %v5643_v28 = vpack.c.bf16 %v4199_v62, %v4197_v20 }
 0x295   : > { %5636 = vmatprep.subr.bf16.mxu0 %v5635_v2  ;;  %5654 = vmatpush1.bf16.msra.mxu1 %v5653_v3  ;;  %v2155_v2 = vunpack.c.3.s8 %v2147_v44  ;;  %vm3248_vm10 = vcmp.eq.s32.totalorder %v7203_v60, 0  ;;  %vm3336_vm14 = vcmp.eq.s32.totalorder %v7203_v60, 1 }
 0x296   : > { %5362 = vmatmul.mubr.msk.f32.gmra.mrb[50].mxu0 %vm2320_vm4, %v6964_v50  ;;  %5656 = vmatprep.subr.bf16.mxu1 %v5655_v7  ;;  %v5661_v50 = vpack.c.bf16 %v4306_v23, %v4304_v22 }
 0x297   : > { %5358 = vmatmul.mubr.msk.f32.gmra.mrb[50].mxu1 %vm2204_vm5, %v6980_v13  ;;  %5638 = vmatpush1.bf16.msra.mxu0 %v5637_v12  ;;  %v5645_v13 = vpack.c.bf16 %v4198_v26, %v4196_v36  ;;  %v7242_v15 = vand.u32 255, %v2155_v2 }
 0x298   : > { %4064 = vmatprep.mubr.f32.mxu1 %v6204_v55  ;;  %4168 = vmatprep.mubr.f32.mxu0 %v6204_v55 }
 0x299   : > { %5640 = vmatprep.subr.bf16.mxu0 %v5639_v18  ;;  %5658 = vmatpush1.bf16.msra.mxu1 %v5657_v19  ;;  %9045 = vst [vmem:[#allocation28_spill] sm:$0xff] %v7242_v15  ;;  %vm3252_vm0 = vcmp.eq.s32.totalorder %v7242_v15, 0 }
 0x29a   : > { %5363 = vmatmul.mubr.msk.f32.gmra.mrb[52].mxu0 %vm2320_vm4, %v6976_v10  ;;  %5660 = vmatprep.subr.bf16.mxu1 %v5659_v21  ;;  %v5649_v10 = vpack.c.bf16 %v4202_v32, %v4200_v31 }
 0x29b   : > { %5359 = vmatmul.mubr.msk.f32.gmra.mrb[52].mxu1 %vm2204_vm5, %v6992_v27  ;;  %5642 = vmatpush1.bf16.msra.mxu0 %v5641_v25 }
 0x29c   : > { %4070 = vmatprep.mubr.f32.mxu1 %v6204_v55  ;;  %4174 = vmatprep.mubr.f32.mxu0 %v6204_v55 }
 0x29d   : > { %5644 = vmatprep.subr.bf16.mxu0 %v5643_v28  ;;  %5662 = vmatpush1.bf16.msra.mxu1 %v5661_v50 }
 0x29e   : > { %5364 = vmatmul.mubr.msk.f32.gmra.mrb[54].mxu0 %vm2320_vm4, %v6988_v24 }
 0x29f   : > { %5360 = vmatmul.mubr.msk.f32.gmra.mrb[54].mxu1 %vm2204_vm5, %v7001_v35  ;;  %5646 = vmatpush1.bf16.msra.mxu0 %v5645_v13 }
 0x2a0   : > { %5648 = vmatprep.subr.bf16.mxu0 %v5647_v8  ;;  %4372 = vmatprep.mubr.f32.mxu1 %v6204_v55 }
 0x2a1   : > { %4268 = vmatprep.mubr.f32.mxu0 %v6204_v55 }
 0x2a3   : > { %5650 = vmatpush1.bf16.msra.mxu0 %v5649_v10  ;;  %5369 = vmatmul.mubr.msk.f32.vlgmr.msra.gmra.mrb[56].mxu1 %vm2320_vm4, %v6102_v5 }
 0x2a4   : > { %4378 = vmatprep.mubr.f32.mxu1 %v6204_v55 }
 0x2a6   : > { %5365 = vmatmul.mubr.msk.f32.vlgmr.msra.gmra.mrb[56].mxu0 %vm2204_vm5, %v6103_v33 }
 0x2a7   : > { %5370 = vmatmul.mubr.msk.f32.gmra.mrb[58].mxu1 %vm2320_vm4, %v6104_v34  ;;  %4274 = vmatprep.mubr.f32.mxu0 %v6204_v55 }
 0x2a8   : > { %4384 = vmatprep.mubr.f32.mxu1 %v6204_v55 }
 0x2aa   : > { %5366 = vmatmul.mubr.msk.f32.gmra.mrb[58].mxu0 %vm2204_vm5, %v6105_v37 }
 0x2ab   : > { %5371 = vmatmul.mubr.msk.f32.gmra.mrb[60].mxu1 %vm2320_vm4, %v6106_v38  ;;  %4280 = vmatprep.mubr.f32.mxu0 %v6204_v55 }
 0x2ac   : > { %4390 = vmatprep.mubr.f32.mxu1 %v6204_v55 }
 0x2ae   : > { %5367 = vmatmul.mubr.msk.f32.gmra.mrb[60].mxu0 %vm2204_vm5, %v6992_v27  ;;  %v2148_v27 = vld [vmem:[%s6337_s8 + $0x8] sm:$0xff]  ;;  %s5378_s8 = sshll.u32 %s6189_s28, 5  ;;  %s6206_s28 = smov [#allocation4]  }
 0x2af   : > { %5372 = vmatmul.mubr.msk.f32.gmra.mrb[62].mxu1 %vm2320_vm4, %v6988_v24  ;;  %4286 = vmatprep.mubr.f32.mxu0 %v6204_v55  ;;  %v2149_v55 = vunpack.c.0.s8 %v2147_v44  ;;  %v2150_v46 = vunpack.c.0.s8 %v2148_v27  ;;  %v2152_v49 = vunpack.c.1.s8 %v2148_v27  ;;  %v2154_v53 = vunpack.c.2.s8 %v2148_v27  ;;  %s8796_s24 = scalar_lea.hbm %s9368_s29, %s5378_s8  ;;  %s6111_s18 = sshll.u32 %s6206_s28, 4  ;;  %s6112_s18 = int_to_ptr.vmem [resolvable:$false] %s6111_s18 }
 0x2b0   : > { %v2156_v3 = vunpack.c.3.s8 %v2148_v27  ;;  %vm3340_vm4 = vcmp.eq.s32.totalorder %v7242_v15, 1  ;;  %s6113_s23 = scalar_lea.vmem %s6112_s18, 64  ;;  %p6114_p6 = scmp.lt.s32.totalorder %s8798_s12, %s6112_s18 }
 0x2b1   : > { %v7195_v56 = vand.u32 255, %v2149_v55  ;;  %v7197_v57 = vand.u32 255, %v2150_v46  ;;  %v7205_v61 = vand.u32 255, %v2152_v49  ;;  %v7211_v1 = vand.u32 255, %v2154_v53  ;;  %p6115_p7 = scmp.lt.s32.totalorder %s6113_s23, %s6107_s7 }
 0x2b2   : > { %5368 = vmatmul.mubr.msk.f32.gmra.mrb[62].mxu0 %vm2204_vm5, %v7001_v35  ;;  %v7258_v20 = vand.u32 255, %v2156_v3 }
 0x2b3   : > { %9039 = vst [vmem:[#allocation22_spill] sm:$0xff] %v7195_v56  ;;  %9040 = vst [vmem:[#allocation23_spill] sm:$0xff] %v7197_v57  ;;  %vm3334_vm6 = vcmp.eq.s32.totalorder %v7195_v56, 1  ;;  %vm3246_vm7 = vcmp.eq.s32.totalorder %v7195_v56, 0  ;;  %vm3247_vm8 = vcmp.eq.s32.totalorder %v7197_v57, 0  ;;  %vm3335_vm9 = vcmp.eq.s32.totalorder %v7197_v57, 1  ;;  %p6116_p8 = por %p6115_p7, %p6114_p6 }
 0x2b4   : > { %9042 = vst [vmem:[#allocation25_spill] sm:$0xff] %v7205_v61  ;;  %vm3249_vm11 = vcmp.eq.s32.totalorder %v7205_v61, 0  ;;  %vm3251_vm13 = vcmp.eq.s32.totalorder %v7211_v1, 0  ;;  %9046 = vst [vmem:[#allocation29_spill] sm:$0xff] %v7258_v20  ;;  %vm3337_vm15 = vcmp.eq.s32.totalorder %v7205_v61, 1  ;;  %vm3253_vm2 = vcmp.eq.s32.totalorder %v7258_v20, 0 }
 0x2b5   : > { %vm3339_vm3 = vcmp.eq.s32.totalorder %v7211_v1, 1  ;;  %vm3341_vm5 = vcmp.eq.s32.totalorder %v7258_v20, 1  ;;  %p6117_p10 = pnand %p6116_p8, %p6110_p5 }
 0x2f6   : > { %v7171_v39 = vpop.f32.mrb[0].mxu1 }
 0x2f7   : > { %v7173_v40 = vpop.f32.mrb[1].mxu1  ;;  %v3262_v18 = vsel %vm3246_vm7, %v7171_v39, 0.0 }
 0x2f8   : > { %v3263_v19 = vsel %vm3247_vm8, %v7173_v40, 0.0 }
 0x2fa   : > { %v7175_v41 = vpop.f32.mrb[2].mxu1 }
 0x2fb   : > { %9033 = vst [vmem:[#allocation16_spill] sm:$0xff] %v7175_v41  ;;  %v7177_v42 = vpop.f32.mrb[3].mxu1  ;;  %v3264_v32 = vsel %vm3248_vm10, %v7175_v41, 0.0 }
 0x2fc   : > { %9034 = vst [vmem:[#allocation17_spill] sm:$0xff] %v7177_v42  ;;  %v3265_v10 = vsel %vm3249_vm11, %v7177_v42, 0.0 }
 0x2fd   : > { %v7179_v43 = vpop.f32.mrb[0].mxu0 }
 0x2fe   : > { %v7183_v45 = vpop.f32.mrb[1].mxu0  ;;  %v3254_v5 = vsel %vm3246_vm7, %v7179_v43, 0.0  ;;  %vm3423_vm7 = vcmp.eq.s32.totalorder %v7197_v57, 2 }
 0x2ff   : > { %v3255_v9 = vsel %vm3247_vm8, %v7183_v45, 0.0  ;;  %vm3424_vm8 = vcmp.eq.s32.totalorder %v7203_v60, 2 }
 0x300   : > { %v7185_v24 = vpop.f32.mrb[4].mxu1 }
 0x301   : > { %9035 = vst [vmem:[#allocation18_spill] sm:$0xff] %v7185_v24  ;;  %v7187_v47 = vpop.f32.mrb[2].mxu0  ;;  %v7189_v35 = vpop.f32.mrb[5].mxu1 }
 0x302   : > { %9036 = vst [vmem:[#allocation19_spill] sm:$0xff] %v7187_v47  ;;  %9037 = vst [vmem:[#allocation20_spill] sm:$0xff] %v7189_v35  ;;  %v7191_v51 = vpop.f32.mrb[3].mxu0  ;;  %v3256_v21 = vsel %vm3248_vm10, %v7187_v47, 0.0  ;;  %vm3426_vm10 = vcmp.eq.s32.totalorder %v7207_v63, 2 }
 0x303   : > { %v3257_v22 = vsel %vm3249_vm11, %v7191_v51, 0.0  ;;  %vm3427_vm11 = vcmp.eq.s32.totalorder %v7211_v1, 2 }
 0x304   : > { %v7193_v54 = vpop.f32.mrb[6].mxu1 }
 0x305   : > { %9038 = vst [vmem:[#allocation21_spill] sm:$0xff] %v7193_v54  ;;  %v7199_v58 = vpop.f32.mrb[4].mxu0  ;;  %v7201_v59 = vpop.f32.mrb[7].mxu1 }
 0x306   : > { %9041 = vst [vmem:[#allocation24_spill] sm:$0xff] %v7201_v59  ;;  %v7209_v0 = vpop.f32.mrb[5].mxu0  ;;  %v3258_v34 = vsel %vm3250_vm12, %v7199_v58, 0.0  ;;  %v3269_v11 = vsel %vm3253_vm2, %v7201_v59, 0.0 }
 0x307   : > { %v3259_v37 = vsel %vm3251_vm13, %v7209_v0, 0.0 }
 0x309   : > { %v7216_v4 = vpop.f32.mrb[6].mxu0 }
 0x30a   : > { %9043 = vst [vmem:[#allocation26_spill] sm:$0xff] %v7216_v4  ;;  %v7225_v6 = vpop.f32.mrb[8].mxu1  ;;  %v7227_v7 = vpop.f32.mrb[7].mxu0 }
 0x30b   : > { %9044 = vst [vmem:[#allocation27_spill] sm:$0xff] %v7227_v7  ;;  %v7238_v12 = vsel %vm3334_vm6, %v7225_v6, %v3254_v5  ;;  %v7240_v14 = vpop.f32.mrb[9].mxu1  ;;  %v3266_v5 = vsel %vm3250_vm12, %v7185_v24, 0.0  ;;  %vm3428_vm12 = vcmp.eq.s32.totalorder %v7242_v15, 2 }
 0x30c   : > { %v7249_v17 = vsel %vm3335_vm9, %v7240_v14, %v3255_v9  ;;  %v3267_v9 = vsel %vm3251_vm13, %v7189_v35, 0.0  ;;  %vm3429_vm13 = vcmp.eq.s32.totalorder %v7258_v20, 2 }
 0x30d   : > { %v7260_v62 = vpop.f32.mrb[8].mxu0 }
 0x30e   : > { %v7269_v23 = vpop.f32.mrb[10].mxu1  ;;  %v3078_v25 = vmax.f32 %v7171_v39, %v7260_v62  ;;  %v3350_v36 = vsel %vm3334_vm6, %v7260_v62, %v3262_v18  ;;  %v7276_v26 = vpop.f32.mrb[9].mxu0  ;;  %vm3422_vm6 = vcmp.eq.s32.totalorder %v7195_v56, 2 }
 0x30f   : > { %9047 = vst [vmem:[#allocation30_spill] sm:$0xff] %v7269_v23  ;;  %v7283_v50 = vsel %vm3336_vm14, %v7269_v23, %v3256_v21  ;;  %v7285_v29 = vpop.f32.mrb[11].mxu1  ;;  %v3079_v30 = vmax.f32 %v7173_v40, %v7276_v26  ;;  %v3351_v13 = vsel %vm3335_vm9, %v7276_v26, %v3263_v19  ;;  %v3260_v19 = vsel %vm3252_vm0, %v7216_v4, 0.0 }
 0x310   : > { %v7298_v31 = vsel %vm3337_vm15, %v7285_v29, %v3257_v22  ;;  %v3261_v21 = vsel %vm3253_vm2, %v7227_v7, 0.0  ;;  %vm3425_vm9 = vcmp.eq.s32.totalorder %v7205_v61, 2  ;;  %vm3514_vm2 = vcmp.eq.s32.totalorder %v7207_v63, 3 }
 0x311   : > { %v7308_v33 = vpop.f32.mrb[10].mxu0 }
 0x312   : > { %9048 = vst [vmem:[#allocation31_spill] sm:$0xff] %v7308_v33  ;;  %v7317_v38 = vpop.f32.mrb[12].mxu1  ;;  %v3080_v44 = vmax.f32 %v7175_v41, %v7308_v33  ;;  %v3352_v27 = vsel %vm3336_vm14, %v7308_v33, %v3264_v32  ;;  %v7324_v55 = vpop.f32.mrb[11].mxu0  ;;  %vm3510_vm14 = vcmp.eq.s32.totalorder %v7195_v56, 3 }
 0x313   : > { %9049 = vst [vmem:[#allocation32_spill] sm:$0xff] %v7317_v38  ;;  %9050 = vst [vmem:[#allocation33_spill] sm:$0xff] %v7324_v55  ;;  %v7331_v48 = vsel %vm3338_vm1, %v7317_v38, %v3258_v34  ;;  %v7333_v49 = vpop.f32.mrb[13].mxu1  ;;  %v3081_v52 = vmax.f32 %v7177_v42, %v7324_v55  ;;  %v3353_v53 = vsel %vm3337_vm15, %v7324_v55, %v3265_v10  ;;  %vm3511_vm15 = vcmp.eq.s32.totalorder %v7197_v57, 3 }
 0x314   : > { %v7345_v3 = vsel %vm3339_vm3, %v7333_v49, %v3259_v37  ;;  %v9059_v42 = vmax.f32 %v7183_v45, %v7240_v14  ;;  %v9070_v15 = vmax.f32 %v7209_v0, %v7333_v49 }
 0x315   : > { %v7354_v18 = vpop.f32.mrb[12].mxu0 }
 0x316   : > { %9051 = vst [vmem:[#allocation34_spill] sm:$0xff] %v7354_v18  ;;  %v7363_v22 = vpop.f32.mrb[14].mxu1  ;;  %v3082_v32 = vmax.f32 %v7185_v24, %v7354_v18  ;;  %v3354_v10 = vsel %vm3338_vm1, %v7354_v18, %v3266_v5  ;;  %v7370_v34 = vpop.f32.mrb[13].mxu0 }
 0x317   : > { %9052 = vst [vmem:[#allocation35_spill] sm:$0xff] %v7363_v22  ;;  %9053 = vst [vmem:[#allocation36_spill] sm:$0xff] %v7370_v34  ;;  %v7377_v2 = vsel %vm3340_vm4, %v7363_v22, %v3260_v19  ;;  %v7379_v46 = vpop.f32.mrb[15].mxu1  ;;  %v3083_v8 = vmax.f32 %v7189_v35, %v7370_v34  ;;  %v3355_v28 = vsel %vm3339_vm3, %v7370_v34, %v3267_v9  ;;  %v3268_v19 = vsel %vm3252_vm0, %v7193_v54, 0.0 }
 0x318   : > { %9054 = vst [vmem:[#allocation37_spill] sm:$0xff] %v7379_v46  ;;  %v7391_v37 = vsel %vm3341_vm5, %v7379_v46, %v3261_v21  ;;  %vm3512_vm0 = vcmp.eq.s32.totalorder %v7203_v60, 3  ;;  %vm3515_vm3 = vcmp.eq.s32.totalorder %v7211_v1, 3 }
 0x319   : > { %v7396_v16 = vpop.f32.mrb[14].mxu0 }
 0x31a   : > { %9055 = vst [vmem:[#allocation38_spill] sm:$0xff] %v7396_v16  ;;  %v3084_v9 = vmax.f32 %v7193_v54, %v7396_v16  ;;  %v3356_v5 = vsel %vm3340_vm4, %v7396_v16, %v3268_v19  ;;  %v7406_v34 = vpop.f32.mrb[15].mxu0 }
 0x31b   : > { %9056 = vst [vmem:[#allocation39_spill] sm:$0xff] %v7406_v34  ;;  %v3085_v21 = vmax.f32 %v7201_v59, %v7406_v34  ;;  %v3357_v35 = vsel %vm3341_vm5, %v7406_v34, %v3269_v11  ;;  %v9057_v11 = vmax.f32 %v7179_v43, %v7225_v6 }
 0x31d   : > { %v7415_v18 = vpop.f32.mrb[16].mxu0 }
 0x31e   : > { %v7417_v54 = vpop.f32.mrb[16].mxu1  ;;  %v3094_v24 = vmax.f32 %v3078_v25, %v7415_v18  ;;  %v3438_v19 = vsel %vm3422_vm6, %v7415_v18, %v3350_v36  ;;  %v7421_v16 = vpop.f32.mrb[17].mxu0 }
 0x31f   : > { %v7428_v34 = vmax.f32 %v9057_v11, %v7417_v54  ;;  %v7432_v59 = vsel %vm3422_vm6, %v7417_v54, %v7238_v12  ;;  %v7434_v55 = vpop.f32.mrb[17].mxu1  ;;  %v3095_v25 = vmax.f32 %v3079_v30, %v7421_v16  ;;  %v3439_v36 = vsel %vm3423_vm7, %v7421_v16, %v3351_v13 }
 0x320   : > { %9058 = vst [vmem:[#allocation40_spill] sm:$0xff] %v7434_v55  ;;  %v7442_v33 = vmax.f32 %v9059_v42, %v7434_v55  ;;  %v7446_v11 = vsel %vm3423_vm7, %v7434_v55, %v7249_v17  ;;  %v9062_v17 = vmax.f32 %v7187_v47, %v7269_v23  ;;  %v9063_v23 = vmax.f32 %v7191_v51, %v7285_v29 }
 0x321   : > { %v7449_v12 = vpop.f32.mrb[18].mxu0 }
 0x322   : > { %v7451_v41 = vpop.f32.mrb[18].mxu1  ;;  %v7454_v30 = vmax.f32 %v3080_v44, %v7449_v12  ;;  %v7459_v13 = vsel %vm3424_vm8, %v7449_v12, %v3352_v27  ;;  %v7461_v42 = vpop.f32.mrb[19].mxu0 }
 0x323   : > { %9060 = vst [vmem:[#allocation41_spill] sm:$0xff] %v7451_v41  ;;  %9061 = vst [vmem:[#allocation42_spill] sm:$0xff] %v7459_v13  ;;  %v7468_v61 = vmax.f32 %v9062_v17, %v7451_v41  ;;  %v7474_v44 = vsel %vm3424_vm8, %v7451_v41, %v7283_v50  ;;  %v7476_v55 = vpop.f32.mrb[19].mxu1  ;;  %v7479_v27 = vmax.f32 %v3081_v52, %v7461_v42  ;;  %vm4591_vm8 = vcmp.eq.s32.totalorder %v7203_v60, 4 }
 0x324   : > { %v7482_v13 = vsel %vm3425_vm9, %v7461_v42, %v3353_v53  ;;  %v7488_v17 = vmax.f32 %v9063_v23, %v7476_v55  ;;  %v7492_v47 = vsel %vm3425_vm9, %v7476_v55, %v7298_v31  ;;  %v9068_v31 = vmax.f32 %v7199_v58, %v7317_v38 }
 0x325   : > { %9064 = vst [vmem:[#allocation43_spill] sm:$0xff] %v7492_v47  ;;  %v7495_v50 = vpop.f32.mrb[20].mxu0 }
 0x326   : > { %v7497_v41 = vpop.f32.mrb[20].mxu1  ;;  %v7500_v52 = vmax.f32 %v3082_v32, %v7495_v50  ;;  %v7505_v53 = vsel %vm3426_vm10, %v7495_v50, %v3354_v10  ;;  %v7507_v23 = vpop.f32.mrb[21].mxu0 }
 0x327   : > { %9065 = vst [vmem:[#allocation44_spill] sm:$0xff] %v7497_v41  ;;  %9067 = vst [vmem:[#allocation46_spill] sm:$0xff] %v7505_v53  ;;  %v7514_v47 = vmax.f32 %v9068_v31, %v7497_v41  ;;  %v7520_v32 = vsel %vm3426_vm10, %v7497_v41, %v7331_v48  ;;  %v7525_v10 = vmax.f32 %v3083_v8, %v7507_v23  ;;  %vm4593_vm10 = vcmp.eq.s32.totalorder %v7207_v63, 4 }
 0x328   : > { %9066 = vst [vmem:[#allocation45_spill] sm:$0xff] %v7500_v52  ;;  %9069 = vst [vmem:[#allocation47_spill] sm:$0xff] %v7520_v32  ;;  %v7522_v52 = vpop.f32.mrb[21].mxu1  ;;  %v7528_v53 = vsel %vm3427_vm11, %v7507_v23, %v3355_v28 }
 0x329   : > { %v7534_v31 = vmax.f32 %v9070_v15, %v7522_v52  ;;  %v7538_v38 = vsel %vm3427_vm11, %v7522_v52, %v7345_v3  ;;  %v7541_v48 = vpop.f32.mrb[22].mxu0  ;;  %v9076_v15 = vmax.f32 %v7216_v4, %v7363_v22  ;;  %vm4594_vm11 = vcmp.eq.s32.totalorder %v7211_v1, 4 }
 0x32a   : > { %9071 = vst [vmem:[#allocation48_spill] sm:$0xff] %v7538_v38  ;;  %9072 = vst [vmem:[#allocation49_spill] sm:$0xff] %v7541_v48  ;;  %v7543_v32 = vpop.f32.mrb[22].mxu1  ;;  %v7546_v8 = vmax.f32 %v3084_v9, %v7541_v48  ;;  %v7549_v28 = vsel %vm3428_vm12, %v7541_v48, %v3356_v5  ;;  %v7551_v41 = vpop.f32.mrb[23].mxu0  ;;  %v9081_v48 = vmax.f32 %v7227_v7, %v7379_v46 }
 0x32b   : > { %9073 = vst [vmem:[#allocation50_spill] sm:$0xff] %v7543_v32  ;;  %9074 = vst [vmem:[#allocation51_spill] sm:$0xff] %v7549_v28  ;;  %v7557_v3 = vmax.f32 %v9076_v15, %v7543_v32  ;;  %v7561_v20 = vsel %vm3428_vm12, %v7543_v32, %v7377_v2  ;;  %v7563_v38 = vpop.f32.mrb[23].mxu1  ;;  %v7566_v9 = vmax.f32 %v3085_v21, %v7551_v41 }
 0x32c   : > { %9075 = vst [vmem:[#allocation52_spill] sm:$0xff] %v7551_v41  ;;  %9078 = vst [vmem:[#allocation54_spill] sm:$0xff] %v7561_v20  ;;  %v7569_v5 = vsel %vm3429_vm13, %v7551_v41, %v3357_v35  ;;  %v7575_v28 = vmax.f32 %v9081_v48, %v7563_v38  ;;  %v7579_v15 = vsel %vm3429_vm13, %v7563_v38, %v7391_v37 }
 0x32d   : > { %9077 = vst [vmem:[#allocation53_spill] sm:$0xff] %v7557_v3  ;;  %9079 = vst [vmem:[#allocation55_spill] sm:$0xff] %v7563_v38 }
 0x32e   : > { %9080 = vst [vmem:[#allocation56_spill] sm:$0xff] %v7569_v5  ;;  %9082 = vst [vmem:[#allocation57_spill] sm:$0xff] %v7575_v28  ;;  %v3047_v2 = vpop.f32.mrb[24].mxu1 }
 0x32f   : > { %9083 = vst [vmem:[#allocation58_spill] sm:$0xff] %v7579_v15  ;;  %v7583_v21 = vmax.f32 %v3094_v24, %v3047_v2  ;;  %v7587_v35 = vsel %vm3510_vm14, %v3047_v2, %v3438_v19  ;;  %v3049_v32 = vpop.f32.mrb[25].mxu1 }
 0x330   : > { %9085 = vst [vmem:[#allocation60_spill] sm:$0xff] %v7587_v35  ;;  %v7589_v22 = vmax.f32 %v3095_v25, %v3049_v32  ;;  %v7593_v48 = vsel %vm3511_vm15, %v3049_v32, %v3439_v36 }
 0x331   : > { %9084 = vst [vmem:[#allocation59_spill] sm:$0xff] %v7583_v21  ;;  %9087 = vst [vmem:[#allocation62_spill] sm:$0xff] %v7593_v48  ;;  %v3150_v37 = vsub.f32 -inf, %v7583_v21  ;;  %v3214_v38 = vsub.f32 %v7171_v39, %v7583_v21  ;;  %v3302_v24 = vsub.f32 %v7260_v62, %v7583_v21  ;;  %v3390_v46 = vsub.f32 %v7415_v18, %v7583_v21  ;;  %v2943_v19 = vpop.f32.mrb[24].mxu0 }
 0x332   : > { %9086 = vst [vmem:[#allocation61_spill] sm:$0xff] %v7589_v22  ;;  %v3478_v35 = vsub.f32 %v3047_v2, %v7583_v21  ;;  %v3151_v25 = vsub.f32 -inf, %v7589_v22  ;;  %v3215_v36 = vsub.f32 %v7173_v40, %v7589_v22  ;;  %v3303_v48 = vsub.f32 %v7276_v26, %v7589_v22  ;;  %v7608_v7 = vpop.f32.mrb[25].mxu0  ;;  %v7610_v39 = vpop.f32.mrb[26].mxu1 }
 0x333   : > { %v3158_v15 = vmul.f32 1.442695, %v3150_v37  ;;  %v3222_v62 = vmul.f32 1.442695, %v3214_v38  ;;  %v3310_v28 = vmul.f32 1.442695, %v3302_v24  ;;  %v3391_v18 = vsub.f32 %v7421_v16, %v7589_v22 }
 0x334   : > { %v3398_v4 = vmul.f32 1.442695, %v3390_v46  ;;  %v3486_v2 = vmul.f32 1.442695, %v3478_v35  ;;  %v3160_v21 = vmul.f32 1.442695, %v3151_v25  ;;  %v3479_v20 = vsub.f32 %v3049_v32, %v7589_v22 }
 0x335   : > { %5750 = vpow2.f32 %v3158_v15  ;;  %v3224_v40 = vmul.f32 1.442695, %v3215_v36  ;;  %v3312_v3 = vmul.f32 1.442695, %v3303_v48  ;;  %v3400_v5 = vmul.f32 1.442695, %v3391_v18 }
 0x336   : > { %5752 = vpow2.f32 %v3222_v62  ;;  %v3488_v26 = vmul.f32 1.442695, %v3479_v20  ;;  %v7616_v41 = vmax.f32 %v7428_v34, %v2943_v19  ;;  %v7621_v38 = vsel %vm3510_vm14, %v2943_v19, %v7432_v59  ;;  %v7624_v16 = vpop.f32.mrb[27].mxu1  ;;  %v7626_v46 = vpop.f32.mrb[26].mxu0 }
 0x337   : > { %9089 = vst [vmem:[#allocation64_spill] sm:$0xff] %v7621_v38  ;;  %5754 = vpow2.f32 %v3310_v28  ;;  %v7630_v32 = vmax.f32 %v7442_v33, %v7608_v7  ;;  %v7636_v20 = vsel %vm3511_vm15, %v7608_v7, %v7446_v11  ;;  %v7640_v59 = vmax.f32 %v7454_v30, %v7610_v39  ;;  %v7642_v34 = vpop.f32.mrb[27].mxu0  ;;  %v7644_v15 = vpop.f32.mrb[28].mxu1 }
 0x338   : > { %9088 = vst [vmem:[#allocation63_spill] sm:$0xff] %v7616_v41  ;;  %9091 = vst [vmem:[#allocation66_spill] sm:$0xff] %v7636_v20  ;;  %5756 = vpow2.f32 %v3398_v4  ;;  %v3118_v28 = vsub.f32 -inf, %v7616_v41  ;;  %v3182_v33 = vsub.f32 %v7179_v43, %v7616_v41  ;;  %v3270_v35 = vsub.f32 %v7225_v6, %v7616_v41  ;;  %v7651_v48 = vpop.f32.mrb[29].mxu1 }
 0x339   : > { %9090 = vst [vmem:[#allocation65_spill] sm:$0xff] %v7630_v32  ;;  %9092 = vst [vmem:[#allocation67_spill] sm:$0xff] %v7640_v59  ;;  %5758 = vpow2.f32 %v3486_v2  ;;  %v3358_v11 = vsub.f32 %v7417_v54, %v7616_v41  ;;  %v3446_v30 = vsub.f32 %v2943_v19, %v7616_v41  ;;  %v3119_v37 = vsub.f32 -inf, %v7630_v32  ;;  %v7657_v24 = vpop.f32.mrb[28].mxu0  ;;  %v9093_v19 = vld [vmem:[#allocation40_spill] sm:$0xff]  ;;  %v9094_v41 = vld [vmem:[#allocation25_spill] sm:$0xff] }
 0x33a   : > { %5760 = vpow2.f32 %v3160_v21  ;;  %v3126_v4 = vmul.f32 1.442695, %v3118_v28  ;;  %v3190_v25 = vmul.f32 1.442695, %v3182_v33  ;;  %v3278_v36 = vmul.f32 1.442695, %v3270_v35 }
 0x33b   : > { %5762 = vpow2.f32 %v3224_v40  ;;  %v3366_v43 = vmul.f32 1.442695, %v3358_v11  ;;  %v3454_v62 = vmul.f32 1.442695, %v3446_v30  ;;  %v3128_v6 = vmul.f32 1.442695, %v3119_v37 }
 0x33c   : > { %5764 = vpow2.f32 %v3312_v3  ;;  %v3183_v18 = vsub.f32 %v7183_v45, %v7630_v32  ;;  %v3271_v54 = vsub.f32 %v7240_v14, %v7630_v32  ;;  %v3359_v2 = vsub.f32 %v9093_v19, %v7630_v32  ;;  %v7666_v21 = vpop.f32.mrb[29].mxu0  ;;  %v7668_v28 = vpop.f32.mrb[30].mxu1  ;;  %v9095_v45 = vld [vmem:[#allocation16_spill] sm:$0xff] }
 0x33d   : > { %vm3513_vm1 = vcmp.eq.s32.totalorder %v9094_v41, 3  ;;  %5766 = vpow2.f32 %v3400_v5  ;;  %v3447_v40 = vsub.f32 %v7608_v7, %v7630_v32  ;;  %v3152_v3 = vsub.f32 -inf, %v7640_v59  ;;  %v7675_v35 = vpop.f32.mrb[31].mxu1  ;;  %v7677_v14 = vpop.f32.mrb[30].mxu0  ;;  %v9097_v32 = vld [vmem:[#allocation31_spill] sm:$0xff] }
 0x33e   : > { %v3216_v33 = vsub.f32 %v9095_v45, %v7640_v59  ;;  %9096 = vst [vmem:[#allocation40_spill] sm:$0xff] %v7677_v14  ;;  %5768 = vpow2.f32 %v3488_v26  ;;  %v3192_v11 = vmul.f32 1.442695, %v3183_v18  ;;  %v3280_v30 = vmul.f32 1.442695, %v3271_v54  ;;  %v7683_v56 = vpop.f32.mrb[31].mxu0 }
 0x33f   : > { %v3368_v37 = vmul.f32 1.442695, %v3359_v2  ;;  %v5751_v19 = vpop.eup %5750  ;;  %5770 = vpow2.f32 %v3126_v4  ;;  %v3456_v22 = vmul.f32 1.442695, %v3447_v40  ;;  %v3162_v5 = vmul.f32 1.442695, %v3152_v3 }
 0x340   : > { %v3226_v20 = vmul.f32 1.442695, %v3216_v33  ;;  %v5753_v38 = vpop.eup %5752  ;;  %v3174_v7 = vmul.f32 0.0, %v5751_v19  ;;  %5772 = vpow2.f32 %v3190_v25  ;;  %v3304_v57 = vsub.f32 %v9097_v32, %v7640_v59  ;;  %9098 = vst [vmem:[#allocation25_spill] sm:$0xff] %v7683_v56  ;;  %v9099_v4 = vld [vmem:[#allocation42_spill] sm:$0xff] }
 0x341   : > { %v3392_v45 = vsub.f32 %v7449_v12, %v7640_v59  ;;  %v5755_v26 = vpop.eup %5754  ;;  %5774 = vpow2.f32 %v3278_v36  ;;  %v3480_v18 = vsub.f32 %v7610_v39, %v7640_v59  ;;  %v7691_v54 = vsel %vm3512_vm0, %v7610_v39, %v9099_v4  ;;  %v7697_v32 = vpop.f32.mrb[32].mxu0  ;;  %v9105_v4 = vld [vmem:[#allocation17_spill] sm:$0xff] }
 0x342   : > { %9100 = vst [vmem:[#allocation16_spill] sm:$0xff] %v7691_v54  ;;  %v7695_v25 = vmax.f32 %v7479_v27, %v7624_v16  ;;  %9102 = vst [vmem:[#allocation42_spill] sm:$0xff] %v7697_v32  ;;  %v5757_v12 = vpop.eup %5756  ;;  %v3238_v2 = vadd.f32 %v5753_v38, %v3174_v7  ;;  %5776 = vpow2.f32 %v3366_v43  ;;  %v3314_v40 = vmul.f32 1.442695, %v3304_v57  ;;  %v7699_v3 = vpop.f32.mrb[32].mxu1  ;;  %v9107_v57 = vld [vmem:[#allocation33_spill] sm:$0xff] }
 0x343   : > { %v3402_v36 = vmul.f32 1.442695, %v3392_v45  ;;  %9103 = vst [vmem:[#allocation68_spill] sm:$0xff] %v7699_v3  ;;  %v7701_v33 = vpop.f32.mrb[33].mxu0  ;;  %v5759_v19 = vpop.eup %5758  ;;  %5778 = vpow2.f32 %v3454_v62  ;;  %v3490_v59 = vmul.f32 1.442695, %v3480_v18 }
 0x344   : > { %9101 = vst [vmem:[#allocation31_spill] sm:$0xff] %v7695_v25  ;;  %9104 = vst [vmem:[#allocation69_spill] sm:$0xff] %v7701_v33  ;;  %v3153_v39 = vsub.f32 -inf, %v7695_v25  ;;  %v3217_v27 = vsub.f32 %v9105_v4, %v7695_v25  ;;  %v7706_v54 = vpop.f32.mrb[33].mxu1  ;;  %v5761_v32 = vpop.eup %5760  ;;  %v3326_v56 = vadd.f32 %v5755_v26, %v3238_v2  ;;  %5780 = vpow2.f32 %v3128_v6 }
 0x345   : > { %9106 = vst [vmem:[#allocation17_spill] sm:$0xff] %v7706_v54  ;;  %v3305_v38 = vsub.f32 %v9107_v57, %v7695_v25  ;;  %v3393_v43 = vsub.f32 %v7461_v42, %v7695_v25  ;;  %v5763_v7 = vpop.eup %5762  ;;  %v3175_v45 = vmul.f32 0.0, %v5761_v32  ;;  %5782 = vpow2.f32 %v3192_v11  ;;  %v7712_v33 = vpop.f32.mrb[34].mxu0 }
 0x346   : > { %v3164_v62 = vmul.f32 1.442695, %v3153_v39  ;;  %v3228_v18 = vmul.f32 1.442695, %v3217_v27  ;;  %v5765_v3 = vpop.eup %5764  ;;  %v3414_v4 = vadd.f32 %v5757_v12, %v3326_v56  ;;  %5784 = vpow2.f32 %v3280_v30  ;;  %v7716_v6 = vpop.f32.mrb[34].mxu1 }
 0x347   : > { %v3316_v54 = vmul.f32 1.442695, %v3305_v38  ;;  %v7714_v14 = vmul.f32 1.442695, %v3393_v43  ;;  %9108 = vst [vmem:[#allocation33_spill] sm:$0xff] %v7716_v6  ;;  %v7718_v26 = vpop.f32.mrb[35].mxu0  ;;  %v5767_v2 = vpop.eup %5766  ;;  %v3239_v57 = vadd.f32 %v5763_v7, %v3175_v45  ;;  %5786 = vpow2.f32 %v3368_v37 }
 0x348   : > { %9109 = vst [vmem:[#allocation70_spill] sm:$0xff] %v7718_v26  ;;  %v3481_v42 = vsub.f32 %v7624_v16, %v7695_v25  ;;  %v7726_v11 = vsel %vm3513_vm1, %v7624_v16, %v7482_v13  ;;  %v7728_v56 = vpop.f32.mrb[35].mxu1  ;;  %v5769_v30 = vpop.eup %5768  ;;  %v7730_v32 = vadd.f32 %v5759_v19, %v3414_v4  ;;  %5788 = vpow2.f32 %v3456_v22  ;;  %v9114_v43 = vld [vmem:[#allocation19_spill] sm:$0xff] }
 0x349   : > { %v7734_v12 = vmax.f32 %v7468_v61, %v7626_v46  ;;  %v7740_v37 = vsel %vm3512_vm0, %v7626_v46, %v7474_v44  ;;  %v5771_v39 = vpop.eup %5770  ;;  %v3327_v27 = vadd.f32 %v5765_v3, %v3239_v57  ;;  %5790 = vpow2.f32 %v3162_v5  ;;  %v7746_v19 = vpop.f32.mrb[36].mxu0  ;;  %v9118_v57 = vld [vmem:[#allocation41_spill] sm:$0xff] }
 0x34a   : > { %9110 = vst [vmem:[#allocation71_spill] sm:$0xff] %v7730_v32  ;;  %v3492_v13 = vmul.f32 1.442695, %v3481_v42  ;;  %v7744_v16 = vmax.f32 %v7488_v17, %v7642_v34  ;;  %9113 = vst [vmem:[#allocation74_spill] sm:$0xff] %v7746_v19  ;;  %v5773_v22 = vpop.eup %5772  ;;  %v3142_v38 = vmul.f32 0.0, %v5771_v39  ;;  %5792 = vpow2.f32 %v3226_v20  ;;  %v7751_v44 = vpop.f32.mrb[36].mxu1 }
 0x34b   : > { %9111 = vst [vmem:[#allocation72_spill] sm:$0xff] %v7734_v12  ;;  %v3120_v61 = vsub.f32 -inf, %v7734_v12  ;;  %v3184_v7 = vsub.f32 %v9114_v43, %v7734_v12  ;;  %9115 = vst [vmem:[#allocation19_spill] sm:$0xff] %v7751_v44  ;;  %v7753_v45 = vpop.f32.mrb[37].mxu0  ;;  %v5775_v5 = vpop.eup %5774  ;;  %v3415_v3 = vadd.f32 %v5767_v2, %v3327_v27  ;;  %5794 = vpow2.f32 %v3314_v40  ;;  %v9117_v17 = vld [vmem:[#allocation30_spill] sm:$0xff] }
 0x34c   : > { %9112 = vst [vmem:[#allocation73_spill] sm:$0xff] %v7744_v16  ;;  %9116 = vst [vmem:[#allocation75_spill] sm:$0xff] %v7753_v45  ;;  %v3272_v4 = vsub.f32 %v9117_v17, %v7734_v12  ;;  %v3360_v42 = vsub.f32 %v9118_v57, %v7734_v12  ;;  %v7759_v39 = vpop.f32.mrb[37].mxu1  ;;  %v5777_v20 = vpop.eup %5776  ;;  %v3206_v25 = vadd.f32 %v5773_v22, %v3142_v38  ;;  %5796 = vpow2.f32 %v3402_v36 }
 0x34d   : > { %9119 = vst [vmem:[#allocation30_spill] sm:$0xff] %v7759_v39  ;;  %v3130_v32 = vmul.f32 1.442695, %v3120_v61  ;;  %v3194_v43 = vmul.f32 1.442695, %v3184_v7  ;;  %v5779_v19 = vpop.eup %5778  ;;  %v7761_v44 = vadd.f32 %v5769_v30, %v3415_v3  ;;  %5798 = vpow2.f32 %v3490_v59  ;;  %v7763_v40 = vpop.f32.mrb[38].mxu0 }
 0x34e   : > { %v3282_v45 = vmul.f32 1.442695, %v3272_v4  ;;  %v3370_v2 = vmul.f32 1.442695, %v3360_v42  ;;  %9121 = vst [vmem:[#allocation76_spill] sm:$0xff] %v7763_v40  ;;  %v5781_v27 = vpop.eup %5780  ;;  %v3294_v17 = vadd.f32 %v5775_v5, %v3206_v25  ;;  %5800 = vpow2.f32 %v3164_v62  ;;  %v7769_v36 = vpop.f32.mrb[38].mxu1 }
 0x34f   : > { %9120 = vst [vmem:[#allocation41_spill] sm:$0xff] %v7761_v44  ;;  %v3448_v57 = vsub.f32 %v7626_v46, %v7734_v12  ;;  %v3121_v39 = vsub.f32 -inf, %v7744_v16  ;;  %9122 = vst [vmem:[#allocation77_spill] sm:$0xff] %v7769_v36  ;;  %v7771_v22 = vpop.f32.mrb[39].mxu0  ;;  %v5783_v30 = vpop.eup %5782  ;;  %v3143_v59 = vmul.f32 0.0, %v5781_v27  ;;  %5802 = vpow2.f32 %v3228_v18 }
 0x350   : > { %9123 = vst [vmem:[#allocation78_spill] sm:$0xff] %v7771_v22  ;;  %v3185_v38 = vsub.f32 %v7191_v51, %v7744_v16  ;;  %v3273_v25 = vsub.f32 %v7285_v29, %v7744_v16  ;;  %v7778_v46 = vpop.f32.mrb[39].mxu1  ;;  %v5785_v62 = vpop.eup %5784  ;;  %v3382_v61 = vadd.f32 %v5777_v20, %v3294_v17  ;;  %5804 = vpow2.f32 %v3316_v54  ;;  %v9126_v17 = vld [vmem:[#allocation43_spill] sm:$0xff] }
 0x351   : > { %9124 = vst [vmem:[#allocation79_spill] sm:$0xff] %v7778_v46  ;;  %v3458_v7 = vmul.f32 1.442695, %v3448_v57  ;;  %v3132_v5 = vmul.f32 1.442695, %v3121_v39  ;;  %v5787_v3 = vpop.eup %5786  ;;  %v3207_v4 = vadd.f32 %v5783_v30, %v3143_v59  ;;  %5806 = vpow2.f32 %v7714_v14 }
 0x352   : > { %v3196_v18 = vmul.f32 1.442695, %v3185_v38  ;;  %v3284_v42 = vmul.f32 1.442695, %v3273_v25  ;;  %v5789_v27 = vpop.eup %5788  ;;  %v7781_v51 = vadd.f32 %v5779_v19, %v3382_v61  ;;  %5808 = vpow2.f32 %v3492_v13  ;;  %v7787_v20 = vpop.f32.mrb[40].mxu1  ;;  %v9127_v19 = vld [vmem:[#allocation45_spill] sm:$0xff] }
 0x353   : > { %v3361_v29 = vsub.f32 %v7476_v55, %v7744_v16  ;;  %v3449_v12 = vsub.f32 %v7642_v34, %v7744_v16  ;;  %v5791_v54 = vpop.eup %5790  ;;  %v3295_v39 = vadd.f32 %v5785_v62, %v3207_v4  ;;  %5810 = vpow2.f32 %v3130_v32  ;;  %v7799_v57 = vpop.f32.mrb[41].mxu1  ;;  %v9129_v61 = vld [vmem:[#allocation18_spill] sm:$0xff] }
 0x354   : > { %9125 = vst [vmem:[#allocation80_spill] sm:$0xff] %v7781_v51  ;;  %v7793_v14 = vsel %vm3513_vm1, %v7642_v34, %v9126_v17  ;;  %v7797_v13 = vmax.f32 %v9127_v19, %v7644_v15  ;;  %v5793_v55 = vpop.eup %5792  ;;  %v3176_v30 = vmul.f32 0.0, %v5791_v54  ;;  %5812 = vpow2.f32 %v3194_v43  ;;  %v9131_v16 = vld [vmem:[#allocation34_spill] sm:$0xff] }
 0x355   : > { %v3372_v59 = vmul.f32 1.442695, %v3361_v29  ;;  %v3460_v38 = vmul.f32 1.442695, %v3449_v12  ;;  %v5795_v25 = vpop.eup %5794  ;;  %v3383_v62 = vadd.f32 %v5787_v3, %v3295_v39  ;;  %5814 = vpow2.f32 %v3282_v45  ;;  %v7804_v4 = vpop.f32.mrb[40].mxu0 }
 0x356   : > { %9128 = vst [vmem:[#allocation43_spill] sm:$0xff] %v7797_v13  ;;  %v3154_v32 = vsub.f32 -inf, %v7797_v13  ;;  %v3218_v34 = vsub.f32 %v9129_v61, %v7797_v13  ;;  %9130 = vst [vmem:[#allocation45_spill] sm:$0xff] %v7804_v4  ;;  %v5797_v17 = vpop.eup %5796  ;;  %v3240_v19 = vadd.f32 %v5793_v55, %v3176_v30  ;;  %5816 = vpow2.f32 %v3370_v2  ;;  %v7810_v12 = vpop.f32.mrb[41].mxu0 }
 0x357   : > { %v3306_v51 = vsub.f32 %v9131_v16, %v7797_v13  ;;  %v3394_v43 = vsub.f32 %v7495_v50, %v7797_v13  ;;  %v7812_v3 = vpop.f32.mrb[42].mxu1  ;;  %v5799_v45 = vpop.eup %5798  ;;  %v7814_v29 = vadd.f32 %v5789_v27, %v3383_v62  ;;  %5818 = vpow2.f32 %v3458_v7 }
 0x358   : > { %9132 = vst [vmem:[#allocation18_spill] sm:$0xff] %v7812_v3  ;;  %v3166_v54 = vmul.f32 1.442695, %v3154_v32  ;;  %v3230_v39 = vmul.f32 1.442695, %v3218_v34  ;;  %v7816_v61 = vpop.f32.mrb[43].mxu1  ;;  %v5801_v55 = vpop.eup %5800  ;;  %v3328_v2 = vadd.f32 %v5795_v25, %v3240_v19  ;;  %5820 = vpow2.f32 %v3132_v5 }
 0x359   : > { %9133 = vst [vmem:[#allocation34_spill] sm:$0xff] %v7814_v29  ;;  %9134 = vst [vmem:[#allocation81_spill] sm:$0xff] %v7816_v61  ;;  %v3318_v30 = vmul.f32 1.442695, %v3306_v51  ;;  %v3406_v16 = vmul.f32 1.442695, %v3394_v43  ;;  %v5803_v44 = vpop.eup %5802  ;;  %5822 = vpow2.f32 %v3196_v18  ;;  %v3482_v50 = vsub.f32 %v7644_v15, %v7797_v13 }
 0x35a   : > { %v3177_v4 = vmul.f32 0.0, %v5801_v55  ;;  %v9135_v3 = vld [vmem:[#allocation46_spill] sm:$0xff]  ;;  %v7826_v27 = vpop.f32.mrb[42].mxu0  ;;  %v5805_v62 = vpop.eup %5804  ;;  %v3416_v32 = vadd.f32 %v5797_v17, %v3328_v2  ;;  %5824 = vpow2.f32 %v3284_v42  ;;  %v7830_v5 = vmax.f32 %v7525_v10, %v7651_v48 }
 0x35b   : > { %v7824_v7 = vsel %vm3514_vm2, %v7644_v15, %v9135_v3  ;;  %9136 = vst [vmem:[#allocation46_spill] sm:$0xff] %v7826_v27  ;;  %v7836_v18 = vsel %vm3515_vm3, %v7651_v48, %v7528_v53  ;;  %v7838_v51 = vpop.f32.mrb[43].mxu0  ;;  %v7840_v25 = vpop.f32.mrb[44].mxu1  ;;  %5826 = vpow2.f32 %v3372_v59  ;;  %v3494_v19 = vmul.f32 1.442695, %v3482_v50  ;;  %v9142_v3 = vld [vmem:[#allocation20_spill] sm:$0xff] }
 0x35c   : > { %9137 = vst [vmem:[#allocation82_spill] sm:$0xff] %v7830_v5  ;;  %9138 = vst [vmem:[#allocation83_spill] sm:$0xff] %v7838_v51  ;;  %v5807_v15 = vpop.eup %5806  ;;  %v3241_v34 = vadd.f32 %v5803_v44, %v3177_v4  ;;  %v7844_v42 = vmax.f32 %v7514_v47, %v7657_v24  ;;  %v7846_v10 = vpop.f32.mrb[45].mxu1  ;;  %v7848_v43 = vadd.f32 %v5799_v45, %v3416_v32  ;;  %5828 = vpow2.f32 %v3460_v38  ;;  %v9143_v44 = vld [vmem:[#allocation36_spill] sm:$0xff] }
 0x35d   : > { %9140 = vst [vmem:[#allocation85_spill] sm:$0xff] %v7846_v10  ;;  %v5809_v17 = vpop.eup %5808  ;;  %v3155_v53 = vsub.f32 -inf, %v7830_v5  ;;  %v3219_v55 = vsub.f32 %v9142_v3, %v7830_v5  ;;  %5830 = vpow2.f32 %v3166_v54  ;;  %v3307_v59 = vsub.f32 %v9143_v44, %v7830_v5  ;;  %v7857_v4 = vpop.f32.mrb[44].mxu0 }
 0x35e   : > { %9139 = vst [vmem:[#allocation84_spill] sm:$0xff] %v7844_v42  ;;  %9141 = vst [vmem:[#allocation86_spill] sm:$0xff] %v7848_v43  ;;  %v5811_v2 = vpop.eup %5810  ;;  %v3329_v13 = vadd.f32 %v5805_v62, %v3241_v34  ;;  %v3395_v47 = vsub.f32 %v7507_v23, %v7830_v5  ;;  %5832 = vpow2.f32 %v3230_v39  ;;  %v7859_v43 = vpop.f32.mrb[45].mxu0  ;;  %v3483_v23 = vsub.f32 %v7651_v48, %v7830_v5 }
 0x35f   : > { %9144 = vst [vmem:[#allocation20_spill] sm:$0xff] %v7857_v4  ;;  %v5813_v50 = vpop.eup %5812  ;;  %v3144_v45 = vmul.f32 0.0, %v5811_v2  ;;  %v3168_v38 = vmul.f32 1.442695, %v3155_v53  ;;  %v3232_v32 = vmul.f32 1.442695, %v3219_v55  ;;  %5834 = vpow2.f32 %v3318_v30 }
 0x360   : > { %9145 = vst [vmem:[#allocation36_spill] sm:$0xff] %v7859_v43  ;;  %v5815_v29 = vpop.eup %5814  ;;  %v3417_v3 = vadd.f32 %v5807_v15, %v3329_v13  ;;  %v3320_v62 = vmul.f32 1.442695, %v3307_v59  ;;  %v3408_v54 = vmul.f32 1.442695, %v3395_v47  ;;  %v7861_v34 = vpop.f32.mrb[46].mxu1  ;;  %5836 = vpow2.f32 %v3406_v16 }
 0x361   : > { %9146 = vst [vmem:[#allocation87_spill] sm:$0xff] %v7861_v34  ;;  %v5817_v44 = vpop.eup %5816  ;;  %v3208_v10 = vadd.f32 %v5813_v50, %v3144_v45  ;;  %v3122_v2 = vsub.f32 -inf, %v7844_v42  ;;  %v7866_v39 = vpop.f32.mrb[47].mxu1  ;;  %5838 = vpow2.f32 %v3494_v19  ;;  %v3186_v13 = vsub.f32 %v7199_v58, %v7844_v42  ;;  %v9149_v30 = vld [vmem:[#allocation32_spill] sm:$0xff] }
 0x362   : > { %9147 = vst [vmem:[#allocation88_spill] sm:$0xff] %v7866_v39  ;;  %v5819_v53 = vpop.eup %5818  ;;  %v7868_v55 = vadd.f32 %v5809_v17, %v3417_v3  ;;  %v3274_v15 = vsub.f32 %v9149_v30, %v7844_v42  ;;  %v9150_v59 = vld [vmem:[#allocation28_spill] sm:$0xff]  ;;  %v7875_v16 = vpop.f32.mrb[46].mxu0  ;;  %5840 = vpow2.f32 %v3168_v38  ;;  %v3496_v50 = vmul.f32 1.442695, %v3483_v23  ;;  %v9154_v38 = vld [vmem:[#allocation47_spill] sm:$0xff] }
 0x363   : > { %vm3516_vm4 = vcmp.eq.s32.totalorder %v9150_v59, 3  ;;  %9151 = vst [vmem:[#allocation32_spill] sm:$0xff] %v7875_v16  ;;  %v5821_v47 = vpop.eup %5820  ;;  %v3296_v48 = vadd.f32 %v5815_v29, %v3208_v10  ;;  %v3134_v45 = vmul.f32 1.442695, %v3122_v2  ;;  %v7877_v5 = vpop.f32.mrb[47].mxu0  ;;  %5842 = vpow2.f32 %v3232_v32  ;;  %v9153_v30 = vld [vmem:[#allocation44_spill] sm:$0xff] }
 0x364   : > { %9148 = vst [vmem:[#allocation89_spill] sm:$0xff] %v7868_v55  ;;  %9152 = vst [vmem:[#allocation90_spill] sm:$0xff] %v7877_v5  ;;  %v5823_v17 = vpop.eup %5822  ;;  %v3145_v3 = vmul.f32 0.0, %v5821_v47  ;;  %v3198_v19 = vmul.f32 1.442695, %v3186_v13  ;;  %5844 = vpow2.f32 %v3320_v62  ;;  %v3362_v34 = vsub.f32 %v9153_v30, %v7844_v42 }
 0x365   : > { %v3286_v55 = vmul.f32 1.442695, %v3274_v15  ;;  %v5825_v58 = vpop.eup %5824  ;;  %v3384_v39 = vadd.f32 %v5817_v44, %v3296_v48  ;;  %v3450_v16 = vsub.f32 %v7657_v24, %v7844_v42  ;;  %5846 = vpow2.f32 %v3408_v54  ;;  %v7893_v62 = vpop.f32.mrb[48].mxu0 }
 0x366   : > { %v5827_v29 = vpop.eup %5826  ;;  %v3209_v10 = vadd.f32 %v5823_v17, %v3145_v3  ;;  %v7887_v23 = vsel %vm3514_vm2, %v7657_v24, %v9154_v38  ;;  %v7891_v32 = vmax.f32 %v7534_v31, %v7666_v21  ;;  %9156 = vst [vmem:[#allocation47_spill] sm:$0xff] %v7893_v62  ;;  %5848 = vpow2.f32 %v3496_v50  ;;  %v7897_v47 = vpop.f32.mrb[48].mxu1  ;;  %v9237_v62 = vld [vmem:[#allocation45_spill] sm:$0xff] }
 0x367   : > { %v5829_v44 = vpop.eup %5828  ;;  %v7895_v2 = vadd.f32 %v5819_v53, %v3384_v39  ;;  %v3374_v13 = vmul.f32 1.442695, %v3362_v34  ;;  %v3462_v15 = vmul.f32 1.442695, %v3450_v16  ;;  %9158 = vst [vmem:[#allocation92_spill] sm:$0xff] %v7897_v47  ;;  %v7899_v54 = vpop.f32.mrb[49].mxu0  ;;  %5850 = vpow2.f32 %v3134_v45 }
 0x368   : > { %9155 = vst [vmem:[#allocation44_spill] sm:$0xff] %v7891_v32  ;;  %9159 = vst [vmem:[#allocation93_spill] sm:$0xff] %v7899_v54  ;;  %v5831_v48 = vpop.eup %5830  ;;  %v3297_v17 = vadd.f32 %v5825_v58, %v3209_v10  ;;  %v3123_v24 = vsub.f32 -inf, %v7891_v32  ;;  %v3187_v31 = vsub.f32 %v7209_v0, %v7891_v32  ;;  %v7904_v3 = vpop.f32.mrb[49].mxu1  ;;  %5852 = vpow2.f32 %v3198_v19 }
 0x369   : > { %9157 = vst [vmem:[#allocation91_spill] sm:$0xff] %v7895_v2  ;;  %9160 = vst [vmem:[#allocation94_spill] sm:$0xff] %v7904_v3  ;;  %v5833_v30 = vpop.eup %5832  ;;  %v3178_v39 = vmul.f32 0.0, %v5831_v48  ;;  %v3275_v34 = vsub.f32 %v7333_v49, %v7891_v32  ;;  %v3363_v53 = vsub.f32 %v7522_v52, %v7891_v32  ;;  %5854 = vpow2.f32 %v3286_v55  ;;  %v7910_v10 = vpop.f32.mrb[50].mxu0  ;;  %v9165_v55 = vld [vmem:[#allocation48_spill] sm:$0xff] }
 0x36a   : > { %v5835_v16 = vpop.eup %5834  ;;  %v3385_v50 = vadd.f32 %v5827_v29, %v3297_v17  ;;  %v3136_v45 = vmul.f32 1.442695, %v3123_v24  ;;  %v3200_v58 = vmul.f32 1.442695, %v3187_v31  ;;  %9161 = vst [vmem:[#allocation95_spill] sm:$0xff] %v7910_v10  ;;  %5856 = vpow2.f32 %v3374_v13  ;;  %v7912_v48 = vpop.f32.mrb[50].mxu1 }
 0x36b   : > { %v5837_v38 = vpop.eup %5836  ;;  %v3242_v0 = vadd.f32 %v5833_v30, %v3178_v39  ;;  %v3288_v42 = vmul.f32 1.442695, %v3275_v34  ;;  %v3376_v2 = vmul.f32 1.442695, %v3363_v53  ;;  %9162 = vst [vmem:[#allocation96_spill] sm:$0xff] %v7912_v48  ;;  %v7914_v19 = vpop.f32.mrb[51].mxu0  ;;  %5858 = vpow2.f32 %v3462_v15 }
 0x36c   : > { %9163 = vst [vmem:[#allocation97_spill] sm:$0xff] %v7914_v19  ;;  %v5839_v49 = vpop.eup %5838  ;;  %v7916_v54 = vadd.f32 %v5829_v44, %v3385_v50  ;;  %v3451_v52 = vsub.f32 %v7666_v21, %v7891_v32  ;;  %v7924_v29 = vsel %vm3515_vm3, %v7666_v21, %v9165_v55  ;;  %v9166_v13 = vld [vmem:[#allocation29_spill] sm:$0xff]  ;;  %v7927_v17 = vpop.f32.mrb[51].mxu1  ;;  %5860 = vpow2.f32 %v3136_v45  ;;  %v9169_v15 = vld [vmem:[#allocation51_spill] sm:$0xff] }
 0x36d   : > { %vm3517_vm5 = vcmp.eq.s32.totalorder %v9166_v13, 3  ;;  %9167 = vst [vmem:[#allocation48_spill] sm:$0xff] %v7927_v17  ;;  %v5841_v24 = vpop.eup %5840  ;;  %v3330_v31 = vadd.f32 %v5835_v16, %v3242_v0  ;;  %v7931_v44 = vmax.f32 %v7546_v8, %v7668_v28  ;;  %v7937_v30 = vsel %vm3516_vm4, %v7668_v28, %v9169_v15  ;;  %v7943_v16 = vpop.f32.mrb[52].mxu0  ;;  %v9172_v0 = vld [vmem:[#allocation21_spill] sm:$0xff] }
 0x36e   : > { %9164 = vst [vmem:[#allocation98_spill] sm:$0xff] %v7916_v54  ;;  %v5843_v39 = vpop.eup %5842  ;;  %v3179_v21 = vmul.f32 0.0, %v5841_v24  ;;  %5862 = vpow2.f32 %v3200_v58  ;;  %v3464_v34 = vmul.f32 1.442695, %v3451_v52  ;;  %v7941_v53 = vmax.f32 %v7566_v9, %v7675_v35  ;;  %9171 = vst [vmem:[#allocation100_spill] sm:$0xff] %v7943_v16  ;;  %v7948_v15 = vpop.f32.mrb[52].mxu1 }
 0x36f   : > { %9168 = vst [vmem:[#allocation99_spill] sm:$0xff] %v7931_v44  ;;  %v5845_v50 = vpop.eup %5844  ;;  %v3418_v45 = vadd.f32 %v5837_v38, %v3330_v31  ;;  %5864 = vpow2.f32 %v3288_v42  ;;  %v3156_v8 = vsub.f32 -inf, %v7931_v44  ;;  %v3220_v55 = vsub.f32 %v9172_v0, %v7931_v44  ;;  %9173 = vst [vmem:[#allocation21_spill] sm:$0xff] %v7948_v15  ;;  %v7950_v32 = vpop.f32.mrb[53].mxu0  ;;  %v9175_v9 = vld [vmem:[#allocation38_spill] sm:$0xff]  ;;  %v9176_v54 = vld [vmem:[#allocation49_spill] sm:$0xff] }
 0x370   : > { %9170 = vst [vmem:[#allocation51_spill] sm:$0xff] %v7941_v53  ;;  %9174 = vst [vmem:[#allocation101_spill] sm:$0xff] %v7950_v32  ;;  %v5847_v58 = vpop.eup %5846  ;;  %v3243_v52 = vadd.f32 %v5843_v39, %v3179_v21  ;;  %5866 = vpow2.f32 %v3376_v2  ;;  %v3308_v24 = vsub.f32 %v9175_v9, %v7931_v44  ;;  %v3396_v16 = vsub.f32 %v9176_v54, %v7931_v44  ;;  %v7956_v38 = vpop.f32.mrb[53].mxu1 }
 0x371   : > { %9177 = vst [vmem:[#allocation38_spill] sm:$0xff] %v7956_v38  ;;  %v5849_v42 = vpop.eup %5848  ;;  %v7958_v31 = vadd.f32 %v5839_v49, %v3418_v45  ;;  %5868 = vpow2.f32 %v3464_v34  ;;  %v3170_v0 = vmul.f32 1.442695, %v3156_v8  ;;  %v3234_v19 = vmul.f32 1.442695, %v3220_v55  ;;  %v7962_v39 = vpop.f32.mrb[54].mxu0 }
 0x372   : > { %v5851_v15 = vpop.eup %5850  ;;  %v3331_v17 = vadd.f32 %v5845_v50, %v3243_v52  ;;  %v3322_v32 = vmul.f32 1.442695, %v3308_v24  ;;  %v3410_v10 = vmul.f32 1.442695, %v3396_v16  ;;  %v3484_v2 = vsub.f32 %v7668_v28, %v7931_v44  ;;  %9179 = vst [vmem:[#allocation102_spill] sm:$0xff] %v7962_v39  ;;  %v9180_v49 = vld [vmem:[#allocation24_spill] sm:$0xff] }
 0x373   : > { %9178 = vst [vmem:[#allocation49_spill] sm:$0xff] %v7958_v31  ;;  %v5853_v21 = vpop.eup %5852  ;;  %v3146_v9 = vmul.f32 0.0, %v5851_v15  ;;  %5870 = vpow2.f32 %v3170_v0  ;;  %v3157_v54 = vsub.f32 -inf, %v7941_v53  ;;  %v3221_v45 = vsub.f32 %v9180_v49, %v7941_v53  ;;  %v7967_v34 = vpop.f32.mrb[54].mxu1  ;;  %v9183_v28 = vld [vmem:[#allocation39_spill] sm:$0xff] }
 0x374   : > { %9181 = vst [vmem:[#allocation24_spill] sm:$0xff] %v7967_v34  ;;  %v7969_v8 = vpop.f32.mrb[55].mxu0  ;;  %v5855_v50 = vpop.eup %5854  ;;  %v3419_v55 = vadd.f32 %v5847_v58, %v3331_v17  ;;  %5872 = vpow2.f32 %v3234_v19  ;;  %v3498_v16 = vmul.f32 1.442695, %v3484_v2  ;;  %v3309_v52 = vsub.f32 %v9183_v28, %v7941_v53  ;;  %v9187_v28 = vld [vmem:[#allocation56_spill] sm:$0xff] }
 0x375   : > { %9182 = vst [vmem:[#allocation103_spill] sm:$0xff] %v7969_v8  ;;  %v7973_v24 = vpop.f32.mrb[55].mxu1  ;;  %v5857_v15 = vpop.eup %5856  ;;  %v3210_v0 = vadd.f32 %v5853_v21, %v3146_v9  ;;  %5874 = vpow2.f32 %v3322_v32  ;;  %v3172_v44 = vmul.f32 1.442695, %v3157_v54  ;;  %v3236_v31 = vmul.f32 1.442695, %v3221_v45 }
 0x376   : > { %9184 = vst [vmem:[#allocation39_spill] sm:$0xff] %v7973_v24  ;;  %v5859_v39 = vpop.eup %5858  ;;  %v7975_v49 = vadd.f32 %v5849_v42, %v3419_v55  ;;  %5876 = vpow2.f32 %v3410_v10  ;;  %v3324_v34 = vmul.f32 1.442695, %v3309_v52  ;;  %v9186_v8 = vld [vmem:[#allocation52_spill] sm:$0xff]  ;;  %v3485_v2 = vsub.f32 %v7675_v35, %v7941_v53  ;;  %v7987_v21 = vpop.f32.mrb[56].mxu1  ;;  %v9190_v45 = vld [vmem:[#allocation53_spill] sm:$0xff] }
 0x377   : > { %v3397_v17 = vsub.f32 %v9186_v8, %v7941_v53  ;;  %v5861_v19 = vpop.eup %5860  ;;  %v3298_v58 = vadd.f32 %v5855_v50, %v3210_v0  ;;  %5878 = vpow2.f32 %v3498_v16  ;;  %v7985_v32 = vsel %vm3517_vm5, %v7675_v35, %v9187_v28  ;;  %9188 = vst [vmem:[#allocation52_spill] sm:$0xff] %v7987_v21  ;;  %v9189_v54 = vld [vmem:[#allocation40_spill] sm:$0xff]  ;;  %v9192_v50 = vld [vmem:[#allocation22_spill] sm:$0xff]  ;;  %v7994_v55 = vpop.f32.mrb[57].mxu1  ;;  %v9205_v24 = vld [vmem:[#allocation57_spill] sm:$0xff] }
 0x378   : > { %9185 = vst [vmem:[#allocation104_spill] sm:$0xff] %v7975_v49  ;;  %v5863_v42 = vpop.eup %5862  ;;  %v3147_v10 = vmul.f32 0.0, %v5861_v19  ;;  %5880 = vpow2.f32 %v3172_v44  ;;  %v7991_v8 = vmax.f32 %v9190_v45, %v9189_v54  ;;  %vm4589_vm6 = vcmp.eq.s32.totalorder %v9192_v50, 4  ;;  %9193 = vst [vmem:[#allocation40_spill] sm:$0xff] %v7994_v55  ;;  %v9194_v35 = vld [vmem:[#allocation54_spill] sm:$0xff]  ;;  %v9196_v49 = vld [vmem:[#allocation23_spill] sm:$0xff] }
 0x379   : > { %v3412_v9 = vmul.f32 1.442695, %v3397_v17  ;;  %v5865_v16 = vpop.eup %5864  ;;  %v3386_v52 = vadd.f32 %v5857_v15, %v3298_v58  ;;  %5882 = vpow2.f32 %v3236_v31  ;;  %v3500_v0 = vmul.f32 1.442695, %v3485_v2  ;;  %v9195_v45 = vld [vmem:[#allocation26_spill] sm:$0xff]  ;;  %v8006_v55 = vpop.f32.mrb[56].mxu0 }
 0x37a   : > { %9191 = vst [vmem:[#allocation56_spill] sm:$0xff] %v7991_v8  ;;  %v8000_v28 = vsel %vm3516_vm4, %v9189_v54, %v9194_v35  ;;  %v5867_v44 = vpop.eup %5866  ;;  %v3211_v17 = vadd.f32 %v5863_v42, %v3147_v10  ;;  %5884 = vpow2.f32 %v3324_v34  ;;  %v3124_v19 = vsub.f32 -inf, %v7991_v8  ;;  %9197 = vst [vmem:[#allocation53_spill] sm:$0xff] %v8006_v55  ;;  %v9199_v58 = vld [vmem:[#allocation35_spill] sm:$0xff]  ;;  %v9200_v35 = vld [vmem:[#allocation50_spill] sm:$0xff]  ;;  %v8015_v34 = vpop.f32.mrb[57].mxu0 }
 0x37b   : > { %v3188_v53 = vsub.f32 %v9195_v45, %v7991_v8  ;;  %vm4590_vm7 = vcmp.eq.s32.totalorder %v9196_v49, 4  ;;  %v5869_v31 = vpop.eup %5868  ;;  %v8008_v15 = vadd.f32 %v5859_v39, %v3386_v52  ;;  %5886 = vpow2.f32 %v3412_v9  ;;  %9201 = vst [vmem:[#allocation54_spill] sm:$0xff] %v8015_v34  ;;  %v8017_v10 = vpop.f32.mrb[58].mxu1 }
 0x37c   : > { %v3276_v2 = vsub.f32 %v9199_v58, %v7991_v8  ;;  %v3364_v42 = vsub.f32 %v9200_v35, %v7991_v8  ;;  %9202 = vst [vmem:[#allocation26_spill] sm:$0xff] %v8017_v10  ;;  %v3299_v45 = vadd.f32 %v5865_v16, %v3211_v17  ;;  %5888 = vpow2.f32 %v3500_v0  ;;  %v8020_v39 = vpop.f32.mrb[59].mxu1  ;;  %v9207_v17 = vld [vmem:[#allocation58_spill] sm:$0xff] }
 0x37d   : > { %9198 = vst [vmem:[#allocation22_spill] sm:$0xff] %v8008_v15  ;;  %v3138_v21 = vmul.f32 1.442695, %v3124_v19  ;;  %v3202_v55 = vmul.f32 1.442695, %v3188_v53  ;;  %vm4592_vm9 = vcmp.eq.s32.totalorder %v9094_v41, 4  ;;  %v5871_v9 = vpop.eup %5870  ;;  %v3452_v35 = vsub.f32 %v9189_v54, %v7991_v8 }
 0x37e   : > { %9203 = vst [vmem:[#allocation23_spill] sm:$0xff] %v8020_v39  ;;  %v3290_v52 = vmul.f32 1.442695, %v3276_v2  ;;  %v3378_v58 = vmul.f32 1.442695, %v3364_v42  ;;  %v9204_v15 = vld [vmem:[#allocation25_spill] sm:$0xff]  ;;  %v5873_v16 = vpop.eup %5872  ;;  %v3387_v53 = vadd.f32 %v5867_v44, %v3299_v45 }
 0x37f   : > { %v8026_v38 = vmax.f32 %v9205_v24, %v9204_v15  ;;  %v3180_v0 = vmul.f32 0.0, %v5871_v9  ;;  %5890 = vpow2.f32 %v3138_v21  ;;  %v8034_v19 = vsel %vm3517_vm5, %v9204_v15, %v9207_v17  ;;  %v8037_v54 = vpop.f32.mrb[58].mxu0  ;;  %v5875_v24 = vpop.eup %5874  ;;  %v9209_v8 = vld [vmem:[#allocation27_spill] sm:$0xff] }
 0x380   : > { %vm4595_vm12 = vcmp.eq.s32.totalorder %v9150_v59, 4  ;;  %9208 = vst [vmem:[#allocation50_spill] sm:$0xff] %v8037_v54  ;;  %5892 = vpow2.f32 %v3202_v55  ;;  %v3466_v2 = vmul.f32 1.442695, %v3452_v35  ;;  %vm4596_vm13 = vcmp.eq.s32.totalorder %v9166_v13, 4  ;;  %v8044_v21 = vpop.f32.mrb[59].mxu0  ;;  %v5877_v9 = vpop.eup %5876 }
 0x381   : > { %9206 = vst [vmem:[#allocation35_spill] sm:$0xff] %v8026_v38  ;;  %v3125_v42 = vsub.f32 -inf, %v8026_v38  ;;  %v3189_v44 = vsub.f32 %v9209_v8, %v8026_v38  ;;  %vm4677_vm14 = vcmp.eq.s32.totalorder %v9192_v50, 5  ;;  %9210 = vst [vmem:[#allocation25_spill] sm:$0xff] %v8044_v21  ;;  %v8046_v45 = vpop.f32.mrb[60].mxu1  ;;  %v8048_v17 = vadd.f32 %v5869_v31, %v3387_v53  ;;  %v9213_v55 = vld [vmem:[#allocation37_spill] sm:$0xff]  ;;  %v5879_v8 = vpop.eup %5878 }
 0x382   : > { %9211 = vst [vmem:[#allocation57_spill] sm:$0xff] %v8046_v45  ;;  %v3244_v54 = vadd.f32 %v5873_v16, %v3180_v0  ;;  %5894 = vpow2.f32 %v3290_v52  ;;  %v3277_v35 = vsub.f32 %v9213_v55, %v8026_v38  ;;  %vm4678_vm15 = vcmp.eq.s32.totalorder %v9196_v49, 5  ;;  %v8053_v39 = vpop.f32.mrb[61].mxu1  ;;  %v9215_v21 = vld [vmem:[#allocation55_spill] sm:$0xff]  ;;  %v5881_v45 = vpop.eup %5880 }
 0x383   : > { %9212 = vst [vmem:[#allocation58_spill] sm:$0xff] %v8048_v17  ;;  %9214 = vst [vmem:[#allocation27_spill] sm:$0xff] %v8053_v39  ;;  %5896 = vpow2.f32 %v3378_v58  ;;  %v3140_v10 = vmul.f32 1.442695, %v3125_v42  ;;  %v3204_v34 = vmul.f32 1.442695, %v3189_v44  ;;  %v3365_v48 = vsub.f32 %v9215_v21, %v8026_v38  ;;  %v5883_v53 = vpop.eup %5882 }
 0x384   : > { %v3332_v3 = vadd.f32 %v5875_v24, %v3244_v54  ;;  %5898 = vpow2.f32 %v3466_v2  ;;  %v3292_v31 = vmul.f32 1.442695, %v3277_v35  ;;  %v3453_v52 = vsub.f32 %v9204_v15, %v8026_v38  ;;  %v8060_v16 = vpop.f32.mrb[60].mxu0  ;;  %v9217_v42 = vld [vmem:[#allocation64_spill] sm:$0xff]  ;;  %v8069_v24 = vpop.f32.mrb[62].mxu1  ;;  %v9222_v38 = vld [vmem:[#allocation42_spill] sm:$0xff] }
 0x385   : > { %vm4679_vm0 = vcmp.eq.s32.totalorder %v7203_v60, 5  ;;  %9216 = vst [vmem:[#allocation37_spill] sm:$0xff] %v8060_v16  ;;  %v3181_v0 = vmul.f32 0.0, %v5881_v45  ;;  %5900 = vpow2.f32 %v3140_v10  ;;  %v3380_v58 = vmul.f32 1.442695, %v3365_v48  ;;  %v9218_v44 = vld [vmem:[#allocation68_spill] sm:$0xff]  ;;  %v5885_v15 = vpop.eup %5884 }
 0x386   : > { %v4597_v21 = vsel %vm4589_vm6, %v9218_v44, %v9217_v42  ;;  %vm4680_vm1 = vcmp.eq.s32.totalorder %v9094_v41, 5  ;;  %v8067_v54 = vpop.f32.mrb[61].mxu0  ;;  %9220 = vst [vmem:[#allocation64_spill] sm:$0xff] %v8069_v24  ;;  %v3420_v2 = vadd.f32 %v5877_v9, %v3332_v3  ;;  %5902 = vpow2.f32 %v3204_v34  ;;  %v9221_v35 = vld [vmem:[#allocation60_spill] sm:$0xff]  ;;  %v8075_v10 = vpop.f32.mrb[63].mxu1  ;;  %v9224_v42 = vld [vmem:[#allocation66_spill] sm:$0xff] }
 0x387   : > { %9219 = vst [vmem:[#allocation55_spill] sm:$0xff] %v8067_v54  ;;  %v3468_v55 = vmul.f32 1.442695, %v3453_v52  ;;  %v4605_v48 = vsel %vm4589_vm6, %v9222_v38, %v9221_v35  ;;  %9223 = vst [vmem:[#allocation60_spill] sm:$0xff] %v8075_v10  ;;  %v5887_v45 = vpop.eup %5886  ;;  %v3245_v17 = vadd.f32 %v5883_v53, %v3181_v0  ;;  %5904 = vpow2.f32 %v3292_v31  ;;  %v9225_v16 = vld [vmem:[#allocation17_spill] sm:$0xff]  ;;  %v9226_v24 = vld [vmem:[#allocation62_spill] sm:$0xff] }
 0x388   : > { %v4598_v54 = vsel %vm4590_vm7, %v9225_v16, %v9224_v42  ;;  %v9227_v39 = vld [vmem:[#allocation69_spill] sm:$0xff]  ;;  %vm4681_vm2 = vcmp.eq.s32.totalorder %v7207_v63, 5  ;;  %vm4682_vm3 = vcmp.eq.s32.totalorder %v7211_v1, 5  ;;  %v5889_v34 = vpop.eup %5888  ;;  %v8087_v9 = vadd.f32 %v5879_v8, %v3420_v2  ;;  %v9229_v52 = vld [vmem:[#allocation16_spill] sm:$0xff]  ;;  %v8097_v0 = vpop.f32.mrb[62].mxu0  ;;  %v9232_v35 = vld [vmem:[#allocation19_spill] sm:$0xff] }
 0x389   : > { %v4606_v3 = vsel %vm4590_vm7, %v9227_v39, %v9226_v24  ;;  %5906 = vpow2.f32 %v3380_v58  ;;  %v4599_v31 = vsel %vm4591_vm8, %v7716_v6, %v7740_v37  ;;  %v4607_v53 = vsel %vm4591_vm8, %v7712_v33, %v9229_v52  ;;  %9230 = vst [vmem:[#allocation62_spill] sm:$0xff] %v8097_v0  ;;  %v8108_v37 = vpop.f32.mrb[63].mxu0  ;;  %v5891_v2 = vpop.eup %5890  ;;  %v9235_v42 = vld [vmem:[#allocation75_spill] sm:$0xff] }
 0x38a   : > { %9228 = vst [vmem:[#allocation66_spill] sm:$0xff] %v8087_v9  ;;  %v3333_v24 = vadd.f32 %v5885_v15, %v3245_v17  ;;  %5908 = vpow2.f32 %v3468_v55  ;;  %v4600_v8 = vsel %vm4592_vm9, %v7728_v56, %v7793_v14  ;;  %v4608_v58 = vsel %vm4592_vm9, %v7718_v26, %v7726_v11  ;;  %9231 = vst [vmem:[#allocation69_spill] sm:$0xff] %v8108_v37  ;;  %v9233_v15 = vld [vmem:[#allocation74_spill] sm:$0xff]  ;;  %v5893_v37 = vpop.eup %5892 }
 0x38b   : > { %vm4683_vm4 = vcmp.eq.s32.totalorder %v9150_v59, 5  ;;  %v4601_v17 = vsel %vm4593_vm10, %v9232_v35, %v7887_v23  ;;  %v4609_v14 = vsel %vm4593_vm10, %v9233_v15, %v7824_v7  ;;  %v9234_v55 = vld [vmem:[#allocation30_spill] sm:$0xff]  ;;  %v4610_v52 = vsel %vm4594_vm11, %v9235_v42, %v7836_v18 }
 0x38c   : > { %v4602_v11 = vsel %vm4594_vm11, %v9234_v55, %v7924_v29  ;;  %vm4684_vm5 = vcmp.eq.s32.totalorder %v9166_v13, 5  ;;  %v3421_v9 = vadd.f32 %v5887_v45, %v3333_v24  ;;  %v3148_v23 = vmul.f32 0.0, %v5891_v2  ;;  %v5895_v0 = vpop.eup %5894 }
 0x38d   : > { %v4603_v7 = vsel %vm4595_vm12, %v7769_v36, %v8000_v28  ;;  %v4611_v29 = vsel %vm4595_vm12, %v7763_v40, %v7937_v30  ;;  %v4604_v18 = vsel %vm4596_vm13, %v7778_v46, %v8034_v19  ;;  %v4612_v45 = vsel %vm4596_vm13, %v7771_v22, %v7985_v32  ;;  %v5897_v30 = vpop.eup %5896 }
 0x38e   : > { %v4405_v24 = vmax.f32 %v9222_v38, %v7787_v20  ;;  %v4693_v28 = vsel %vm4677_vm14, %v7787_v20, %v4605_v48  ;;  %vm4765_vm6 = vcmp.eq.s32.totalorder %v9192_v50, 6  ;;  %v8149_v2 = vadd.f32 %v5889_v34, %v3421_v9  ;;  %v5899_v38 = vpop.eup %5898 }
 0x38f   : > { %v3212_v10 = vadd.f32 %v5893_v37, %v3148_v23  ;;  %v4406_v19 = vmax.f32 %v9227_v39, %v7799_v57  ;;  %v4694_v32 = vsel %vm4678_vm15, %v7799_v57, %v4606_v3  ;;  %vm4766_vm7 = vcmp.eq.s32.totalorder %v9196_v49, 6  ;;  %v5901_v3 = vpop.eup %5900  ;;  %v9238_v23 = vld [vmem:[#allocation18_spill] sm:$0xff] }
 0x390   : > { %9236 = vst [vmem:[#allocation16_spill] sm:$0xff] %v8149_v2  ;;  %v4397_v47 = vmax.f32 %v9218_v44, %v9237_v62  ;;  %v4685_v48 = vsel %vm4677_vm14, %v9237_v62, %v4597_v21  ;;  %v4398_v34 = vmax.f32 %v9225_v16, %v7810_v12  ;;  %v4686_v9 = vsel %vm4678_vm15, %v7810_v12, %v4598_v54  ;;  %v5903_v16 = vpop.eup %5902 }
 0x391   : > { %vm4767_vm8 = vcmp.eq.s32.totalorder %v7203_v60, 6  ;;  %v3300_v37 = vadd.f32 %v5895_v0, %v3212_v10  ;;  %v4407_v2 = vmax.f32 %v7712_v33, %v9238_v23  ;;  %v4695_v44 = vsel %vm4679_vm0, %v9238_v23, %v4607_v53  ;;  %v5905_v53 = vpop.eup %5904 }
 0x392   : > { %v4408_v21 = vmax.f32 %v7718_v26, %v7816_v61  ;;  %vm4768_vm9 = vcmp.eq.s32.totalorder %v9094_v41, 6  ;;  %v3149_v62 = vmul.f32 0.0, %v5901_v3  ;;  %v4696_v54 = vsel %vm4680_vm1, %v7816_v61, %v4608_v58 }
 0x393   : > { %v4399_v10 = vmax.f32 %v7716_v6, %v7826_v27  ;;  %v4687_v0 = vsel %vm4679_vm0, %v7826_v27, %v4599_v31  ;;  %vm4769_vm10 = vcmp.eq.s32.totalorder %v7207_v63, 6  ;;  %v3388_v23 = vadd.f32 %v5897_v30, %v3300_v37  ;;  %v5907_v6 = vpop.eup %5906  ;;  %v9239_v27 = vld [vmem:[#allocation85_spill] sm:$0xff] }
 0x394   : > { %v4400_v26 = vmax.f32 %v7728_v56, %v7838_v51  ;;  %v4688_v3 = vsel %vm4680_vm1, %v7838_v51, %v4600_v8  ;;  %v4409_v58 = vmax.f32 %v9233_v15, %v7840_v25  ;;  %vm4770_vm11 = vcmp.eq.s32.totalorder %v7211_v1, 6  ;;  %v5909_v8 = vpop.eup %5908 }
 0x395   : > { %v3213_v61 = vadd.f32 %v5903_v16, %v3149_v62  ;;  %v4697_v31 = vsel %vm4681_vm2, %v7840_v25, %v4609_v14  ;;  %v4410_v30 = vmax.f32 %v9235_v42, %v9239_v27  ;;  %v4698_v37 = vsel %vm4682_vm3, %v9239_v27, %v4610_v52  ;;  %v9241_v27 = vld [vmem:[#allocation87_spill] sm:$0xff] }
 0x396   : > { %vm4771_vm12 = vcmp.eq.s32.totalorder %v9150_v59, 6  ;;  %v8202_v51 = vadd.f32 %v5899_v38, %v3388_v23  ;;  %v4401_v15 = vmax.f32 %v9232_v35, %v7857_v4  ;;  %v4689_v62 = vsel %vm4681_vm2, %v7857_v4, %v4601_v17  ;;  %v9243_v4 = vld [vmem:[#allocation32_spill] sm:$0xff] }
 0x397   : > { %v4402_v16 = vmax.f32 %v9234_v55, %v7859_v43  ;;  %vm4772_vm13 = vcmp.eq.s32.totalorder %v9166_v13, 6  ;;  %v3301_v14 = vadd.f32 %v5905_v53, %v3213_v61  ;;  %v4690_v52 = vsel %vm4682_vm3, %v7859_v43, %v4602_v11  ;;  %v9278_v13 = vld [vmem:[#allocation54_spill] sm:$0xff] }
 0x398   : > { %9240 = vst [vmem:[#allocation105_spill] sm:$0xff] %v8202_v51  ;;  %v4411_v38 = vmax.f32 %v7763_v40, %v9241_v27  ;;  %v4699_v23 = vsel %vm4683_vm4, %v9241_v27, %v4611_v29  ;;  %v9242_v51 = vld [vmem:[#allocation88_spill] sm:$0xff]  ;;  %v4403_v61 = vmax.f32 %v7769_v36, %v9243_v4  ;;  %v4691_v11 = vsel %vm4683_vm4, %v9243_v4, %v4603_v7 }
 0x399   : > { %v4412_v17 = vmax.f32 %v7771_v22, %v9242_v51  ;;  %v4700_v55 = vsel %vm4684_vm5, %v9242_v51, %v4612_v45  ;;  %v3389_v53 = vadd.f32 %v5907_v6, %v3301_v14  ;;  %v4404_v40 = vmax.f32 %v7778_v46, %v7877_v5  ;;  %v9244_v22 = vld [vmem:[#allocation92_spill] sm:$0xff]  ;;  %v9245_v51 = vld [vmem:[#allocation47_spill] sm:$0xff]  ;;  %v9246_v6 = vld [vmem:[#allocation94_spill] sm:$0xff] }
 0x39a   : > { %v4692_v29 = vsel %vm4684_vm5, %v7877_v5, %v4604_v18  ;;  %v4413_v27 = vmax.f32 %v4397_v47, %v9244_v22  ;;  %v4773_v45 = vsel %vm4765_vm6, %v9244_v22, %v4685_v48  ;;  %v4421_v36 = vmax.f32 %v4405_v24, %v9245_v51  ;;  %v9248_v47 = vld [vmem:[#allocation93_spill] sm:$0xff]  ;;  %v9249_v24 = vld [vmem:[#allocation96_spill] sm:$0xff] }
 0x39b   : > { %v4781_v7 = vsel %vm4765_vm6, %v9245_v51, %v4693_v28  ;;  %v8244_v14 = vmax.f32 %v4398_v34, %v9246_v6  ;;  %v8246_v46 = vadd.f32 %v5909_v8, %v3389_v53  ;;  %v4774_v18 = vsel %vm4766_vm7, %v9246_v6, %v4686_v9  ;;  %v9250_v34 = vld [vmem:[#allocation95_spill] sm:$0xff] }
 0x39c   : > { %v4422_v5 = vmax.f32 %v4406_v19, %v9248_v47  ;;  %v4782_v48 = vsel %vm4766_vm7, %v9248_v47, %v4694_v32  ;;  %v8256_v4 = vmax.f32 %v4399_v10, %v9249_v24  ;;  %v8261_v28 = vsel %vm4767_vm8, %v9249_v24, %v4687_v0  ;;  %v9251_v19 = vld [vmem:[#allocation48_spill] sm:$0xff]  ;;  %v9252_v10 = vld [vmem:[#allocation97_spill] sm:$0xff] }
 0x39d   : > { %9247 = vst [vmem:[#allocation92_spill] sm:$0xff] %v8246_v46  ;;  %v8264_v8 = vmax.f32 %v4407_v2, %v9250_v34  ;;  %v8269_v9 = vsel %vm4767_vm8, %v9250_v34, %v4695_v44  ;;  %v8272_v53 = vmax.f32 %v4400_v26, %v9251_v19  ;;  %v8277_v32 = vsel %vm4768_vm9, %v9251_v19, %v4688_v3  ;;  %v9253_v0 = vld [vmem:[#allocation21_spill] sm:$0xff]  ;;  %v9255_v44 = vld [vmem:[#allocation100_spill] sm:$0xff]  ;;  %v9256_v3 = vld [vmem:[#allocation38_spill] sm:$0xff] }
 0x39e   : > { %v8280_v46 = vmax.f32 %v4408_v21, %v9252_v10  ;;  %v8285_v2 = vsel %vm4768_vm9, %v9252_v10, %v4696_v54  ;;  %v8288_v43 = vmax.f32 %v4401_v15, %v9253_v0  ;;  %v8293_v26 = vsel %vm4769_vm10, %v9253_v0, %v4689_v62  ;;  %v9259_v54 = vld [vmem:[#allocation101_spill] sm:$0xff]  ;;  %v9260_v62 = vld [vmem:[#allocation24_spill] sm:$0xff] }
 0x39f   : > { %v8296_v35 = vmax.f32 %v4409_v58, %v9255_v44  ;;  %v8301_v21 = vsel %vm4769_vm10, %v9255_v44, %v4697_v31  ;;  %v8304_v42 = vmax.f32 %v4402_v16, %v9256_v3  ;;  %v8309_v15 = vsel %vm4770_vm11, %v9256_v3, %v4690_v52  ;;  %v9263_v16 = vld [vmem:[#allocation102_spill] sm:$0xff]  ;;  %v9266_v52 = vld [vmem:[#allocation39_spill] sm:$0xff] }
 0x3a0   : > { %9254 = vst [vmem:[#allocation47_spill] sm:$0xff] %v8288_v43  ;;  %9258 = vst [vmem:[#allocation93_spill] sm:$0xff] %v8309_v15  ;;  %v8312_v43 = vmax.f32 %v4410_v30, %v9259_v54  ;;  %v8317_v58 = vsel %vm4770_vm11, %v9259_v54, %v4698_v37  ;;  %v8320_v0 = vmax.f32 %v4403_v61, %v9260_v62  ;;  %v9269_v61 = vld [vmem:[#allocation103_spill] sm:$0xff]  ;;  %vm4853_vm14 = vcmp.eq.s32.totalorder %v9192_v50, 7 }
 0x3a1   : > { %9257 = vst [vmem:[#allocation94_spill] sm:$0xff] %v8304_v42  ;;  %v8325_v31 = vsel %vm4771_vm12, %v9260_v62, %v4691_v11  ;;  %v8328_v42 = vmax.f32 %v4411_v38, %v9263_v16  ;;  %v8333_v30 = vsel %vm4771_vm12, %v9263_v16, %v4699_v23  ;;  %v8336_v3 = vmax.f32 %v4404_v40, %v9266_v52  ;;  %v9272_v11 = vld [vmem:[#allocation52_spill] sm:$0xff] }
 0x3a2   : > { %9261 = vst [vmem:[#allocation96_spill] sm:$0xff] %v8320_v0  ;;  %9262 = vst [vmem:[#allocation95_spill] sm:$0xff] %v8325_v31  ;;  %v8341_v37 = vsel %vm4772_vm13, %v9266_v52, %v4692_v29  ;;  %v8344_v0 = vmax.f32 %v4412_v17, %v9269_v61  ;;  %v8349_v38 = vsel %vm4772_vm13, %v9269_v61, %v4700_v55  ;;  %v9273_v23 = vld [vmem:[#allocation40_spill] sm:$0xff]  ;;  %vm4854_vm15 = vcmp.eq.s32.totalorder %v9196_v49, 7  ;;  %v9274_v17 = vld [vmem:[#allocation53_spill] sm:$0xff] }
 0x3a3   : > { %9264 = vst [vmem:[#allocation48_spill] sm:$0xff] %v8328_v42  ;;  %9265 = vst [vmem:[#allocation97_spill] sm:$0xff] %v8333_v30  ;;  %v4437_v62 = vmax.f32 %v4421_v36, %v9272_v11  ;;  %v4438_v40 = vmax.f32 %v4422_v5, %v9273_v23  ;;  %v8359_v29 = vsel %vm4854_vm15, %v9273_v23, %v4782_v48  ;;  %v9276_v55 = vld [vmem:[#allocation61_spill] sm:$0xff]  ;;  %v9277_v5 = vld [vmem:[#allocation63_spill] sm:$0xff]  ;;  %vm4855_vm0 = vcmp.eq.s32.totalorder %v7203_v60, 7 }
 0x3a4   : > { %9267 = vst [vmem:[#allocation100_spill] sm:$0xff] %v8336_v3  ;;  %9268 = vst [vmem:[#allocation101_spill] sm:$0xff] %v8341_v37  ;;  %v8356_v3 = vsel %vm4853_vm14, %v9272_v11, %v4781_v7  ;;  %v4429_v52 = vmax.f32 %v4413_v27, %v9274_v17  ;;  %v9275_v37 = vld [vmem:[#allocation59_spill] sm:$0xff]  ;;  %v8369_v36 = vsel %vm4853_vm14, %v9274_v17, %v4773_v45  ;;  %vm4856_vm1 = vcmp.eq.s32.totalorder %v9094_v41, 7 }
 0x3a5   : > { %9270 = vst [vmem:[#allocation106_spill] sm:$0xff] %v8344_v0  ;;  %9271 = vst [vmem:[#allocation107_spill] sm:$0xff] %v8349_v38  ;;  %v8363_v31 = vmax.f32 %v9275_v37, %v4437_v62  ;;  %v8366_v61 = vmax.f32 %v9276_v55, %v4438_v40  ;;  %v4430_v7 = vmax.f32 %v8244_v14, %v9278_v13  ;;  %v9279_v62 = vld [vmem:[#allocation42_spill] sm:$0xff]  ;;  %vm4857_vm2 = vcmp.eq.s32.totalorder %v7207_v63, 7 }
 0x3a6   : > { %v8372_v38 = vmax.f32 %v9277_v5, %v4429_v52  ;;  %v8377_v48 = vsel %vm4854_vm15, %v9278_v13, %v4774_v18  ;;  %vm2165_vm3 = vcmp.ne.s32.totalorder %v9192_v50, 255  ;;  %vm4858_vm4 = vcmp.eq.s32.totalorder %v7211_v1, 7 }
 0x3a7   : > { %v4493_v27 = vsub.f32 %v9275_v37, %v8363_v31  ;;  %v4557_v0 = vsub.f32 %v9279_v62, %v8363_v31  ;;  %v4645_v40 = vsub.f32 %v7787_v20, %v8363_v31  ;;  %v4733_v45 = vsub.f32 %v9245_v51, %v8363_v31 }
 0x3a8   : > { %v4821_v52 = vsub.f32 %v9272_v11, %v8363_v31  ;;  %v4494_v14 = vsub.f32 %v9276_v55, %v8366_v61  ;;  %v4558_v18 = vsub.f32 %v9227_v39, %v8366_v61  ;;  %v4646_v37 = vsub.f32 %v7799_v57, %v8366_v61  ;;  %v9280_v57 = vld [vmem:[#allocation68_spill] sm:$0xff] }
 0x3a9   : > { %v4501_v30 = vmul.f32 1.442695, %v4493_v27  ;;  %v4565_v62 = vmul.f32 1.442695, %v4557_v0  ;;  %v4653_v16 = vmul.f32 1.442695, %v4645_v40  ;;  %v4734_v20 = vsub.f32 %v9248_v47, %v8366_v61 }
 0x3aa   : > { %v4741_v59 = vmul.f32 1.442695, %v4733_v45  ;;  %v4822_v51 = vsub.f32 %v9273_v23, %v8366_v61  ;;  %v4829_v11 = vmul.f32 1.442695, %v4821_v52  ;;  %v4503_v42 = vmul.f32 1.442695, %v4494_v14 }
 0x3ab   : > { %5910 = vpow2.f32 %v4501_v30  ;;  %v4567_v55 = vmul.f32 1.442695, %v4558_v18  ;;  %v4655_v15 = vmul.f32 1.442695, %v4646_v37  ;;  %v4461_v39 = vsub.f32 %v9277_v5, %v8372_v38  ;;  %v9281_v27 = vld [vmem:[#allocation45_spill] sm:$0xff]  ;;  %v9324_v50 = vld [vmem:[#allocation48_spill] sm:$0xff] }
 0x3ac   : > { %5912 = vpow2.f32 %v4565_v62  ;;  %v4525_v0 = vsub.f32 %v9280_v57, %v8372_v38  ;;  %v4613_v47 = vsub.f32 %v9281_v27, %v8372_v38  ;;  %v4701_v40 = vsub.f32 %v9244_v22, %v8372_v38  ;;  %v9282_v52 = vld [vmem:[#allocation65_spill] sm:$0xff]  ;;  %v9285_v27 = vld [vmem:[#allocation67_spill] sm:$0xff] }
 0x3ad   : > { %5914 = vpow2.f32 %v4653_v16  ;;  %v4789_v30 = vsub.f32 %v9274_v17, %v8372_v38  ;;  %v4743_v23 = vmul.f32 1.442695, %v4734_v20  ;;  %v4831_v45 = vmul.f32 1.442695, %v4822_v51  ;;  %v9283_v62 = vld [vmem:[#allocation17_spill] sm:$0xff]  ;;  %v9284_v20 = vld [vmem:[#allocation26_spill] sm:$0xff] }
 0x3ae   : > { %5916 = vpow2.f32 %v4741_v59  ;;  %v8410_v14 = vmax.f32 %v9282_v52, %v4430_v7  ;;  %v4469_v5 = vmul.f32 1.442695, %v4461_v39  ;;  %v4533_v18 = vmul.f32 1.442695, %v4525_v0 }
 0x3af   : > { %5918 = vpow2.f32 %v4829_v11  ;;  %v4621_v37 = vmul.f32 1.442695, %v4613_v47  ;;  %v4439_v51 = vmax.f32 %v8264_v8, %v9284_v20  ;;  %v4797_v11 = vmul.f32 1.442695, %v4789_v30 }
 0x3b0   : > { %5920 = vpow2.f32 %v4503_v42  ;;  %v4462_v16 = vsub.f32 %v9282_v52, %v8410_v14  ;;  %v4526_v22 = vsub.f32 %v9283_v62, %v8410_v14  ;;  %v4614_v17 = vsub.f32 %v7810_v12, %v8410_v14  ;;  %v9286_v12 = vld [vmem:[#allocation23_spill] sm:$0xff] }
 0x3b1   : > { %5922 = vpow2.f32 %v4567_v55  ;;  %v4702_v59 = vsub.f32 %v9246_v6, %v8410_v14  ;;  %v4790_v7 = vsub.f32 %v9278_v13, %v8410_v14  ;;  %v4709_v42 = vmul.f32 1.442695, %v4701_v40  ;;  %v9287_v55 = vld [vmem:[#allocation18_spill] sm:$0xff] }
 0x3b2   : > { %5924 = vpow2.f32 %v4655_v15  ;;  %v4471_v39 = vmul.f32 1.442695, %v4462_v16  ;;  %v4535_v57 = vmul.f32 1.442695, %v4526_v22  ;;  %v4623_v0 = vmul.f32 1.442695, %v4614_v17 }
 0x3b3   : > { %5926 = vpow2.f32 %v4743_v23  ;;  %v8425_v47 = vmax.f32 %v9285_v27, %v4439_v51  ;;  %v4440_v6 = vmax.f32 %v8280_v46, %v9286_v12  ;;  %v9288_v23 = vld [vmem:[#allocation71_spill] sm:$0xff]  ;;  %v4711_v16 = vmul.f32 1.442695, %v4702_v59 }
 0x3b4   : > { %5928 = vpow2.f32 %v4831_v45  ;;  %v4799_v62 = vmul.f32 1.442695, %v4790_v7  ;;  %vm2166_vm5 = vcmp.ne.s32.totalorder %v9196_v49, 255  ;;  %vm2167_vm6 = vcmp.ne.s32.totalorder %v7203_v60, 255 }
 0x3b5   : > { %v5911_v13 = vpop.eup %5910  ;;  %5930 = vpow2.f32 %v4469_v5  ;;  %v4495_v8 = vsub.f32 %v9285_v27, %v8425_v47  ;;  %v4559_v15 = vsub.f32 %v7712_v33, %v8425_v47  ;;  %v4647_v40 = vsub.f32 %v9287_v55, %v8425_v47 }
 0x3b6   : > { %v5913_v30 = vpop.eup %5912  ;;  %v4517_v45 = vmul.f32 %v5911_v13, %v9288_v23  ;;  %5932 = vpow2.f32 %v4533_v18  ;;  %v4735_v46 = vsub.f32 %v9250_v34, %v8425_v47  ;;  %v4823_v52 = vsub.f32 %v9284_v20, %v8425_v47  ;;  %v9290_v18 = vld [vmem:[#allocation31_spill] sm:$0xff] }
 0x3b7   : > { %v5915_v5 = vpop.eup %5914  ;;  %5934 = vpow2.f32 %v4621_v37  ;;  %v4505_v22 = vmul.f32 1.442695, %v4495_v8  ;;  %v4569_v51 = vmul.f32 1.442695, %v4559_v15  ;;  %v4657_v27 = vmul.f32 1.442695, %v4647_v40 }
 0x3b8   : > { %v5917_v17 = vpop.eup %5916  ;;  %v4581_v33 = vadd.f32 %v5913_v30, %v4517_v45  ;;  %5936 = vpow2.f32 %v4709_v42  ;;  %v8446_v34 = vsel %vm4855_vm0, %v9284_v20, %v8269_v9  ;;  %v8449_v13 = vmax.f32 %v9290_v18, %v4440_v6  ;;  %v9293_v40 = vld [vmem:[#allocation41_spill] sm:$0xff]  ;;  %v9294_v6 = vld [vmem:[#allocation70_spill] sm:$0xff] }
 0x3b9   : > { %v5919_v55 = vpop.eup %5918  ;;  %5938 = vpow2.f32 %v4797_v11  ;;  %9289 = vst [vmem:[#allocation52_spill] sm:$0xff] %v8446_v34  ;;  %v8455_v37 = vsel %vm4856_vm1, %v9286_v12, %v8285_v2  ;;  %v4745_v42 = vmul.f32 1.442695, %v4735_v46  ;;  %v9292_v11 = vld [vmem:[#allocation50_spill] sm:$0xff]  ;;  %v9295_v45 = vld [vmem:[#allocation81_spill] sm:$0xff]  ;;  %vm4967_vm7 = vcmask 261120  }
 0x3ba   : > { %9291 = vst [vmem:[#allocation40_spill] sm:$0xff] %v8455_v37  ;;  %v5921_v59 = vpop.eup %5920  ;;  %v4669_v7 = vadd.f32 %v5915_v5, %v4581_v33  ;;  %5940 = vpow2.f32 %v4471_v39  ;;  %v4431_v8 = vmax.f32 %v8256_v4, %v9292_v11  ;;  %v4496_v20 = vsub.f32 %v9290_v18, %v8449_v13 }
 0x3bb   : > { %v5923_v15 = vpop.eup %5922  ;;  %v4518_v9 = vmul.f32 %v5921_v59, %v9293_v40  ;;  %5942 = vpow2.f32 %v4535_v57  ;;  %v4560_v30 = vsub.f32 %v9294_v6, %v8449_v13  ;;  %v4648_v39 = vsub.f32 %v9295_v45, %v8449_v13 }
 0x3bc   : > { %v5925_v23 = vpop.eup %5924  ;;  %v4757_v2 = vadd.f32 %v5917_v17, %v4669_v7  ;;  %5944 = vpow2.f32 %v4623_v0  ;;  %v4736_v46 = vsub.f32 %v9252_v10, %v8449_v13  ;;  %v4833_v33 = vmul.f32 1.442695, %v4823_v52  ;;  %v9296_v17 = vld [vmem:[#allocation72_spill] sm:$0xff] }
 0x3bd   : > { %v5927_v4 = vpop.eup %5926  ;;  %v4582_v5 = vadd.f32 %v5923_v15, %v4518_v9  ;;  %5946 = vpow2.f32 %v4711_v16  ;;  %v4507_v57 = vmul.f32 1.442695, %v4496_v20  ;;  %v4571_v18 = vmul.f32 1.442695, %v4560_v30  ;;  %v9297_v15 = vld [vmem:[#allocation80_spill] sm:$0xff]  ;;  %v9298_v30 = vld [vmem:[#allocation33_spill] sm:$0xff] }
 0x3be   : > { %v5929_v59 = vpop.eup %5928  ;;  %v4845_v40 = vadd.f32 %v5919_v55, %v4757_v2  ;;  %5948 = vpow2.f32 %v4799_v62  ;;  %v4659_v37 = vmul.f32 1.442695, %v4648_v39  ;;  %v4824_v0 = vsub.f32 %v9286_v12, %v8449_v13  ;;  %v9299_v2 = vld [vmem:[#allocation46_spill] sm:$0xff] }
 0x3bf   : > { %v5931_v6 = vpop.eup %5930  ;;  %v4670_v34 = vadd.f32 %v5925_v23, %v4582_v5  ;;  %5950 = vpow2.f32 %v4505_v22  ;;  %v8471_v7 = vmax.f32 %v9296_v17, %v4431_v8  ;;  %v4747_v52 = vmul.f32 1.442695, %v4736_v46 }
 0x3c0   : > { %v5933_v10 = vpop.eup %5932  ;;  %5952 = vlog2.f32 %v4845_v40  ;;  %v4485_v16 = vmul.f32 %v5931_v6, %v9297_v15  ;;  %v8478_v62 = vsel %vm4855_vm0, %v9292_v11, %v8261_v28  ;;  %v4835_v22 = vmul.f32 1.442695, %v4824_v0 }
 0x3c1   : > { %v5935_v55 = vpop.eup %5934  ;;  %v4758_v9 = vadd.f32 %v5927_v4, %v4670_v34  ;;  %5954 = vpow2.f32 %v4569_v51  ;;  %v4463_v12 = vsub.f32 %v9296_v17, %v8471_v7  ;;  %v4527_v23 = vsub.f32 %v9298_v30, %v8471_v7 }
 0x3c2   : > { %v5937_v8 = vpop.eup %5936  ;;  %v4549_v20 = vadd.f32 %v5933_v10, %v4485_v16  ;;  %5956 = vpow2.f32 %v4657_v27  ;;  %v4615_v45 = vsub.f32 %v9299_v2, %v8471_v7  ;;  %v4703_v51 = vsub.f32 %v9249_v24, %v8471_v7  ;;  %v9300_v27 = vld [vmem:[#allocation34_spill] sm:$0xff] }
 0x3c3   : > { %v5939_v39 = vpop.eup %5938  ;;  %v4846_v46 = vadd.f32 %v5929_v59, %v4758_v9  ;;  %5958 = vpow2.f32 %v4745_v42  ;;  %v4473_v28 = vmul.f32 1.442695, %v4463_v12  ;;  %v4537_v5 = vmul.f32 1.442695, %v4527_v23  ;;  %v9301_v42 = vld [vmem:[#allocation25_spill] sm:$0xff] }
 0x3c4   : > { %v5941_v34 = vpop.eup %5940  ;;  %v4637_v4 = vadd.f32 %v5935_v55, %v4549_v20  ;;  %5960 = vpow2.f32 %v4833_v33  ;;  %v4625_v40 = vmul.f32 1.442695, %v4615_v45  ;;  %v4713_v17 = vmul.f32 1.442695, %v4703_v51  ;;  %v9302_v12 = vld [vmem:[#allocation57_spill] sm:$0xff] }
 0x3c5   : > { %v5943_v6 = vpop.eup %5942  ;;  %5962 = vlog2.f32 %v4846_v46  ;;  %v4486_v0 = vmul.f32 %v5941_v34, %v9300_v27  ;;  %v4791_v10 = vsub.f32 %v9292_v11, %v8471_v7  ;;  %v4432_v16 = vmax.f32 %v8272_v53, %v9301_v42 }
 0x3c6   : > { %v5945_v15 = vpop.eup %5944  ;;  %v4725_v59 = vadd.f32 %v5937_v8, %v4637_v4  ;;  %5964 = vpow2.f32 %v4507_v57  ;;  %v8497_v24 = vsel %vm4856_vm1, %v9301_v42, %v8277_v32  ;;  %v4441_v20 = vmax.f32 %v8296_v35, %v9302_v12  ;;  %v9303_v57 = vld [vmem:[#allocation73_spill] sm:$0xff]  ;;  %v9304_v32 = vld [vmem:[#allocation43_spill] sm:$0xff] }
 0x3c7   : > { %v5947_v33 = vpop.eup %5946  ;;  %v4550_v55 = vadd.f32 %v5943_v6, %v4486_v0  ;;  %5966 = vpow2.f32 %v4571_v18  ;;  %v4801_v9 = vmul.f32 1.442695, %v4791_v10  ;;  %v8502_v8 = vmax.f32 %v9303_v57, %v4432_v16  ;;  %v9306_v4 = vld [vmem:[#allocation83_spill] sm:$0xff] }
 0x3c8   : > { %v5949_v11 = vpop.eup %5948  ;;  %v4813_v30 = vadd.f32 %v5939_v39, %v4725_v59  ;;  %5968 = vpow2.f32 %v4659_v37  ;;  %v8506_v2 = vmax.f32 %v9304_v32, %v4441_v20  ;;  %v8512_v18 = vsel %vm4857_vm2, %v9302_v12, %v8301_v21  ;;  %v9305_v37 = vld [vmem:[#allocation86_spill] sm:$0xff] }
 0x3c9   : > { %v5951_v53 = vpop.eup %5950  ;;  %v4638_v23 = vadd.f32 %v5945_v15, %v4550_v55  ;;  %5970 = vpow2.f32 %v4747_v52  ;;  %v4464_v39 = vsub.f32 %v9303_v57, %v8502_v8  ;;  %v4528_v46 = vsub.f32 %v7728_v56, %v8502_v8 }
 0x3ca   : > { %v5953_v35 = vpop.eup %5952  ;;  %5972 = vlog2.f32 %v4813_v30  ;;  %v4519_v45 = vmul.f32 %v5951_v53, %v9305_v37  ;;  %v4616_v6 = vsub.f32 %v9306_v4, %v8502_v8  ;;  %vm2168_vm8 = vcmp.ne.s32.totalorder %v9094_v41, 255 }
 0x3cb   : > { %v5955_v52 = vpop.eup %5954  ;;  %v4902_v51 = vmul.f32 0.6931472, %v5953_v35  ;;  %v4726_v34 = vadd.f32 %v5947_v33, %v4638_v23  ;;  %5974 = vpow2.f32 %v4835_v22  ;;  %v4475_v0 = vmul.f32 1.442695, %v4464_v39  ;;  %v9308_v35 = vld [vmem:[#allocation89_spill] sm:$0xff] }
 0x3cc   : > { %v5957_v27 = vpop.eup %5956  ;;  %v4583_v21 = vadd.f32 %v5955_v52, %v4519_v45  ;;  %5976 = vpow2.f32 %v4473_v28  ;;  %v4539_v10 = vmul.f32 1.442695, %v4528_v46  ;;  %v4627_v55 = vmul.f32 1.442695, %v4616_v6  ;;  %v9309_v6 = vld [vmem:[#allocation27_spill] sm:$0xff] }
 0x3cd   : > { %v5959_v15 = vpop.eup %5958  ;;  %v8522_v59 = vadd.f32 %v4902_v51, %v8363_v31  ;;  %v4814_v16 = vadd.f32 %v5949_v11, %v4726_v34  ;;  %5978 = vpow2.f32 %v4537_v5  ;;  %v4704_v22 = vsub.f32 %v9251_v19, %v8502_v8  ;;  %v9307_v5 = vld [vmem:[#allocation74_spill] sm:$0xff] }
 0x3ce   : > { %v5961_v56 = vpop.eup %5960  ;;  %v4671_v20 = vadd.f32 %v5957_v27, %v4583_v21  ;;  %5980 = vpow2.f32 %v4625_v40  ;;  %v4792_v33 = vsub.f32 %v9301_v42, %v8502_v8  ;;  %v4497_v31 = vsub.f32 %v9304_v32, %v8506_v2 }
 0x3cf   : > { %v5963_v30 = vpop.eup %5962  ;;  %v4933_v28 = vsub.f32 %v8522_v59, %v8356_v3  ;;  %5982 = vlog2.f32 %v4814_v16  ;;  %v4561_v11 = vsub.f32 %v9307_v5, %v8506_v2  ;;  %v4715_v23 = vmul.f32 1.442695, %v4704_v22  ;;  %v9310_v16 = vld [vmem:[#allocation82_spill] sm:$0xff]  ;;  %v9313_v5 = vld [vmem:[#allocation85_spill] sm:$0xff] }
 0x3d0   : > { %v5965_v57 = vpop.eup %5964  ;;  %v4904_v53 = vmul.f32 0.6931472, %v5963_v30  ;;  %v4759_v40 = vadd.f32 %v5959_v15, %v4671_v20  ;;  %5984 = vpow2.f32 %v4713_v17  ;;  %v4803_v42 = vmul.f32 1.442695, %v4792_v33  ;;  %v9312_v30 = vld [vmem:[#allocation75_spill] sm:$0xff] }
 0x3d1   : > { %v5967_v19 = vpop.eup %5966  ;;  %v4520_v37 = vmul.f32 %v5965_v57, %v9308_v35  ;;  %5986 = vpow2.f32 %v4801_v9  ;;  %v4509_v45 = vmul.f32 1.442695, %v4497_v31  ;;  %v4573_v32 = vmul.f32 1.442695, %v4561_v11 }
 0x3d2   : > { %v5969_v39 = vpop.eup %5968  ;;  %v8536_v3 = vadd.f32 %v4904_v53, %v8366_v61  ;;  %v4847_v46 = vadd.f32 %v5961_v56, %v4759_v40  ;;  %5988 = vpow2.f32 %v4475_v0  ;;  %v4649_v17 = vsub.f32 %v7840_v25, %v8506_v2 }
 0x3d3   : > { %v5971_v52 = vpop.eup %5970  ;;  %v4584_v51 = vadd.f32 %v5967_v19, %v4520_v37  ;;  %5990 = vpow2.f32 %v4539_v10  ;;  %v4737_v34 = vsub.f32 %v9255_v44, %v8506_v2  ;;  %v4825_v61 = vsub.f32 %v9302_v12, %v8506_v2  ;;  %v9311_v12 = vld [vmem:[#allocation91_spill] sm:$0xff] }
 0x3d4   : > { %v5973_v4 = vpop.eup %5972  ;;  %v4934_v9 = vsub.f32 %v8536_v3, %v8359_v29  ;;  %5992 = vlog2.f32 %v4847_v46  ;;  %v4442_v27 = vmax.f32 %v8312_v43, %v9309_v6  ;;  %v4661_v15 = vmul.f32 1.442695, %v4649_v17  ;;  %v9314_v17 = vld [vmem:[#allocation98_spill] sm:$0xff] }
 0x3d5   : > { %v5975_v21 = vpop.eup %5974  ;;  %v4878_v0 = vmul.f32 0.6931472, %v5973_v4  ;;  %v4672_v10 = vadd.f32 %v5969_v39, %v4584_v51  ;;  %5994 = vpow2.f32 %v4627_v55  ;;  %v4749_v59 = vmul.f32 1.442695, %v4737_v34 }
 0x3d6   : > { %v5977_v25 = vpop.eup %5976  ;;  %5996 = vpow2.f32 %v4715_v23  ;;  %v4837_v44 = vmul.f32 1.442695, %v4825_v61  ;;  %v8549_v56 = vmax.f32 %v9310_v16, %v4442_v27  ;;  %vm2169_vm11 = vcmp.ne.s32.totalorder %v7207_v63, 255 }
 0x3d7   : > { %v5979_v29 = vpop.eup %5978  ;;  %v4893_v20 = vadd.f32 %v4878_v0, %v8372_v38  ;;  %v4760_v22 = vadd.f32 %v5971_v52, %v4672_v10  ;;  %v4487_v33 = vmul.f32 %v5977_v25, %v9311_v12  ;;  %5998 = vpow2.f32 %v4803_v42 }
 0x3d8   : > { %v5981_v43 = vpop.eup %5980  ;;  %6000 = vpow2.f32 %v4509_v45  ;;  %v4498_v55 = vsub.f32 %v9310_v16, %v8549_v56  ;;  %v4562_v31 = vsub.f32 %v9312_v30, %v8549_v56  ;;  %v4650_v11 = vsub.f32 %v9313_v5, %v8549_v56  ;;  %v9319_v5 = vld [vmem:[#allocation84_spill] sm:$0xff] }
 0x3d9   : > { %v5983_v57 = vpop.eup %5982  ;;  %v4925_v53 = vsub.f32 %v4893_v20, %v8369_v36  ;;  %v4848_v40 = vadd.f32 %v5975_v21, %v4760_v22  ;;  %v4551_v38 = vadd.f32 %v5979_v29, %v4487_v33  ;;  %6002 = vpow2.f32 %v4573_v32  ;;  %v9316_v20 = vld [vmem:[#allocation47_spill] sm:$0xff]  ;;  %v9317_v33 = vld [vmem:[#allocation52_spill] sm:$0xff] }
 0x3da   : > { %v5985_v23 = vpop.eup %5984  ;;  %v4880_v19 = vmul.f32 0.6931472, %v5983_v57  ;;  %6004 = vpow2.f32 %v4661_v15  ;;  %v4511_v35 = vmul.f32 1.442695, %v4498_v55  ;;  %v4575_v39 = vmul.f32 1.442695, %v4562_v31 }
 0x3db   : > { %v5987_v37 = vpop.eup %5986  ;;  %v4941_v42 = vadd.f32 %v4933_v28, %v4925_v53  ;;  %6006 = vlog2.f32 %v4848_v40  ;;  %v4639_v45 = vadd.f32 %v5981_v43, %v4551_v38  ;;  %v4738_v52 = vsub.f32 %v9259_v54, %v8549_v56  ;;  %v9320_v57 = vld [vmem:[#allocation55_spill] sm:$0xff] }
 0x3dc   : > { %v5989_v3 = vpop.eup %5988  ;;  %v4894_v46 = vadd.f32 %v4880_v19, %v8410_v14  ;;  %6008 = vpow2.f32 %v4749_v59  ;;  %v4826_v36 = vsub.f32 %v9309_v6, %v8549_v56  ;;  %v4663_v61 = vmul.f32 1.442695, %v4650_v11  ;;  %v9322_v19 = vld [vmem:[#allocation93_spill] sm:$0xff] }
 0x3dd   : > { %v5991_v32 = vpop.eup %5990  ;;  %v4727_v51 = vadd.f32 %v5985_v23, %v4639_v45  ;;  %v4488_v34 = vmul.f32 %v5989_v3, %v9314_v17  ;;  %6010 = vpow2.f32 %v4837_v44  ;;  %v4751_v54 = vmul.f32 1.442695, %v4738_v52 }
 0x3de   : > { %v5993_v4 = vpop.eup %5992  ;;  %v4926_v28 = vsub.f32 %v4894_v46, %v8377_v48  ;;  %6012 = vpow2.f32 %v4511_v35  ;;  %v4839_v25 = vmul.f32 1.442695, %v4826_v36  ;;  %v8576_v48 = vsel %vm4858_vm4, %v9309_v6, %v8317_v58  ;;  %v9318_v58 = vld [vmem:[#allocation49_spill] sm:$0xff]  ;;  %v9325_v46 = vld [vmem:[#allocation19_spill] sm:$0xff]  ;;  %v9326_v36 = vld [vmem:[#allocation20_spill] sm:$0xff] }
 0x3df   : > { %v5995_v14 = vpop.eup %5994  ;;  %v4906_v27 = vmul.f32 0.6931472, %v5993_v4  ;;  %v4815_v21 = vadd.f32 %v5987_v37, %v4727_v51  ;;  %v4552_v0 = vadd.f32 %v5991_v32, %v4488_v34  ;;  %6014 = vpow2.f32 %v4575_v39  ;;  %v9323_v37 = vld [vmem:[#allocation64_spill] sm:$0xff]  ;;  %v9327_v34 = vld [vmem:[#allocation21_spill] sm:$0xff] }
 0x3e0   : > { %v5997_v10 = vpop.eup %5996  ;;  %v4942_v15 = vadd.f32 %v4934_v9, %v4926_v28  ;;  %v9315_v9 = vld [vmem:[#allocation37_spill] sm:$0xff]  ;;  %v8592_v31 = vsel %vm2165_vm3, %v4941_v42, 0.0  ;;  %v8603_v35 = vsel %vm4858_vm4, %v9320_v57, %v9322_v19  ;;  %v4443_v42 = vmax.f32 %v9324_v50, %v9323_v37  ;;  %v9333_v19 = vld [vmem:[#allocation36_spill] sm:$0xff] }
 0x3e1   : > { %v5999_v59 = vpop.eup %5998  ;;  %v8570_v44 = vadd.f32 %v4906_v27, %v8425_v47  ;;  %6016 = vlog2.f32 %v4815_v21  ;;  %v4640_v16 = vadd.f32 %v5995_v14, %v4552_v0  ;;  %v4433_v22 = vmax.f32 %v9316_v20, %v9315_v9  ;;  %v9329_v20 = vld [vmem:[#allocation40_spill] sm:$0xff] }
 0x3e2   : > { %v6001_v29 = vpop.eup %6000  ;;  %6018 = vpow2.f32 %v4663_v61  ;;  %v8585_v47 = vsel %vm4857_vm2, %v9315_v9, %v8293_v26  ;;  %v9321_v26 = vld [vmem:[#allocation94_spill] sm:$0xff]  ;;  %vm2170_vm12 = vcmp.ne.s32.totalorder %v7211_v1, 255 }
 0x3e3   : > { %v6003_v12 = vpop.eup %6002  ;;  %v4935_v43 = vsub.f32 %v8570_v44, %v9317_v33  ;;  %v4728_v55 = vadd.f32 %v5997_v10, %v4640_v16  ;;  %v4521_v6 = vmul.f32 %v6001_v29, %v9318_v58  ;;  %6020 = vpow2.f32 %v4751_v54 }
 0x3e4   : > { %v6005_v30 = vpop.eup %6004  ;;  %6022 = vpow2.f32 %v4839_v25  ;;  %v8595_v11 = vmax.f32 %v9319_v5, %v4433_v22  ;;  %v4434_v53 = vmax.f32 %v9321_v26, %v9320_v57  ;;  %v8622_v54 = vsel %vm2166_vm5, %v4942_v15, 0.0  ;;  %v9328_v25 = vld [vmem:[#allocation104_spill] sm:$0xff] }
 0x3e5   : > { %v6007_v40 = vpop.eup %6006  ;;  %v4816_v38 = vadd.f32 %v5999_v59, %v4728_v55  ;;  %v4585_v23 = vadd.f32 %v6003_v12, %v4521_v6  ;;  %v9331_v12 = vld [vmem:[#allocation99_spill] sm:$0xff] }
 0x3e6   : > { %v6009_v45 = vpop.eup %6008  ;;  %v4908_v39 = vmul.f32 0.6931472, %v6007_v40  ;;  %v4465_v3 = vsub.f32 %v9319_v5, %v8595_v11  ;;  %v4529_v52 = vsub.f32 %v9325_v46, %v8595_v11  ;;  %v4617_v32 = vsub.f32 %v9326_v36, %v8595_v11  ;;  %v9332_v40 = vld [vmem:[#allocation30_spill] sm:$0xff] }
 0x3e7   : > { %v6011_v51 = vpop.eup %6010  ;;  %6024 = vlog2.f32 %v4816_v38  ;;  %v4673_v17 = vadd.f32 %v6005_v30, %v4585_v23  ;;  %v4705_v4 = vsub.f32 %v9327_v34, %v8595_v11  ;;  %v4793_v28 = vsub.f32 %v9315_v9, %v8595_v11 }
 0x3e8   : > { %v6013_v61 = vpop.eup %6012  ;;  %v8618_v14 = vadd.f32 %v4908_v39, %v8449_v13  ;;  %v4477_v27 = vmul.f32 1.442695, %v4465_v3  ;;  %v4541_v21 = vmul.f32 1.442695, %v4529_v52  ;;  %v4629_v0 = vmul.f32 1.442695, %v4617_v32 }
 0x3e9   : > { %v4761_v10 = vadd.f32 %v6009_v45, %v4673_v17  ;;  %v4522_v59 = vmul.f32 %v6013_v61, %v9328_v25  ;;  %v4717_v16 = vmul.f32 1.442695, %v4705_v4  ;;  %v6015_v29 = vpop.eup %6014  ;;  %v9330_v13 = vld [vmem:[#allocation44_spill] sm:$0xff]  ;;  %v8632_v55 = vmax.f32 %v9331_v12, %v4443_v42  ;;  %v9334_v42 = vld [vmem:[#allocation38_spill] sm:$0xff] }
 0x3ea   : > { %v4936_v9 = vsub.f32 %v8618_v14, %v9329_v20  ;;  %6026 = vpow2.f32 %v4477_v27  ;;  %v8629_v22 = vmax.f32 %v9330_v13, %v4434_v53  ;;  %v4805_v6 = vmul.f32 1.442695, %v4793_v28  ;;  %v9335_v61 = vld [vmem:[#allocation76_spill] sm:$0xff] }
 0x3eb   : > { %v6017_v49 = vpop.eup %6016  ;;  %v4849_v15 = vadd.f32 %v6011_v51, %v4761_v10  ;;  %v4586_v58 = vadd.f32 %v6015_v29, %v4522_v59  ;;  %6028 = vpow2.f32 %v4541_v21  ;;  %v4499_v4 = vsub.f32 %v9331_v12, %v8632_v55  ;;  %v9336_v21 = vld [vmem:[#allocation87_spill] sm:$0xff]  ;;  %v9337_v25 = vld [vmem:[#allocation28_spill] sm:$0xff] }
 0x3ec   : > { %v6019_v30 = vpop.eup %6018  ;;  %v4882_v5 = vmul.f32 0.6931472, %v6017_v49  ;;  %6030 = vpow2.f32 %v4629_v0  ;;  %v4466_v26 = vsub.f32 %v9330_v13, %v8629_v22  ;;  %v4530_v38 = vsub.f32 %v9332_v40, %v8629_v22 }
 0x3ed   : > { %v6021_v53 = vpop.eup %6020  ;;  %6032 = vlog2.f32 %v4849_v15  ;;  %v4674_v23 = vadd.f32 %v6019_v30, %v4586_v58  ;;  %v4618_v50 = vsub.f32 %v9333_v19, %v8629_v22  ;;  %v4706_v45 = vsub.f32 %v9334_v42, %v8629_v22  ;;  %v9338_v15 = vld [vmem:[#allocation102_spill] sm:$0xff] }
 0x3ee   : > { %v6023_v39 = vpop.eup %6022  ;;  %v4895_v3 = vadd.f32 %v4882_v5, %v8471_v7  ;;  %6034 = vpow2.f32 %v4717_v16  ;;  %v4479_v46 = vmul.f32 1.442695, %v4466_v26  ;;  %v4543_v52 = vmul.f32 1.442695, %v4530_v38  ;;  %v9342_v19 = vld [vmem:[#allocation106_spill] sm:$0xff] }
 0x3ef   : > { %v4762_v36 = vadd.f32 %v6021_v53, %v4674_v23  ;;  %6036 = vpow2.f32 %v4805_v6  ;;  %v4631_v32 = vmul.f32 1.442695, %v4618_v50  ;;  %v4719_v51 = vmul.f32 1.442695, %v4706_v45  ;;  %v9341_v23 = vld [vmem:[#allocation60_spill] sm:$0xff] }
 0x3f0   : > { %v4927_v17 = vsub.f32 %v4895_v3, %v8478_v62  ;;  %6038 = vpow2.f32 %v4479_v46  ;;  %v4794_v34 = vsub.f32 %v9320_v57, %v8629_v22  ;;  %v4563_v27 = vsub.f32 %v9335_v61, %v8632_v55  ;;  %v9344_v46 = vld [vmem:[#allocation51_spill] sm:$0xff] }
 0x3f1   : > { %v6025_v28 = vpop.eup %6024  ;;  %v4850_v7 = vadd.f32 %v6023_v39, %v4762_v36  ;;  %6040 = vpow2.f32 %v4543_v52  ;;  %v4651_v0 = vsub.f32 %v9336_v21, %v8632_v55  ;;  %vm4859_vm9 = vcmp.eq.s32.totalorder %v9337_v25, 7  ;;  %v9343_v39 = vld [vmem:[#allocation29_spill] sm:$0xff] }
 0x3f2   : > { %v4943_v62 = vadd.f32 %v4935_v43, %v4927_v17  ;;  %v4884_v10 = vmul.f32 0.6931472, %v6025_v28  ;;  %6042 = vpow2.f32 %v4631_v32  ;;  %v4807_v57 = vmul.f32 1.442695, %v4794_v34  ;;  %v9339_v43 = vld [vmem:[#allocation22_spill] sm:$0xff] }
 0x3f3   : > { %6044 = vlog2.f32 %v4850_v7  ;;  %v4513_v59 = vmul.f32 1.442695, %v4499_v4  ;;  %v4577_v16 = vmul.f32 1.442695, %v4563_v27  ;;  %v4665_v49 = vmul.f32 1.442695, %v4651_v0 }
 0x3f4   : > { %v6027_v29 = vpop.eup %6026  ;;  %v4951_v13 = vsel %vm2167_vm6, %v4943_v62, 0.0  ;;  %v4896_v12 = vadd.f32 %v4884_v10, %v8502_v8  ;;  %v4739_v58 = vsub.f32 %v9338_v15, %v8632_v55  ;;  %6046 = vpow2.f32 %v4719_v51  ;;  %v9340_v8 = vld [vmem:[#allocation97_spill] sm:$0xff]  ;;  %v9346_v4 = vld [vmem:[#allocation58_spill] sm:$0xff]  ;;  %v9348_v0 = vld [vmem:[#allocation88_spill] sm:$0xff] }
 0x3f5   : > { %v6029_v44 = vpop.eup %6028  ;;  %v8663_v33 = vadd.f32 %v4951_v13, %v8592_v31  ;;  %v4489_v6 = vmul.f32 %v6027_v29, %v9339_v43  ;;  %v4827_v30 = vsub.f32 %v9323_v37, %v8632_v55  ;;  %6048 = vpow2.f32 %v4513_v59  ;;  %v9349_v29 = vld [vmem:[#allocation103_spill] sm:$0xff] }
 0x3f6   : > { %v6031_v5 = vpop.eup %6030  ;;  %v4928_v60 = vsub.f32 %v4896_v12, %v8497_v24  ;;  %v4753_v26 = vmul.f32 1.442695, %v4739_v58  ;;  %v8673_v40 = vsel %vm4859_vm9, %v9323_v37, %v9340_v8  ;;  %v4968_v31 = vsel %vm4967_vm7, %v8622_v54, 0.0  ;;  %v9345_v54 = vld [vmem:[#allocation107_spill] sm:$0xff] }
 0x3f7   : > { %v6033_v38 = vpop.eup %6032  ;;  %v4553_v53 = vadd.f32 %v6029_v44, %v4489_v6  ;;  %6050 = vpow2.f32 %v4807_v57  ;;  %v4444_v50 = vmax.f32 %v9342_v19, %v9341_v23  ;;  %vm4860_vm10 = vcmp.eq.s32.totalorder %v9343_v39, 7  ;;  %v9350_v6 = vld [vmem:[#allocation62_spill] sm:$0xff] }
 0x3f8   : > { %v6035_v42 = vpop.eup %6034  ;;  %v4944_v24 = vadd.f32 %v4936_v9, %v4928_v60  ;;  %v4910_v45 = vmul.f32 0.6931472, %v6033_v38  ;;  %6052 = vpow2.f32 %v4577_v16  ;;  %v8690_v36 = vsel %vm4860_vm10, %v9341_v23, %v9345_v54  ;;  %v9352_v38 = vld [vmem:[#allocation95_spill] sm:$0xff]  ;;  %v9353_v19 = vld [vmem:[#allocation66_spill] sm:$0xff] }
 0x3f9   : > { %v6037_v37 = vpop.eup %6036  ;;  %v4641_v3 = vadd.f32 %v6031_v5, %v4553_v53  ;;  %6054 = vpow2.f32 %v4665_v49  ;;  %v8684_v52 = vmax.f32 %v9344_v46, %v4444_v50  ;;  %v4841_v9 = vmul.f32 1.442695, %v4827_v30  ;;  %v9351_v30 = vld [vmem:[#allocation96_spill] sm:$0xff] }
 0x3fa   : > { %v6039_v32 = vpop.eup %6038  ;;  %v4952_v14 = vsel %vm2168_vm8, %v4944_v24, 0.0  ;;  %v8695_v20 = vadd.f32 %v4910_v45, %v8506_v2  ;;  %6056 = vpow2.f32 %v4753_v26  ;;  %v9347_v2 = vld [vmem:[#allocation78_spill] sm:$0xff]  ;;  %v4435_v5 = vmax.f32 %v9351_v30, %v9350_v6 }
 0x3fb   : > { %v6041_v51 = vpop.eup %6040  ;;  %v4969_v17 = vsel %vm4967_vm7, %v4952_v14, 0.0  ;;  %v4729_v34 = vadd.f32 %v6035_v42, %v4641_v3  ;;  %v4490_v28 = vmul.f32 %v6039_v32, %v9346_v4  ;;  %v4500_v7 = vsub.f32 %v9344_v46, %v8684_v52  ;;  %v9354_v42 = vld [vmem:[#allocation56_spill] sm:$0xff]  ;;  %v9355_v3 = vld [vmem:[#allocation69_spill] sm:$0xff] }
 0x3fc   : > { %v6043_v61 = vpop.eup %6042  ;;  %v8701_v27 = vadd.f32 %v4969_v17, %v4968_v31  ;;  %v4937_v41 = vsub.f32 %v8695_v20, %v8512_v18  ;;  %v4564_v21 = vsub.f32 %v9347_v2, %v8684_v52  ;;  %v4652_v62 = vsub.f32 %v9348_v0, %v8684_v52  ;;  %v9356_v46 = vld [vmem:[#allocation100_spill] sm:$0xff] }
 0x3fd   : > { %v6045_v10 = vpop.eup %6044  ;;  %v4817_v57 = vadd.f32 %v6037_v37, %v4729_v34  ;;  %v4554_v59 = vadd.f32 %v6041_v51, %v4490_v28  ;;  %v4515_v16 = vmul.f32 1.442695, %v4500_v7  ;;  %v4740_v13 = vsub.f32 %v9349_v29, %v8684_v52  ;;  %v9357_v34 = vld [vmem:[#allocation77_spill] sm:$0xff]  ;;  %v9358_v28 = vld [vmem:[#allocation32_spill] sm:$0xff] }
 0x3fe   : > { %v4912_v12 = vmul.f32 0.6931472, %v6045_v10  ;;  %6058 = vpow2.f32 %v4841_v9  ;;  %v4579_v49 = vmul.f32 1.442695, %v4564_v21  ;;  %v4828_v15 = vsub.f32 %v9341_v23, %v8684_v52  ;;  %v6047_v58 = vpop.eup %6046 }
 0x3ff   : > { %6060 = vlog2.f32 %v4817_v57  ;;  %v4642_v44 = vadd.f32 %v6043_v61, %v4554_v59  ;;  %v4667_v43 = vmul.f32 1.442695, %v4652_v62  ;;  %v6049_v60 = vpop.eup %6048  ;;  %v4755_v8 = vmul.f32 1.442695, %v4740_v13  ;;  %v9359_v61 = vld [vmem:[#allocation24_spill] sm:$0xff]  ;;  %v9360_v59 = vld [vmem:[#allocation35_spill] sm:$0xff] }
 0x400   : > { %v8716_v26 = vadd.f32 %v4912_v12, %v8549_v56  ;;  %6062 = vpow2.f32 %v4515_v16  ;;  %v8722_v31 = vsel %vm4859_vm9, %v9350_v6, %v9352_v38  ;;  %v4523_v50 = vmul.f32 %v6049_v60, %v9353_v19  ;;  %v9361_v13 = vld [vmem:[#allocation101_spill] sm:$0xff] }
 0x401   : > { %v6051_v53 = vpop.eup %6050  ;;  %v4730_v23 = vadd.f32 %v6047_v58, %v4642_v44  ;;  %v8726_v24 = vmax.f32 %v9354_v42, %v4435_v5  ;;  %6064 = vpow2.f32 %v4579_v49  ;;  %v4843_v37 = vmul.f32 1.442695, %v4828_v15  ;;  %v9362_v44 = vld [vmem:[#allocation79_spill] sm:$0xff] }
 0x402   : > { %v6053_v45 = vpop.eup %6052  ;;  %v4938_v56 = vsub.f32 %v8716_v26, %v8576_v48  ;;  %v4436_v54 = vmax.f32 %v9356_v46, %v9355_v3  ;;  %6066 = vpow2.f32 %v4667_v43  ;;  %v8749_v12 = vsel %vm4860_vm10, %v9355_v3, %v9361_v13 }
 0x403   : > { %v6055_v32 = vpop.eup %6054  ;;  %v4818_v14 = vadd.f32 %v6051_v53, %v4730_v23  ;;  %v4587_v9 = vadd.f32 %v6053_v45, %v4523_v50  ;;  %v4467_v51 = vsub.f32 %v9354_v42, %v8726_v24  ;;  %6068 = vpow2.f32 %v4755_v8  ;;  %v9364_v8 = vld [vmem:[#allocation39_spill] sm:$0xff]  ;;  %v9365_v45 = vld [vmem:[#allocation16_spill] sm:$0xff] }
 0x404   : > { %v6057_v17 = vpop.eup %6056  ;;  %v4531_v4 = vsub.f32 %v9357_v34, %v8726_v24  ;;  %v4619_v7 = vsub.f32 %v9358_v28, %v8726_v24  ;;  %v4707_v2 = vsub.f32 %v9359_v61, %v8726_v24  ;;  %v4795_v62 = vsub.f32 %v9350_v6, %v8726_v24  ;;  %v9363_v6 = vld [vmem:[#allocation90_spill] sm:$0xff] }
 0x405   : > { %6070 = vlog2.f32 %v4818_v14  ;;  %v4675_v21 = vadd.f32 %v6055_v32, %v4587_v9  ;;  %v4481_v0 = vmul.f32 1.442695, %v4467_v51  ;;  %v8743_v16 = vmax.f32 %v9360_v59, %v4436_v54 }
 0x406   : > { %6072 = vpow2.f32 %v4843_v37  ;;  %v4545_v10 = vmul.f32 1.442695, %v4531_v4  ;;  %v4633_v57 = vmul.f32 1.442695, %v4619_v7  ;;  %v4721_v15 = vmul.f32 1.442695, %v4707_v2 }
 0x407   : > { %v4763_v29 = vadd.f32 %v6057_v17, %v4675_v21  ;;  %6074 = vpow2.f32 %v4481_v0  ;;  %v4468_v58 = vsub.f32 %v9360_v59, %v8743_v16  ;;  %v4532_v43 = vsub.f32 %v9362_v44, %v8743_v16 }
 0x408   : > { %v6059_v49 = vpop.eup %6058  ;;  %v4620_v30 = vsub.f32 %v9363_v6, %v8743_v16  ;;  %6076 = vpow2.f32 %v4545_v10  ;;  %v4708_v38 = vsub.f32 %v9364_v8, %v8743_v16  ;;  %v4796_v53 = vsub.f32 %v9355_v3, %v8743_v16  ;;  %v9366_v10 = vld [vmem:[#allocation105_spill] sm:$0xff] }
 0x409   : > { %v6061_v5 = vpop.eup %6060  ;;  %v4851_v60 = vadd.f32 %v6059_v49, %v4763_v29  ;;  %6078 = vpow2.f32 %v4633_v57  ;;  %v4809_v50 = vmul.f32 1.442695, %v4795_v62  ;;  %v4483_v42 = vmul.f32 1.442695, %v4468_v58 }
 0x40a   : > { %v6063_v23 = vpop.eup %6062  ;;  %v4886_v19 = vmul.f32 0.6931472, %v6061_v5  ;;  %v4547_v46 = vmul.f32 1.442695, %v4532_v43  ;;  %v4635_v51 = vmul.f32 1.442695, %v4620_v30 }
 0x40b   : > { %6080 = vlog2.f32 %v4851_v60  ;;  %v4524_v37 = vmul.f32 %v6063_v23, %v9365_v45  ;;  %v6065_v54 = vpop.eup %6064  ;;  %v4723_v28 = vmul.f32 1.442695, %v4708_v38  ;;  %v4811_v2 = vmul.f32 1.442695, %v4796_v53 }
 0x40c   : > { %v4897_v32 = vadd.f32 %v4886_v19, %v8595_v11  ;;  %6082 = vpow2.f32 %v4721_v15  ;;  %v6067_v14 = vpop.eup %6066  ;;  %vm2171_vm13 = vcmp.ne.s32.totalorder %v9337_v25, 255  ;;  %vm2172_vm14 = vcmp.ne.s32.totalorder %v9343_v39, 255 }
 0x40d   : > { %v4588_v9 = vadd.f32 %v6065_v54, %v4524_v37  ;;  %6084 = vpow2.f32 %v4483_v42  ;;  %v6069_v17 = vpop.eup %6068 }
 0x40e   : > { %v4929_v3 = vsub.f32 %v4897_v32, %v8585_v47  ;;  %6086 = vpow2.f32 %v4809_v50 }
 0x40f   : > { %v6071_v34 = vpop.eup %6070  ;;  %v4676_v4 = vadd.f32 %v6067_v14, %v4588_v9  ;;  %6088 = vpow2.f32 %v4547_v46 }
 0x410   : > { %v6073_v7 = vpop.eup %6072  ;;  %v4945_v11 = vadd.f32 %v4937_v41, %v4929_v3  ;;  %v4888_v61 = vmul.f32 0.6931472, %v6071_v34  ;;  %6090 = vpow2.f32 %v4635_v51 }
 0x411   : > { %v6075_v21 = vpop.eup %6074  ;;  %v4764_v0 = vadd.f32 %v6069_v17, %v4676_v4  ;;  %6092 = vpow2.f32 %v4723_v28 }
 0x412   : > { %v4953_v62 = vsel %vm2169_vm11, %v4945_v11, 0.0  ;;  %v4898_v47 = vadd.f32 %v4888_v61, %v8629_v22  ;;  %v4491_v57 = vmul.f32 %v6075_v21, %v9366_v10  ;;  %v6077_v59 = vpop.eup %6076  ;;  %6094 = vpow2.f32 %v4811_v2 }
 0x413   : > { %v4959_v63 = vadd.f32 %v8663_v33, %v4953_v62  ;;  %v4852_v29 = vadd.f32 %v6073_v7, %v4764_v0  ;;  %v6079_v13 = vpop.eup %6078  ;;  %v6205_v21 = vmov 1966171168   ;;  %v4987_v0 = vlaneseq }
 0x414   : > { %v4930_v49 = vsub.f32 %v4898_v47, %v8603_v35  ;;  %v4555_v18 = vadd.f32 %v6077_v59, %v4491_v57  ;;  %v9367_v35 = vld [vmem:[#allocation92_spill] sm:$0xff] }
 0x415   : > { %v6081_v20 = vpop.eup %6080  ;;  %6096 = vlog2.f32 %v4852_v29  ;;  %v4988_v10 = vshrl.u32 %v4987_v0, 7  ;;  %vm5002_vm15 = vcmp.lt.s32.totalorder %v4987_v0, 160 }
 0x416   : > { %v6083_v41 = vpop.eup %6082  ;;  %v4946_v22 = vadd.f32 %v4938_v56, %v4930_v49  ;;  %v4914_v15 = vmul.f32 0.6931472, %v6081_v20  ;;  %v4643_v58 = vadd.f32 %v6079_v13, %v4555_v18  ;;  %v4957_v18 = vld [vmem:[%s6349_s30] sm:$0x3] }
 0x417   : > { %v6085_v44 = vpop.eup %6084 }
 0x418   : > { %v6087_v33 = vpop.eup %6086  ;;  %v4954_v43 = vsel %vm2170_vm12, %v4946_v22, 0.0  ;;  %v4923_v6 = vadd.f32 %v4914_v15, %v8632_v55  ;;  %v4731_v30 = vadd.f32 %v6083_v41, %v4643_v58  ;;  %v4492_v5 = vmul.f32 %v6085_v44, %v9367_v35 }
 0x419   : > { %v6089_v60 = vpop.eup %6088  ;;  %v4971_v8 = vsel %vm4967_vm7, %v4954_v43, 0.0 }
 0x41a   : > { %v4972_v1 = vadd.f32 %v4971_v8, %v8701_v27  ;;  %v4939_v38 = vsub.f32 %v4923_v6, %v8673_v40  ;;  %v4819_v53 = vadd.f32 %v6087_v33, %v4731_v30  ;;  %v4556_v48 = vadd.f32 %v6089_v60, %v4492_v5  ;;  %v6091_v26 = vpop.eup %6090 }
 0x41b   : > { %v6093_v23 = vpop.eup %6092 }
 0x41c   : > { %6098 = vlog2.f32 %v4819_v53  ;;  %v4644_v56 = vadd.f32 %v6091_v26, %v4556_v48  ;;  %v6095_v19 = vpop.eup %6094 }
 0x41e   : > { %v4732_v50 = vadd.f32 %v6093_v23, %v4644_v56 }
 0x41f   : > { %v6097_v42 = vpop.eup %6096 }
 0x420   : > { %v4916_v55 = vmul.f32 0.6931472, %v6097_v42  ;;  %v4820_v45 = vadd.f32 %v6095_v19, %v4732_v50 }
 0x422   : > { %v4924_v37 = vadd.f32 %v4916_v55, %v8684_v52  ;;  %6100 = vlog2.f32 %v4820_v45 }
 0x424   : > { %v4940_v46 = vsub.f32 %v4924_v37, %v8690_v36 }
 0x426   : > { %v6099_v54 = vpop.eup %6098 }
 0x427   : > { %v4890_v27 = vmul.f32 0.6931472, %v6099_v54 }
 0x429   : > { %v4899_v40 = vadd.f32 %v4890_v27, %v8726_v24 }
 0x42b   : > { %v4931_v32 = vsub.f32 %v4899_v40, %v8722_v31 }
 0x42c   : > { %v6101_v14 = vpop.eup %6100 }
 0x42d   : > { %v4947_v9 = vadd.f32 %v4939_v38, %v4931_v32  ;;  %v4892_v51 = vmul.f32 0.6931472, %v6101_v14 }
 0x42f   : > { %v4955_v17 = vsel %vm2171_vm13, %v4947_v9, 0.0  ;;  %v4900_v3 = vadd.f32 %v4892_v51, %v8743_v16  ;;  %v4985_v16 = vunpack.c.l.s4 %v6205_v21 }
 0x430   : > { %v4960_v34 = vadd.f32 %v4959_v63, %v4955_v17 }
 0x431   : > { %v4932_v52 = vsub.f32 %v4900_v3, %v8749_v12  ;;  %v4986_v39 = vunpack.c.0.s8 %v4985_v16 }
 0x432   : > { %v4961_v4 = vrot.slane %v4960_v34, 4 }
 0x433   : > { %v4948_v36 = vadd.f32 %v4940_v46, %v4932_v52  ;;  %v4989_v29 = vsub.s32 %v4986_v39, %v4988_v10 }
 0x434   : > { %v4962_v28 = vadd.f32 %v4961_v4, %v4960_v34 }
 0x435   : > { %v4956_v7 = vsel %vm2172_vm14, %v4948_v36, 0.0 }
 0x436   : > { %v4973_v24 = vsel %vm4967_vm7, %v4956_v7, 0.0  ;;  %v4963_v31 = vrot.slane %v4962_v28, 2 }
 0x437   : > { %v4974_v11 = vadd.f32 %v4973_v24, %v4972_v1 }
 0x438   : > { %v4964_v25 = vadd.f32 %v4963_v31, %v4962_v28 }
 0x439   : > { %v4975_v61 = vrot.slane %v4974_v11, 4 }
 0x43a   : > { %v4965_v62 = vrot.slane %v4964_v25, 1 }
 0x43b   : > { %v4976_v2 = vadd.f32 %v4975_v61, %v4974_v11 }
 0x43c   : > { %v4966_v59 = vadd.f32 %v4965_v62, %v4964_v25 }
 0x43d   : > { %v4977_v12 = vrot.slane %v4976_v2, 2 }
 0x43f   : > { %v4978_v47 = vadd.f32 %v4977_v12, %v4976_v2 }
 0x441   : > { %v4979_v57 = vrot.slane %v4978_v47, 1 }
 0x443   : > { %v4980_v63 = vadd.f32 %v4979_v57, %v4978_v47 }
 0x445   : > { %v4983_v13 = vcombine.low %v4966_v59, %v4980_v63 }
 0x447   : > { %v4990_v49 = vrot.slane %v4983_v13, %v4989_v29 }
 0x449   : > { %v4997_v20 = vrot.slane %v4990_v49, %v4989_v29 }
 0x44b   : > { %v4999_v41 = vadd.f32 %v4997_v20, %v4957_v18 }
 0x44d   : > { %5004 = vst.msk [vmem:[%s6349_s30] sm:$0x3] %vm5002_vm15, %v4999_v41 }
 0x44e   : > { %6120 = shalt.err (!%p6117_p10)
}
 0x44f   : > { %s6121_s30 = scalar_lea.hbm %s8796_s24, 32  ;;  %s6125_s9 = scalar_lea.hbm %s9369_s11, 64 }
 0x450   : > { %p6122_p11 = scmp.ne.s32.totalorder %s8796_s24, %s6121_s30  ;;  %p6126_p0 = scmp.lt.u32.totalorder %s8796_s24, %s9369_s11 }
 0x451   : > { %p6127_p1 = scmp.lt.u32.totalorder %s6125_s9, %s6121_s30  ;;  %p6129_p4 = scmp.lt.u32.totalorder %s6121_s30, %s8796_s24 }
 0x452   : > { %p6123_p12 = pnand %p6122_p11, %p6296_p3 }
 0x453   : > { %p6128_p2 = por %p6127_p1, %p6126_p0 }
 0x454   : > { %p6124_p13 = pneg %p6123_p12 }
 0x455   : > { %p6130_p5 = por %p6129_p4, %p6128_p2 }
 0x457   : > { %p6131_p6 = pnand %p6130_p5, %p6124_p13 }
 0x459   : > { %6134 = shalt.err (!%p6131_p6)
}
 0x45a   : > { %5676 = dma.vmem_to_hbm [thread:$0]  (%p6296_p3), %s8798_s12, 32, %s8796_s24, %s5006_s14  }
 0x45b PF: > { %s9371_s15 = sld [smem:[#allocation11_spill]]  ;;  %s9372_s20 = sld [smem:[#allocation7_spill]] }
 0x461   : > { %p5682_p7 = scmp.ge.s32.totalorder %s9371_s15, 2  ;;  %s5033_s8 = sand.u32 1, %s9372_s20  }
 0x462   : > { %s5034_s17 = scalar_lea.sflag [#allocation5], %s5033_s8 }
 0x463   : > { %p5679_p8 = pnand %p5682_p7, %p6306_p9 }
 0x465   : > { %6168 = dma.done.wait (!%p5679_p8), %s5034_s17, 32  }
 0x466   : > { %6170 = vsyncadd (!%p5679_p8), %s5034_s17, 4294967264  ;;  %s20_s8 = sadd.s32 1, %s9371_s15   ;;  %s9374_s22 = sld [smem:[#allocation8_spill]] }
 0x467   : > { %p17_p10 = scmp.ge.s32.totalorder %s20_s8, 12   ;;  %s9375_s26 = sld [smem:[#allocation15_spill]] }
 0x468   : > { %s9376_s27 = sld [smem:[#allocation9_spill]]  ;;  %s9377_s28 = sld [smem:[#allocation10_spill]] }
 0x469   : > { %s9378_s29 = sld [smem:[#allocation12_spill]]  ;;  %s9379_s30 = sld [smem:[#allocation13_spill]] }
 0x46a   : > { %s9380_s24 = smov %s6177_s25  ;;  %19 = sbr.rel (!%p17_p10) target bundleno = 7 (0x7), region = 115 }
 0x46c   : > { %s9381_s25 = smov %s9374_s22 }
 0x471   :  { %5039 = vsyncpa [#allocation5], 1 }
 0x472   :  { %5041 = vsyncpa [#allocation5 + $0x1], 1 }

</bundles_post_ra>
